<compile_context>
chip_gen: v5e
topology: v5e:2x2
jax: 0.10.0
libtpu: 0.0.40
codegen_flags: <defaults>
</compile_context>

<pallas_src>
import functools

import jax
import jax.numpy as jnp
from jax import lax
from jax.experimental import pallas as pl
from jax.experimental.pallas import tpu as pltpu


# --------------------------------------------------------------------------- #
# Single fused kernel: all layers' x-projections + recurrences + FC head.
# --------------------------------------------------------------------------- #
def _fused_gru_kernel(*refs, num_layers, L, N, H):
    """refs layout:
      refs[0]                         : x2d (L*N, F)                      f32
      refs[1+4*i : 1+4*(i+1)]         : layer i -> w_ih_t (F_in, 3H),
                                        w_hh_t (H, 3H),
                                        b_fold (1, 3H) = b_ih + (b_hh_r, b_hh_z, 0),
                                        b_hh_n (1, H)
      refs[1+4*num_layers : +2]       : w_fc_pad (H, CP), b_fc_pad (1, CP)
      refs[3+4*num_layers]            : out (L, CP)
      refs[4+4*num_layers:]           : scratch xp (L*N, 3H), scratch seq (L*N, H)
    """
    x_ref = refs[0]
    layer_refs = refs[1:1 + 4 * num_layers]
    wfc_ref, bfc_ref = refs[1 + 4 * num_layers:3 + 4 * num_layers]
    out_ref = refs[3 + 4 * num_layers]
    xp_scr, seq_scr = refs[4 + 4 * num_layers:]

    seq_val = x_ref[...]                                    # (L*N, F_in) for layer 0
    last_rows = []
    for li in range(num_layers):
        wih_ref, whh_ref, bfold_ref, bhhn_ref = layer_refs[4 * li:4 * li + 4]

        # (1) x-projection for ALL timesteps: one lane-dense MXU matmul,
        #     r/z parts of b_hh pre-folded into the bias. Staged in VMEM scratch.
        xp_scr[...] = (jnp.dot(seq_val, wih_ref[...],
                               preferred_element_type=jnp.float32)
                       + bfold_ref[...])

        bhh_n = bhhn_ref[...]                               # (1, H)

        # (2) Sequential recurrence, fully unrolled in-kernel (L steps).
        #     h stays in vregs; per-step output only hits VMEM scratch when the
        #     next layer needs the full sequence.
        h = jnp.zeros((N, H), jnp.float32)
        for l in range(L):                                  # L=8: straight-line code
            gx = xp_scr[pl.ds(l * N, N), :]                 # (N, 3H), includes b_ih
            gh = jnp.dot(h, whh_ref[...],
                         preferred_element_type=jnp.float32)  # (N, 3H)
            # PyTorch gate order (r, z, n); all slices 128-lane aligned (H=128).
            r = jax.nn.sigmoid(gx[:, 0:H] + gh[:, 0:H])
            z = jax.nn.sigmoid(gx[:, H:2 * H] + gh[:, H:2 * H])
            n = jnp.tanh(gx[:, 2 * H:3 * H] + r * (gh[:, 2 * H:3 * H] + bhh_n))
            h = (1.0 - z) * n + z * h
            if li + 1 < num_layers:
                seq_scr[pl.ds(l * N, N), :] = h
            else:
                # torch `out[-1]` == time-major output at parallel index N-1.
                last_rows.append(h[N - 1:N, :])
        if li + 1 < num_layers:
            seq_val = seq_scr[...]                          # (L*N, H) feeds next layer

    out_last = jnp.concatenate(last_rows, axis=0)           # (L, H) == (B, H)

    # (3) FC head; output padded to CP (>=128) lanes -> unmasked vst.
    out_ref[...] = (jnp.dot(out_last, wfc_ref[...],
                            preferred_element_type=jnp.float32)
                    + bfc_ref[...])


# --------------------------------------------------------------------------- #
# Full model forward (matches Gru.forward semantics exactly).
# --------------------------------------------------------------------------- #
@jax.jit
def gru_model_forward(x, gru_params, fc_params):
    """x: (B, T, F) -- the batch_first input of the PyTorch module.

    gru_params: list of (w_ih_t (F_in,3H), w_hh_t (H,3H), b_ih (3H,), b_hh (3H,))
    fc_params:  (w_fc_t (H, C), b_fc (C,))
    returns:    (B, C) logits, identical to fc(gru(x.permute(1,0,2))[0][-1]).
    """
    B, T, F = x.shape
    # After the PyTorch permute + batch_first GRU, the time-major GRU input is
    # exactly x itself with L = B steps, N = T parallel sequences.
    L, N = B, T
    H = gru_params[0][1].shape[0]
    num_layers = len(gru_params)

    args = [x.astype(jnp.float32).reshape(L * N, F)]
    for (w_ih_t, w_hh_t, b_ih, b_hh) in gru_params:
        H3 = w_hh_t.shape[1]
        Hc = H3 // 3
        # Fold b_hh's r/z components into the x-projection bias (n part stays
        # per-step because PyTorch applies it inside the r*() term).
        b_fold = jnp.concatenate(
            [b_ih[:2 * Hc] + b_hh[:2 * Hc], b_ih[2 * Hc:]]).reshape(1, H3)
        args += [w_ih_t.astype(jnp.float32),
                 w_hh_t.astype(jnp.float32),
                 b_fold.astype(jnp.float32),
                 b_hh[2 * Hc:].reshape(1, Hc).astype(jnp.float32)]

    w_fc_t, b_fc = fc_params
    C = w_fc_t.shape[1]
    CP = ((C + 127) // 128) * 128        # lane-dense FC output, sliced below
    w_fc_pad = jnp.zeros((H, CP), jnp.float32).at[:, :C].set(w_fc_t.astype(jnp.float32))
    b_fc_pad = jnp.zeros((1, CP), jnp.float32).at[:, :C].set(b_fc.astype(jnp.float32))
    args += [w_fc_pad, b_fc_pad]

    kernel = functools.partial(_fused_gru_kernel,
                               num_layers=num_layers, L=L, N=N, H=H)
    logits_pad = pl.pallas_call(
        kernel,
        out_shape=jax.ShapeDtypeStruct((L, CP), jnp.float32),
        in_specs=[pl.BlockSpec(memory_space=pltpu.MemorySpace.VMEM)] * len(args),
        out_specs=pl.BlockSpec(memory_space=pltpu.MemorySpace.VMEM),
        scratch_shapes=[pltpu.VMEM((L * N, 3 * H), jnp.float32),   # gx for all steps
                        pltpu.VMEM((L * N, H), jnp.float32)],      # layer output seq
    )(*args)
    return logits_pad[:, :C]


# --------------------------------------------------------------------------- #
# Pure-JAX reference (same math, lax.scan, un-folded biases) for correctness.
# --------------------------------------------------------------------------- #
def _ref_forward(x, gru_params, fc_params):
    seq = x.astype(jnp.float32)                                   # (L, N, F)
    for (w_ih_t, w_hh_t, b_ih, b_hh) in gru_params:
        H = w_hh_t.shape[0]

        def step(h, x_t):
            gx = x_t @ w_ih_t + b_ih
            gh = h @ w_hh_t + b_hh
            r = jax.nn.sigmoid(gx[:, :H] + gh[:, :H])
            z = jax.nn.sigmoid(gx[:, H:2 * H] + gh[:, H:2 * H])
            n = jnp.tanh(gx[:, 2 * H:] + r * gh[:, 2 * H:])
            h_new = (1.0 - z) * n + z * h
            return h_new, h_new

        h0 = jnp.zeros((seq.shape[1], H), jnp.float32)
        _, seq = lax.scan(step, h0, seq)
    out_last = seq[:, -1, :]
    w_fc_t, b_fc = fc_params
    return out_last @ w_fc_t + b_fc


# --------------------------------------------------------------------------- #
if __name__ == "__main__":
    # Module config: input_size=64, hidden_size=128, num_layers=2,
    # num_classes=16, batch_first=True.  Input x: (batch=8, seq=16, input=64).
    B, T, F = 8, 16, 64
    HIDDEN = 128
    NUM_LAYERS = 2
    NUM_CLASSES = 16

    key = jax.random.PRNGKey(0)
    keys = jax.random.split(key, 1 + 4 * NUM_LAYERS + 2)
    x = jax.random.normal(keys[0], (B, T, F), dtype=jnp.float32)

    gru_params = []
    in_dim = F
    scale = 1.0 / jnp.sqrt(HIDDEN).astype(jnp.float32)
    for li in range(NUM_LAYERS):
        k0, k1, k2, k3 = keys[1 + 4 * li: 1 + 4 * (li + 1)]
        w_ih_t = scale * jax.random.normal(k0, (in_dim, 3 * HIDDEN), dtype=jnp.float32)
        w_hh_t = scale * jax.random.normal(k1, (HIDDEN, 3 * HIDDEN), dtype=jnp.float32)
        b_ih = scale * jax.random.normal(k2, (3 * HIDDEN,), dtype=jnp.float32)
        b_hh = scale * jax.random.normal(k3, (3 * HIDDEN,), dtype=jnp.float32)
        gru_params.append((w_ih_t, w_hh_t, b_ih, b_hh))
        in_dim = HIDDEN

    kf0, kf1 = keys[-2], keys[-1]
    w_fc_t = scale * jax.random.normal(kf0, (HIDDEN, NUM_CLASSES), dtype=jnp.float32)
    b_fc = scale * jax.random.normal(kf1, (NUM_CLASSES,), dtype=jnp.float32)
    fc_params = (w_fc_t, b_fc)

    logits = gru_model_forward(x, gru_params, fc_params)
    logits = jax.block_until_ready(logits)
    assert logits.shape == (B, NUM_CLASSES)

    ref = _ref_forward(x, gru_params, fc_params)
    assert jnp.allclose(logits, ref, atol=1e-4, rtol=1e-4), (
        float(jnp.max(jnp.abs(logits - ref))))

    print("KERNEL_OK")
</pallas_src>

<mosaic_0001>
module attributes {stable_mosaic.version = 11 : i64} {
  func.func @_fused_gru_kernel(%arg0: memref<128x64xf32, #tpu.memory_space<vmem>>, %arg1: memref<64x384xf32, #tpu.memory_space<vmem>>, %arg2: memref<128x384xf32, #tpu.memory_space<vmem>>, %arg3: memref<1x384xf32, #tpu.memory_space<vmem>>, %arg4: memref<1x128xf32, #tpu.memory_space<vmem>>, %arg5: memref<128x384xf32, #tpu.memory_space<vmem>>, %arg6: memref<128x384xf32, #tpu.memory_space<vmem>>, %arg7: memref<1x384xf32, #tpu.memory_space<vmem>>, %arg8: memref<1x128xf32, #tpu.memory_space<vmem>>, %arg9: memref<128x128xf32, #tpu.memory_space<vmem>>, %arg10: memref<1x128xf32, #tpu.memory_space<vmem>>, %arg11: memref<8x128xf32, #tpu.memory_space<vmem>>, %arg12: memref<128x384xf32, #tpu.memory_space<vmem>>, %arg13: memref<128x128xf32, #tpu.memory_space<vmem>>) attributes {dimension_semantics = [], scalar_prefetch = 0 : i64, scratch_operands = 2 : i64, tpu.core_type = #tpu.core_type<tc>} {
    %c0 = arith.constant 0 : index
    %c0_0 = arith.constant 0 : index
    %0 = vector.load %arg0[%c0, %c0_0] : memref<128x64xf32, #tpu.memory_space<vmem>>, vector<128x64xf32>
    %c0_1 = arith.constant 0 : index
    %c0_2 = arith.constant 0 : index
    %1 = vector.load %arg1[%c0_1, %c0_2] : memref<64x384xf32, #tpu.memory_space<vmem>>, vector<64x384xf32>
    %cst = arith.constant dense<0.000000e+00> : vector<128x384xf32>
    %2 = tpu.matmul %0, %1, %cst {dimension_numbers = #tpu.dot_dimension_numbers<[1], [0], [0], [1], [0, 0, 1, 1], [], []>} : vector<128x64xf32>, vector<64x384xf32>, vector<128x384xf32> -> vector<128x384xf32>
    %c0_3 = arith.constant 0 : index
    %c0_4 = arith.constant 0 : index
    %3 = vector.load %arg3[%c0_3, %c0_4] : memref<1x384xf32, #tpu.memory_space<vmem>>, vector<1x384xf32>
    %4 = vector.broadcast %3 : vector<1x384xf32> to vector<128x384xf32>
    %5 = arith.addf %2, %4 : vector<128x384xf32>
    %c0_5 = arith.constant 0 : index
    %c0_6 = arith.constant 0 : index
    %6 = vector.load %arg12[%c0_5, %c0_6] : memref<128x384xf32, #tpu.memory_space<vmem>>, vector<128x384xf32>
    tpu.vector_store %arg12[%c0_5, %c0_6], %5 {strides = array<i32>} : memref<128x384xf32, #tpu.memory_space<vmem>>, vector<128x384xf32>,
    %c0_7 = arith.constant 0 : index
    %c0_8 = arith.constant 0 : index
    %7 = vector.load %arg4[%c0_7, %c0_8] : memref<1x128xf32, #tpu.memory_space<vmem>>, vector<1x128xf32>
    %cst_9 = arith.constant 0.000000e+00 : f32
    %8 = vector.broadcast %cst_9 : f32 to vector<16x128xf32>
    %c0_10 = arith.constant 0 : index
    %c0_11 = arith.constant 0 : index
    %9 = vector.load %arg12[%c0_10, %c0_11] : memref<128x384xf32, #tpu.memory_space<vmem>>, vector<16x384xf32>
    %c0_12 = arith.constant 0 : index
    %c0_13 = arith.constant 0 : index
    %10 = vector.load %arg2[%c0_12, %c0_13] : memref<128x384xf32, #tpu.memory_space<vmem>>, vector<128x384xf32>
    %cst_14 = arith.constant dense<0.000000e+00> : vector<16x384xf32>
    %11 = tpu.matmul %8, %10, %cst_14 {dimension_numbers = #tpu.dot_dimension_numbers<[1], [0], [0], [1], [0, 0, 1, 1], [], []>} : vector<16x128xf32>, vector<128x384xf32>, vector<16x384xf32> -> vector<16x384xf32>
    %12 = vector.extract_strided_slice %9 {offsets = [0, 0], sizes = [16, 128], strides = [1, 1]} : vector<16x384xf32> to vector<16x128xf32>
    %13 = vector.extract_strided_slice %11 {offsets = [0, 0], sizes = [16, 128], strides = [1, 1]} : vector<16x384xf32> to vector<16x128xf32>
    %14 = arith.addf %12, %13 : vector<16x128xf32>
    %15 = arith.negf %14 : vector<16x128xf32>
    %16 = math.exp %15 : vector<16x128xf32>
    %cst_15 = arith.constant 1.000000e+00 : f32
    %17 = vector.broadcast %cst_15 : f32 to vector<16x128xf32>
    %18 = arith.addf %17, %16 : vector<16x128xf32>
    %19 = arith.divf %17, %18 : vector<16x128xf32>
    %20 = vector.extract_strided_slice %9 {offsets = [0, 128], sizes = [16, 128], strides = [1, 1]} : vector<16x384xf32> to vector<16x128xf32>
    %21 = vector.extract_strided_slice %11 {offsets = [0, 128], sizes = [16, 128], strides = [1, 1]} : vector<16x384xf32> to vector<16x128xf32>
    %22 = arith.addf %20, %21 : vector<16x128xf32>
    %23 = arith.negf %22 : vector<16x128xf32>
    %24 = math.exp %23 : vector<16x128xf32>
    %cst_16 = arith.constant 1.000000e+00 : f32
    %25 = vector.broadcast %cst_16 : f32 to vector<16x128xf32>
    %26 = arith.addf %25, %24 : vector<16x128xf32>
    %27 = arith.divf %25, %26 : vector<16x128xf32>
    %28 = vector.extract_strided_slice %9 {offsets = [0, 256], sizes = [16, 128], strides = [1, 1]} : vector<16x384xf32> to vector<16x128xf32>
    %29 = vector.extract_strided_slice %11 {offsets = [0, 256], sizes = [16, 128], strides = [1, 1]} : vector<16x384xf32> to vector<16x128xf32>
    %30 = vector.broadcast %7 : vector<1x128xf32> to vector<16x128xf32>
    %31 = arith.addf %29, %30 : vector<16x128xf32>
    %32 = arith.mulf %19, %31 : vector<16x128xf32>
    %33 = arith.addf %28, %32 : vector<16x128xf32>
    %34 = math.tanh %33 : vector<16x128xf32>
    %cst_17 = arith.constant 1.000000e+00 : f32
    %35 = vector.broadcast %cst_17 : f32 to vector<16x128xf32>
    %36 = arith.subf %35, %27 : vector<16x128xf32>
    %37 = arith.mulf %36, %34 : vector<16x128xf32>
    %38 = arith.mulf %27, %8 : vector<16x128xf32>
    %39 = arith.addf %37, %38 : vector<16x128xf32>
    %c0_18 = arith.constant 0 : index
    %c0_19 = arith.constant 0 : index
    %40 = vector.load %arg13[%c0_18, %c0_19] : memref<128x128xf32, #tpu.memory_space<vmem>>, vector<16x128xf32>
    tpu.vector_store %arg13[%c0_18, %c0_19], %39 {strides = array<i32>} : memref<128x128xf32, #tpu.memory_space<vmem>>, vector<16x128xf32>,
    %c16 = arith.constant 16 : index
    %c0_20 = arith.constant 0 : index
    %41 = vector.load %arg12[%c16, %c0_20] : memref<128x384xf32, #tpu.memory_space<vmem>>, vector<16x384xf32>
    %c0_21 = arith.constant 0 : index
    %c0_22 = arith.constant 0 : index
    %42 = vector.load %arg2[%c0_21, %c0_22] : memref<128x384xf32, #tpu.memory_space<vmem>>, vector<128x384xf32>
    %cst_23 = arith.constant dense<0.000000e+00> : vector<16x384xf32>
    %43 = tpu.matmul %39, %42, %cst_23 {dimension_numbers = #tpu.dot_dimension_numbers<[1], [0], [0], [1], [0, 0, 1, 1], [], []>} : vector<16x128xf32>, vector<128x384xf32>, vector<16x384xf32> -> vector<16x384xf32>
    %44 = vector.extract_strided_slice %41 {offsets = [0, 0], sizes = [16, 128], strides = [1, 1]} : vector<16x384xf32> to vector<16x128xf32>
    %45 = vector.extract_strided_slice %43 {offsets = [0, 0], sizes = [16, 128], strides = [1, 1]} : vector<16x384xf32> to vector<16x128xf32>
    %46 = arith.addf %44, %45 : vector<16x128xf32>
    %47 = arith.negf %46 : vector<16x128xf32>
    %48 = math.exp %47 : vector<16x128xf32>
    %cst_24 = arith.constant 1.000000e+00 : f32
    %49 = vector.broadcast %cst_24 : f32 to vector<16x128xf32>
    %50 = arith.addf %49, %48 : vector<16x128xf32>
    %51 = arith.divf %49, %50 : vector<16x128xf32>
    %52 = vector.extract_strided_slice %41 {offsets = [0, 128], sizes = [16, 128], strides = [1, 1]} : vector<16x384xf32> to vector<16x128xf32>
    %53 = vector.extract_strided_slice %43 {offsets = [0, 128], sizes = [16, 128], strides = [1, 1]} : vector<16x384xf32> to vector<16x128xf32>
    %54 = arith.addf %52, %53 : vector<16x128xf32>
    %55 = arith.negf %54 : vector<16x128xf32>
    %56 = math.exp %55 : vector<16x128xf32>
    %cst_25 = arith.constant 1.000000e+00 : f32
    %57 = vector.broadcast %cst_25 : f32 to vector<16x128xf32>
    %58 = arith.addf %57, %56 : vector<16x128xf32>
    %59 = arith.divf %57, %58 : vector<16x128xf32>
    %60 = vector.extract_strided_slice %41 {offsets = [0, 256], sizes = [16, 128], strides = [1, 1]} : vector<16x384xf32> to vector<16x128xf32>
    %61 = vector.extract_strided_slice %43 {offsets = [0, 256], sizes = [16, 128], strides = [1, 1]} : vector<16x384xf32> to vector<16x128xf32>
    %62 = vector.broadcast %7 : vector<1x128xf32> to vector<16x128xf32>
    %63 = arith.addf %61, %62 : vector<16x128xf32>
    %64 = arith.mulf %51, %63 : vector<16x128xf32>
    %65 = arith.addf %60, %64 : vector<16x128xf32>
    %66 = math.tanh %65 : vector<16x128xf32>
    %cst_26 = arith.constant 1.000000e+00 : f32
    %67 = vector.broadcast %cst_26 : f32 to vector<16x128xf32>
    %68 = arith.subf %67, %59 : vector<16x128xf32>
    %69 = arith.mulf %68, %66 : vector<16x128xf32>
    %70 = arith.mulf %59, %39 : vector<16x128xf32>
    %71 = arith.addf %69, %70 : vector<16x128xf32>
    %c16_27 = arith.constant 16 : index
    %c0_28 = arith.constant 0 : index
    %72 = vector.load %arg13[%c16_27, %c0_28] : memref<128x128xf32, #tpu.memory_space<vmem>>, vector<16x128xf32>
    tpu.vector_store %arg13[%c16_27, %c0_28], %71 {strides = array<i32>} : memref<128x128xf32, #tpu.memory_space<vmem>>, vector<16x128xf32>,
    %c32 = arith.constant 32 : index
    %c0_29 = arith.constant 0 : index
    %73 = vector.load %arg12[%c32, %c0_29] : memref<128x384xf32, #tpu.memory_space<vmem>>, vector<16x384xf32>
    %c0_30 = arith.constant 0 : index
    %c0_31 = arith.constant 0 : index
    %74 = vector.load %arg2[%c0_30, %c0_31] : memref<128x384xf32, #tpu.memory_space<vmem>>, vector<128x384xf32>
    %cst_32 = arith.constant dense<0.000000e+00> : vector<16x384xf32>
    %75 = tpu.matmul %71, %74, %cst_32 {dimension_numbers = #tpu.dot_dimension_numbers<[1], [0], [0], [1], [0, 0, 1, 1], [], []>} : vector<16x128xf32>, vector<128x384xf32>, vector<16x384xf32> -> vector<16x384xf32>
    %76 = vector.extract_strided_slice %73 {offsets = [0, 0], sizes = [16, 128], strides = [1, 1]} : vector<16x384xf32> to vector<16x128xf32>
    %77 = vector.extract_strided_slice %75 {offsets = [0, 0], sizes = [16, 128], strides = [1, 1]} : vector<16x384xf32> to vector<16x128xf32>
    %78 = arith.addf %76, %77 : vector<16x128xf32>
    %79 = arith.negf %78 : vector<16x128xf32>
    %80 = math.exp %79 : vector<16x128xf32>
    %cst_33 = arith.constant 1.000000e+00 : f32
    %81 = vector.broadcast %cst_33 : f32 to vector<16x128xf32>
    %82 = arith.addf %81, %80 : vector<16x128xf32>
    %83 = arith.divf %81, %82 : vector<16x128xf32>
    %84 = vector.extract_strided_slice %73 {offsets = [0, 128], sizes = [16, 128], strides = [1, 1]} : vector<16x384xf32> to vector<16x128xf32>
    %85 = vector.extract_strided_slice %75 {offsets = [0, 128], sizes = [16, 128], strides = [1, 1]} : vector<16x384xf32> to vector<16x128xf32>
    %86 = arith.addf %84, %85 : vector<16x128xf32>
    %87 = arith.negf %86 : vector<16x128xf32>
    %88 = math.exp %87 : vector<16x128xf32>
    %cst_34 = arith.constant 1.000000e+00 : f32
    %89 = vector.broadcast %cst_34 : f32 to vector<16x128xf32>
    %90 = arith.addf %89, %88 : vector<16x128xf32>
    %91 = arith.divf %89, %90 : vector<16x128xf32>
    %92 = vector.extract_strided_slice %73 {offsets = [0, 256], sizes = [16, 128], strides = [1, 1]} : vector<16x384xf32> to vector<16x128xf32>
    %93 = vector.extract_strided_slice %75 {offsets = [0, 256], sizes = [16, 128], strides = [1, 1]} : vector<16x384xf32> to vector<16x128xf32>
    %94 = vector.broadcast %7 : vector<1x128xf32> to vector<16x128xf32>
    %95 = arith.addf %93, %94 : vector<16x128xf32>
    %96 = arith.mulf %83, %95 : vector<16x128xf32>
    %97 = arith.addf %92, %96 : vector<16x128xf32>
    %98 = math.tanh %97 : vector<16x128xf32>
    %cst_35 = arith.constant 1.000000e+00 : f32
    %99 = vector.broadcast %cst_35 : f32 to vector<16x128xf32>
    %100 = arith.subf %99, %91 : vector<16x128xf32>
    %101 = arith.mulf %100, %98 : vector<16x128xf32>
    %102 = arith.mulf %91, %71 : vector<16x128xf32>
    %103 = arith.addf %101, %102 : vector<16x128xf32>
    %c32_36 = arith.constant 32 : index
    %c0_37 = arith.constant 0 : index
    %104 = vector.load %arg13[%c32_36, %c0_37] : memref<128x128xf32, #tpu.memory_space<vmem>>, vector<16x128xf32>
    tpu.vector_store %arg13[%c32_36, %c0_37], %103 {strides = array<i32>} : memref<128x128xf32, #tpu.memory_space<vmem>>, vector<16x128xf32>,
    %c48 = arith.constant 48 : index
    %c0_38 = arith.constant 0 : index
    %105 = vector.load %arg12[%c48, %c0_38] : memref<128x384xf32, #tpu.memory_space<vmem>>, vector<16x384xf32>
    %c0_39 = arith.constant 0 : index
    %c0_40 = arith.constant 0 : index
    %106 = vector.load %arg2[%c0_39, %c0_40] : memref<128x384xf32, #tpu.memory_space<vmem>>, vector<128x384xf32>
    %cst_41 = arith.constant dense<0.000000e+00> : vector<16x384xf32>
    %107 = tpu.matmul %103, %106, %cst_41 {dimension_numbers = #tpu.dot_dimension_numbers<[1], [0], [0], [1], [0, 0, 1, 1], [], []>} : vector<16x128xf32>, vector<128x384xf32>, vector<16x384xf32> -> vector<16x384xf32>
    %108 = vector.extract_strided_slice %105 {offsets = [0, 0], sizes = [16, 128], strides = [1, 1]} : vector<16x384xf32> to vector<16x128xf32>
    %109 = vector.extract_strided_slice %107 {offsets = [0, 0], sizes = [16, 128], strides = [1, 1]} : vector<16x384xf32> to vector<16x128xf32>
    %110 = arith.addf %108, %109 : vector<16x128xf32>
    %111 = arith.negf %110 : vector<16x128xf32>
    %112 = math.exp %111 : vector<16x128xf32>
    %cst_42 = arith.constant 1.000000e+00 : f32
    %113 = vector.broadcast %cst_42 : f32 to vector<16x128xf32>
    %114 = arith.addf %113, %112 : vector<16x128xf32>
    %115 = arith.divf %113, %114 : vector<16x128xf32>
    %116 = vector.extract_strided_slice %105 {offsets = [0, 128], sizes = [16, 128], strides = [1, 1]} : vector<16x384xf32> to vector<16x128xf32>
    %117 = vector.extract_strided_slice %107 {offsets = [0, 128], sizes = [16, 128], strides = [1, 1]} : vector<16x384xf32> to vector<16x128xf32>
    %118 = arith.addf %116, %117 : vector<16x128xf32>
    %119 = arith.negf %118 : vector<16x128xf32>
    %120 = math.exp %119 : vector<16x128xf32>
    %cst_43 = arith.constant 1.000000e+00 : f32
    %121 = vector.broadcast %cst_43 : f32 to vector<16x128xf32>
    %122 = arith.addf %121, %120 : vector<16x128xf32>
    %123 = arith.divf %121, %122 : vector<16x128xf32>
    %124 = vector.extract_strided_slice %105 {offsets = [0, 256], sizes = [16, 128], strides = [1, 1]} : vector<16x384xf32> to vector<16x128xf32>
    %125 = vector.extract_strided_slice %107 {offsets = [0, 256], sizes = [16, 128], strides = [1, 1]} : vector<16x384xf32> to vector<16x128xf32>
    %126 = vector.broadcast %7 : vector<1x128xf32> to vector<16x128xf32>
    %127 = arith.addf %125, %126 : vector<16x128xf32>
    %128 = arith.mulf %115, %127 : vector<16x128xf32>
    %129 = arith.addf %124, %128 : vector<16x128xf32>
    %130 = math.tanh %129 : vector<16x128xf32>
    %cst_44 = arith.constant 1.000000e+00 : f32
    %131 = vector.broadcast %cst_44 : f32 to vector<16x128xf32>
    %132 = arith.subf %131, %123 : vector<16x128xf32>
    %133 = arith.mulf %132, %130 : vector<16x128xf32>
    %134 = arith.mulf %123, %103 : vector<16x128xf32>
    %135 = arith.addf %133, %134 : vector<16x128xf32>
    %c48_45 = arith.constant 48 : index
    %c0_46 = arith.constant 0 : index
    %136 = vector.load %arg13[%c48_45, %c0_46] : memref<128x128xf32, #tpu.memory_space<vmem>>, vector<16x128xf32>
    tpu.vector_store %arg13[%c48_45, %c0_46], %135 {strides = array<i32>} : memref<128x128xf32, #tpu.memory_space<vmem>>, vector<16x128xf32>,
    %c64 = arith.constant 64 : index
    %c0_47 = arith.constant 0 : index
    %137 = vector.load %arg12[%c64, %c0_47] : memref<128x384xf32, #tpu.memory_space<vmem>>, vector<16x384xf32>
    %c0_48 = arith.constant 0 : index
    %c0_49 = arith.constant 0 : index
    %138 = vector.load %arg2[%c0_48, %c0_49] : memref<128x384xf32, #tpu.memory_space<vmem>>, vector<128x384xf32>
    %cst_50 = arith.constant dense<0.000000e+00> : vector<16x384xf32>
    %139 = tpu.matmul %135, %138, %cst_50 {dimension_numbers = #tpu.dot_dimension_numbers<[1], [0], [0], [1], [0, 0, 1, 1], [], []>} : vector<16x128xf32>, vector<128x384xf32>, vector<16x384xf32> -> vector<16x384xf32>
    %140 = vector.extract_strided_slice %137 {offsets = [0, 0], sizes = [16, 128], strides = [1, 1]} : vector<16x384xf32> to vector<16x128xf32>
    %141 = vector.extract_strided_slice %139 {offsets = [0, 0], sizes = [16, 128], strides = [1, 1]} : vector<16x384xf32> to vector<16x128xf32>
    %142 = arith.addf %140, %141 : vector<16x128xf32>
    %143 = arith.negf %142 : vector<16x128xf32>
    %144 = math.exp %143 : vector<16x128xf32>
    %cst_51 = arith.constant 1.000000e+00 : f32
    %145 = vector.broadcast %cst_51 : f32 to vector<16x128xf32>
    %146 = arith.addf %145, %144 : vector<16x128xf32>
    %147 = arith.divf %145, %146 : vector<16x128xf32>
    %148 = vector.extract_strided_slice %137 {offsets = [0, 128], sizes = [16, 128], strides = [1, 1]} : vector<16x384xf32> to vector<16x128xf32>
    %149 = vector.extract_strided_slice %139 {offsets = [0, 128], sizes = [16, 128], strides = [1, 1]} : vector<16x384xf32> to vector<16x128xf32>
    %150 = arith.addf %148, %149 : vector<16x128xf32>
    %151 = arith.negf %150 : vector<16x128xf32>
    %152 = math.exp %151 : vector<16x128xf32>
    %cst_52 = arith.constant 1.000000e+00 : f32
    %153 = vector.broadcast %cst_52 : f32 to vector<16x128xf32>
    %154 = arith.addf %153, %152 : vector<16x128xf32>
    %155 = arith.divf %153, %154 : vector<16x128xf32>
    %156 = vector.extract_strided_slice %137 {offsets = [0, 256], sizes = [16, 128], strides = [1, 1]} : vector<16x384xf32> to vector<16x128xf32>
    %157 = vector.extract_strided_slice %139 {offsets = [0, 256], sizes = [16, 128], strides = [1, 1]} : vector<16x384xf32> to vector<16x128xf32>
    %158 = vector.broadcast %7 : vector<1x128xf32> to vector<16x128xf32>
    %159 = arith.addf %157, %158 : vector<16x128xf32>
    %160 = arith.mulf %147, %159 : vector<16x128xf32>
    %161 = arith.addf %156, %160 : vector<16x128xf32>
    %162 = math.tanh %161 : vector<16x128xf32>
    %cst_53 = arith.constant 1.000000e+00 : f32
    %163 = vector.broadcast %cst_53 : f32 to vector<16x128xf32>
    %164 = arith.subf %163, %155 : vector<16x128xf32>
    %165 = arith.mulf %164, %162 : vector<16x128xf32>
    %166 = arith.mulf %155, %135 : vector<16x128xf32>
    %167 = arith.addf %165, %166 : vector<16x128xf32>
    %c64_54 = arith.constant 64 : index
    %c0_55 = arith.constant 0 : index
    %168 = vector.load %arg13[%c64_54, %c0_55] : memref<128x128xf32, #tpu.memory_space<vmem>>, vector<16x128xf32>
    tpu.vector_store %arg13[%c64_54, %c0_55], %167 {strides = array<i32>} : memref<128x128xf32, #tpu.memory_space<vmem>>, vector<16x128xf32>,
    %c80 = arith.constant 80 : index
    %c0_56 = arith.constant 0 : index
    %169 = vector.load %arg12[%c80, %c0_56] : memref<128x384xf32, #tpu.memory_space<vmem>>, vector<16x384xf32>
    %c0_57 = arith.constant 0 : index
    %c0_58 = arith.constant 0 : index
    %170 = vector.load %arg2[%c0_57, %c0_58] : memref<128x384xf32, #tpu.memory_space<vmem>>, vector<128x384xf32>
    %cst_59 = arith.constant dense<0.000000e+00> : vector<16x384xf32>
    %171 = tpu.matmul %167, %170, %cst_59 {dimension_numbers = #tpu.dot_dimension_numbers<[1], [0], [0], [1], [0, 0, 1, 1], [], []>} : vector<16x128xf32>, vector<128x384xf32>, vector<16x384xf32> -> vector<16x384xf32>
    %172 = vector.extract_strided_slice %169 {offsets = [0, 0], sizes = [16, 128], strides = [1, 1]} : vector<16x384xf32> to vector<16x128xf32>
    %173 = vector.extract_strided_slice %171 {offsets = [0, 0], sizes = [16, 128], strides = [1, 1]} : vector<16x384xf32> to vector<16x128xf32>
    %174 = arith.addf %172, %173 : vector<16x128xf32>
    %175 = arith.negf %174 : vector<16x128xf32>
    %176 = math.exp %175 : vector<16x128xf32>
    %cst_60 = arith.constant 1.000000e+00 : f32
    %177 = vector.broadcast %cst_60 : f32 to vector<16x128xf32>
    %178 = arith.addf %177, %176 : vector<16x128xf32>
    %179 = arith.divf %177, %178 : vector<16x128xf32>
    %180 = vector.extract_strided_slice %169 {offsets = [0, 128], sizes = [16, 128], strides = [1, 1]} : vector<16x384xf32> to vector<16x128xf32>
    %181 = vector.extract_strided_slice %171 {offsets = [0, 128], sizes = [16, 128], strides = [1, 1]} : vector<16x384xf32> to vector<16x128xf32>
    %182 = arith.addf %180, %181 : vector<16x128xf32>
    %183 = arith.negf %182 : vector<16x128xf32>
    %184 = math.exp %183 : vector<16x128xf32>
    %cst_61 = arith.constant 1.000000e+00 : f32
    %185 = vector.broadcast %cst_61 : f32 to vector<16x128xf32>
    %186 = arith.addf %185, %184 : vector<16x128xf32>
    %187 = arith.divf %185, %186 : vector<16x128xf32>
    %188 = vector.extract_strided_slice %169 {offsets = [0, 256], sizes = [16, 128], strides = [1, 1]} : vector<16x384xf32> to vector<16x128xf32>
    %189 = vector.extract_strided_slice %171 {offsets = [0, 256], sizes = [16, 128], strides = [1, 1]} : vector<16x384xf32> to vector<16x128xf32>
    %190 = vector.broadcast %7 : vector<1x128xf32> to vector<16x128xf32>
    %191 = arith.addf %189, %190 : vector<16x128xf32>
    %192 = arith.mulf %179, %191 : vector<16x128xf32>
    %193 = arith.addf %188, %192 : vector<16x128xf32>
    %194 = math.tanh %193 : vector<16x128xf32>
    %cst_62 = arith.constant 1.000000e+00 : f32
    %195 = vector.broadcast %cst_62 : f32 to vector<16x128xf32>
    %196 = arith.subf %195, %187 : vector<16x128xf32>
    %197 = arith.mulf %196, %194 : vector<16x128xf32>
    %198 = arith.mulf %187, %167 : vector<16x128xf32>
    %199 = arith.addf %197, %198 : vector<16x128xf32>
    %c80_63 = arith.constant 80 : index
    %c0_64 = arith.constant 0 : index
    %200 = vector.load %arg13[%c80_63, %c0_64] : memref<128x128xf32, #tpu.memory_space<vmem>>, vector<16x128xf32>
    tpu.vector_store %arg13[%c80_63, %c0_64], %199 {strides = array<i32>} : memref<128x128xf32, #tpu.memory_space<vmem>>, vector<16x128xf32>,
    %c96 = arith.constant 96 : index
    %c0_65 = arith.constant 0 : index
    %201 = vector.load %arg12[%c96, %c0_65] : memref<128x384xf32, #tpu.memory_space<vmem>>, vector<16x384xf32>
    %c0_66 = arith.constant 0 : index
    %c0_67 = arith.constant 0 : index
    %202 = vector.load %arg2[%c0_66, %c0_67] : memref<128x384xf32, #tpu.memory_space<vmem>>, vector<128x384xf32>
    %cst_68 = arith.constant dense<0.000000e+00> : vector<16x384xf32>
    %203 = tpu.matmul %199, %202, %cst_68 {dimension_numbers = #tpu.dot_dimension_numbers<[1], [0], [0], [1], [0, 0, 1, 1], [], []>} : vector<16x128xf32>, vector<128x384xf32>, vector<16x384xf32> -> vector<16x384xf32>
    %204 = vector.extract_strided_slice %201 {offsets = [0, 0], sizes = [16, 128], strides = [1, 1]} : vector<16x384xf32> to vector<16x128xf32>
    %205 = vector.extract_strided_slice %203 {offsets = [0, 0], sizes = [16, 128], strides = [1, 1]} : vector<16x384xf32> to vector<16x128xf32>
    %206 = arith.addf %204, %205 : vector<16x128xf32>
    %207 = arith.negf %206 : vector<16x128xf32>
    %208 = math.exp %207 : vector<16x128xf32>
    %cst_69 = arith.constant 1.000000e+00 : f32
    %209 = vector.broadcast %cst_69 : f32 to vector<16x128xf32>
    %210 = arith.addf %209, %208 : vector<16x128xf32>
    %211 = arith.divf %209, %210 : vector<16x128xf32>
    %212 = vector.extract_strided_slice %201 {offsets = [0, 128], sizes = [16, 128], strides = [1, 1]} : vector<16x384xf32> to vector<16x128xf32>
    %213 = vector.extract_strided_slice %203 {offsets = [0, 128], sizes = [16, 128], strides = [1, 1]} : vector<16x384xf32> to vector<16x128xf32>
    %214 = arith.addf %212, %213 : vector<16x128xf32>
    %215 = arith.negf %214 : vector<16x128xf32>
    %216 = math.exp %215 : vector<16x128xf32>
    %cst_70 = arith.constant 1.000000e+00 : f32
    %217 = vector.broadcast %cst_70 : f32 to vector<16x128xf32>
    %218 = arith.addf %217, %216 : vector<16x128xf32>
    %219 = arith.divf %217, %218 : vector<16x128xf32>
    %220 = vector.extract_strided_slice %201 {offsets = [0, 256], sizes = [16, 128], strides = [1, 1]} : vector<16x384xf32> to vector<16x128xf32>
    %221 = vector.extract_strided_slice %203 {offsets = [0, 256], sizes = [16, 128], strides = [1, 1]} : vector<16x384xf32> to vector<16x128xf32>
    %222 = vector.broadcast %7 : vector<1x128xf32> to vector<16x128xf32>
    %223 = arith.addf %221, %222 : vector<16x128xf32>
    %224 = arith.mulf %211, %223 : vector<16x128xf32>
    %225 = arith.addf %220, %224 : vector<16x128xf32>
    %226 = math.tanh %225 : vector<16x128xf32>
    %cst_71 = arith.constant 1.000000e+00 : f32
    %227 = vector.broadcast %cst_71 : f32 to vector<16x128xf32>
    %228 = arith.subf %227, %219 : vector<16x128xf32>
    %229 = arith.mulf %228, %226 : vector<16x128xf32>
    %230 = arith.mulf %219, %199 : vector<16x128xf32>
    %231 = arith.addf %229, %230 : vector<16x128xf32>
    %c96_72 = arith.constant 96 : index
    %c0_73 = arith.constant 0 : index
    %232 = vector.load %arg13[%c96_72, %c0_73] : memref<128x128xf32, #tpu.memory_space<vmem>>, vector<16x128xf32>
    tpu.vector_store %arg13[%c96_72, %c0_73], %231 {strides = array<i32>} : memref<128x128xf32, #tpu.memory_space<vmem>>, vector<16x128xf32>,
    %c112 = arith.constant 112 : index
    %c0_74 = arith.constant 0 : index
    %233 = vector.load %arg12[%c112, %c0_74] : memref<128x384xf32, #tpu.memory_space<vmem>>, vector<16x384xf32>
    %c0_75 = arith.constant 0 : index
    %c0_76 = arith.constant 0 : index
    %234 = vector.load %arg2[%c0_75, %c0_76] : memref<128x384xf32, #tpu.memory_space<vmem>>, vector<128x384xf32>
    %cst_77 = arith.constant dense<0.000000e+00> : vector<16x384xf32>
    %235 = tpu.matmul %231, %234, %cst_77 {dimension_numbers = #tpu.dot_dimension_numbers<[1], [0], [0], [1], [0, 0, 1, 1], [], []>} : vector<16x128xf32>, vector<128x384xf32>, vector<16x384xf32> -> vector<16x384xf32>
    %236 = vector.extract_strided_slice %233 {offsets = [0, 0], sizes = [16, 128], strides = [1, 1]} : vector<16x384xf32> to vector<16x128xf32>
    %237 = vector.extract_strided_slice %235 {offsets = [0, 0], sizes = [16, 128], strides = [1, 1]} : vector<16x384xf32> to vector<16x128xf32>
    %238 = arith.addf %236, %237 : vector<16x128xf32>
    %239 = arith.negf %238 : vector<16x128xf32>
    %240 = math.exp %239 : vector<16x128xf32>
    %cst_78 = arith.constant 1.000000e+00 : f32
    %241 = vector.broadcast %cst_78 : f32 to vector<16x128xf32>
    %242 = arith.addf %241, %240 : vector<16x128xf32>
    %243 = arith.divf %241, %242 : vector<16x128xf32>
    %244 = vector.extract_strided_slice %233 {offsets = [0, 128], sizes = [16, 128], strides = [1, 1]} : vector<16x384xf32> to vector<16x128xf32>
    %245 = vector.extract_strided_slice %235 {offsets = [0, 128], sizes = [16, 128], strides = [1, 1]} : vector<16x384xf32> to vector<16x128xf32>
    %246 = arith.addf %244, %245 : vector<16x128xf32>
    %247 = arith.negf %246 : vector<16x128xf32>
    %248 = math.exp %247 : vector<16x128xf32>
    %cst_79 = arith.constant 1.000000e+00 : f32
    %249 = vector.broadcast %cst_79 : f32 to vector<16x128xf32>
    %250 = arith.addf %249, %248 : vector<16x128xf32>
    %251 = arith.divf %249, %250 : vector<16x128xf32>
    %252 = vector.extract_strided_slice %233 {offsets = [0, 256], sizes = [16, 128], strides = [1, 1]} : vector<16x384xf32> to vector<16x128xf32>
    %253 = vector.extract_strided_slice %235 {offsets = [0, 256], sizes = [16, 128], strides = [1, 1]} : vector<16x384xf32> to vector<16x128xf32>
    %254 = vector.broadcast %7 : vector<1x128xf32> to vector<16x128xf32>
    %255 = arith.addf %253, %254 : vector<16x128xf32>
    %256 = arith.mulf %243, %255 : vector<16x128xf32>
    %257 = arith.addf %252, %256 : vector<16x128xf32>
    %258 = math.tanh %257 : vector<16x128xf32>
    %cst_80 = arith.constant 1.000000e+00 : f32
    %259 = vector.broadcast %cst_80 : f32 to vector<16x128xf32>
    %260 = arith.subf %259, %251 : vector<16x128xf32>
    %261 = arith.mulf %260, %258 : vector<16x128xf32>
    %262 = arith.mulf %251, %231 : vector<16x128xf32>
    %263 = arith.addf %261, %262 : vector<16x128xf32>
    %c112_81 = arith.constant 112 : index
    %c0_82 = arith.constant 0 : index
    %264 = vector.load %arg13[%c112_81, %c0_82] : memref<128x128xf32, #tpu.memory_space<vmem>>, vector<16x128xf32>
    tpu.vector_store %arg13[%c112_81, %c0_82], %263 {strides = array<i32>} : memref<128x128xf32, #tpu.memory_space<vmem>>, vector<16x128xf32>,
    %c0_83 = arith.constant 0 : index
    %c0_84 = arith.constant 0 : index
    %265 = vector.load %arg13[%c0_83, %c0_84] : memref<128x128xf32, #tpu.memory_space<vmem>>, vector<128x128xf32>
    %c0_85 = arith.constant 0 : index
    %c0_86 = arith.constant 0 : index
    %266 = vector.load %arg5[%c0_85, %c0_86] : memref<128x384xf32, #tpu.memory_space<vmem>>, vector<128x384xf32>
    %cst_87 = arith.constant dense<0.000000e+00> : vector<128x384xf32>
    %267 = tpu.matmul %265, %266, %cst_87 {dimension_numbers = #tpu.dot_dimension_numbers<[1], [0], [0], [1], [0, 0, 1, 1], [], []>} : vector<128x128xf32>, vector<128x384xf32>, vector<128x384xf32> -> vector<128x384xf32>
    %c0_88 = arith.constant 0 : index
    %c0_89 = arith.constant 0 : index
    %268 = vector.load %arg7[%c0_88, %c0_89] : memref<1x384xf32, #tpu.memory_space<vmem>>, vector<1x384xf32>
    %269 = vector.broadcast %268 : vector<1x384xf32> to vector<128x384xf32>
    %270 = arith.addf %267, %269 : vector<128x384xf32>
    %c0_90 = arith.constant 0 : index
    %c0_91 = arith.constant 0 : index
    %271 = vector.load %arg12[%c0_90, %c0_91] : memref<128x384xf32, #tpu.memory_space<vmem>>, vector<128x384xf32>
    tpu.vector_store %arg12[%c0_90, %c0_91], %270 {strides = array<i32>} : memref<128x384xf32, #tpu.memory_space<vmem>>, vector<128x384xf32>,
    %c0_92 = arith.constant 0 : index
    %c0_93 = arith.constant 0 : index
    %272 = vector.load %arg8[%c0_92, %c0_93] : memref<1x128xf32, #tpu.memory_space<vmem>>, vector<1x128xf32>
    %cst_94 = arith.constant 0.000000e+00 : f32
    %273 = vector.broadcast %cst_94 : f32 to vector<16x128xf32>
    %c0_95 = arith.constant 0 : index
    %c0_96 = arith.constant 0 : index
    %274 = vector.load %arg12[%c0_95, %c0_96] : memref<128x384xf32, #tpu.memory_space<vmem>>, vector<16x384xf32>
    %c0_97 = arith.constant 0 : index
    %c0_98 = arith.constant 0 : index
    %275 = vector.load %arg6[%c0_97, %c0_98] : memref<128x384xf32, #tpu.memory_space<vmem>>, vector<128x384xf32>
    %cst_99 = arith.constant dense<0.000000e+00> : vector<16x384xf32>
    %276 = tpu.matmul %273, %275, %cst_99 {dimension_numbers = #tpu.dot_dimension_numbers<[1], [0], [0], [1], [0, 0, 1, 1], [], []>} : vector<16x128xf32>, vector<128x384xf32>, vector<16x384xf32> -> vector<16x384xf32>
    %277 = vector.extract_strided_slice %274 {offsets = [0, 0], sizes = [16, 128], strides = [1, 1]} : vector<16x384xf32> to vector<16x128xf32>
    %278 = vector.extract_strided_slice %276 {offsets = [0, 0], sizes = [16, 128], strides = [1, 1]} : vector<16x384xf32> to vector<16x128xf32>
    %279 = arith.addf %277, %278 : vector<16x128xf32>
    %280 = arith.negf %279 : vector<16x128xf32>
    %281 = math.exp %280 : vector<16x128xf32>
    %cst_100 = arith.constant 1.000000e+00 : f32
    %282 = vector.broadcast %cst_100 : f32 to vector<16x128xf32>
    %283 = arith.addf %282, %281 : vector<16x128xf32>
    %284 = arith.divf %282, %283 : vector<16x128xf32>
    %285 = vector.extract_strided_slice %274 {offsets = [0, 128], sizes = [16, 128], strides = [1, 1]} : vector<16x384xf32> to vector<16x128xf32>
    %286 = vector.extract_strided_slice %276 {offsets = [0, 128], sizes = [16, 128], strides = [1, 1]} : vector<16x384xf32> to vector<16x128xf32>
    %287 = arith.addf %285, %286 : vector<16x128xf32>
    %288 = arith.negf %287 : vector<16x128xf32>
    %289 = math.exp %288 : vector<16x128xf32>
    %cst_101 = arith.constant 1.000000e+00 : f32
    %290 = vector.broadcast %cst_101 : f32 to vector<16x128xf32>
    %291 = arith.addf %290, %289 : vector<16x128xf32>
    %292 = arith.divf %290, %291 : vector<16x128xf32>
    %293 = vector.extract_strided_slice %274 {offsets = [0, 256], sizes = [16, 128], strides = [1, 1]} : vector<16x384xf32> to vector<16x128xf32>
    %294 = vector.extract_strided_slice %276 {offsets = [0, 256], sizes = [16, 128], strides = [1, 1]} : vector<16x384xf32> to vector<16x128xf32>
    %295 = vector.broadcast %272 : vector<1x128xf32> to vector<16x128xf32>
    %296 = arith.addf %294, %295 : vector<16x128xf32>
    %297 = arith.mulf %284, %296 : vector<16x128xf32>
    %298 = arith.addf %293, %297 : vector<16x128xf32>
    %299 = math.tanh %298 : vector<16x128xf32>
    %cst_102 = arith.constant 1.000000e+00 : f32
    %300 = vector.broadcast %cst_102 : f32 to vector<16x128xf32>
    %301 = arith.subf %300, %292 : vector<16x128xf32>
    %302 = arith.mulf %301, %299 : vector<16x128xf32>
    %303 = arith.mulf %292, %273 : vector<16x128xf32>
    %304 = arith.addf %302, %303 : vector<16x128xf32>
    %305 = vector.extract_strided_slice %304 {offsets = [15, 0], sizes = [1, 128], strides = [1, 1]} : vector<16x128xf32> to vector<1x128xf32>
    %c16_103 = arith.constant 16 : index
    %c0_104 = arith.constant 0 : index
    %306 = vector.load %arg12[%c16_103, %c0_104] : memref<128x384xf32, #tpu.memory_space<vmem>>, vector<16x384xf32>
    %c0_105 = arith.constant 0 : index
    %c0_106 = arith.constant 0 : index
    %307 = vector.load %arg6[%c0_105, %c0_106] : memref<128x384xf32, #tpu.memory_space<vmem>>, vector<128x384xf32>
    %cst_107 = arith.constant dense<0.000000e+00> : vector<16x384xf32>
    %308 = tpu.matmul %304, %307, %cst_107 {dimension_numbers = #tpu.dot_dimension_numbers<[1], [0], [0], [1], [0, 0, 1, 1], [], []>} : vector<16x128xf32>, vector<128x384xf32>, vector<16x384xf32> -> vector<16x384xf32>
    %309 = vector.extract_strided_slice %306 {offsets = [0, 0], sizes = [16, 128], strides = [1, 1]} : vector<16x384xf32> to vector<16x128xf32>
    %310 = vector.extract_strided_slice %308 {offsets = [0, 0], sizes = [16, 128], strides = [1, 1]} : vector<16x384xf32> to vector<16x128xf32>
    %311 = arith.addf %309, %310 : vector<16x128xf32>
    %312 = arith.negf %311 : vector<16x128xf32>
    %313 = math.exp %312 : vector<16x128xf32>
    %cst_108 = arith.constant 1.000000e+00 : f32
    %314 = vector.broadcast %cst_108 : f32 to vector<16x128xf32>
    %315 = arith.addf %314, %313 : vector<16x128xf32>
    %316 = arith.divf %314, %315 : vector<16x128xf32>
    %317 = vector.extract_strided_slice %306 {offsets = [0, 128], sizes = [16, 128], strides = [1, 1]} : vector<16x384xf32> to vector<16x128xf32>
    %318 = vector.extract_strided_slice %308 {offsets = [0, 128], sizes = [16, 128], strides = [1, 1]} : vector<16x384xf32> to vector<16x128xf32>
    %319 = arith.addf %317, %318 : vector<16x128xf32>
    %320 = arith.negf %319 : vector<16x128xf32>
    %321 = math.exp %320 : vector<16x128xf32>
    %cst_109 = arith.constant 1.000000e+00 : f32
    %322 = vector.broadcast %cst_109 : f32 to vector<16x128xf32>
    %323 = arith.addf %322, %321 : vector<16x128xf32>
    %324 = arith.divf %322, %323 : vector<16x128xf32>
    %325 = vector.extract_strided_slice %306 {offsets = [0, 256], sizes = [16, 128], strides = [1, 1]} : vector<16x384xf32> to vector<16x128xf32>
    %326 = vector.extract_strided_slice %308 {offsets = [0, 256], sizes = [16, 128], strides = [1, 1]} : vector<16x384xf32> to vector<16x128xf32>
    %327 = vector.broadcast %272 : vector<1x128xf32> to vector<16x128xf32>
    %328 = arith.addf %326, %327 : vector<16x128xf32>
    %329 = arith.mulf %316, %328 : vector<16x128xf32>
    %330 = arith.addf %325, %329 : vector<16x128xf32>
    %331 = math.tanh %330 : vector<16x128xf32>
    %cst_110 = arith.constant 1.000000e+00 : f32
    %332 = vector.broadcast %cst_110 : f32 to vector<16x128xf32>
    %333 = arith.subf %332, %324 : vector<16x128xf32>
    %334 = arith.mulf %333, %331 : vector<16x128xf32>
    %335 = arith.mulf %324, %304 : vector<16x128xf32>
    %336 = arith.addf %334, %335 : vector<16x128xf32>
    %337 = vector.extract_strided_slice %336 {offsets = [15, 0], sizes = [1, 128], strides = [1, 1]} : vector<16x128xf32> to vector<1x128xf32>
    %c32_111 = arith.constant 32 : index
    %c0_112 = arith.constant 0 : index
    %338 = vector.load %arg12[%c32_111, %c0_112] : memref<128x384xf32, #tpu.memory_space<vmem>>, vector<16x384xf32>
    %c0_113 = arith.constant 0 : index
    %c0_114 = arith.constant 0 : index
    %339 = vector.load %arg6[%c0_113, %c0_114] : memref<128x384xf32, #tpu.memory_space<vmem>>, vector<128x384xf32>
    %cst_115 = arith.constant dense<0.000000e+00> : vector<16x384xf32>
    %340 = tpu.matmul %336, %339, %cst_115 {dimension_numbers = #tpu.dot_dimension_numbers<[1], [0], [0], [1], [0, 0, 1, 1], [], []>} : vector<16x128xf32>, vector<128x384xf32>, vector<16x384xf32> -> vector<16x384xf32>
    %341 = vector.extract_strided_slice %338 {offsets = [0, 0], sizes = [16, 128], strides = [1, 1]} : vector<16x384xf32> to vector<16x128xf32>
    %342 = vector.extract_strided_slice %340 {offsets = [0, 0], sizes = [16, 128], strides = [1, 1]} : vector<16x384xf32> to vector<16x128xf32>
    %343 = arith.addf %341, %342 : vector<16x128xf32>
    %344 = arith.negf %343 : vector<16x128xf32>
    %345 = math.exp %344 : vector<16x128xf32>
    %cst_116 = arith.constant 1.000000e+00 : f32
    %346 = vector.broadcast %cst_116 : f32 to vector<16x128xf32>
    %347 = arith.addf %346, %345 : vector<16x128xf32>
    %348 = arith.divf %346, %347 : vector<16x128xf32>
    %349 = vector.extract_strided_slice %338 {offsets = [0, 128], sizes = [16, 128], strides = [1, 1]} : vector<16x384xf32> to vector<16x128xf32>
    %350 = vector.extract_strided_slice %340 {offsets = [0, 128], sizes = [16, 128], strides = [1, 1]} : vector<16x384xf32> to vector<16x128xf32>
    %351 = arith.addf %349, %350 : vector<16x128xf32>
    %352 = arith.negf %351 : vector<16x128xf32>
    %353 = math.exp %352 : vector<16x128xf32>
    %cst_117 = arith.constant 1.000000e+00 : f32
    %354 = vector.broadcast %cst_117 : f32 to vector<16x128xf32>
    %355 = arith.addf %354, %353 : vector<16x128xf32>
    %356 = arith.divf %354, %355 : vector<16x128xf32>
    %357 = vector.extract_strided_slice %338 {offsets = [0, 256], sizes = [16, 128], strides = [1, 1]} : vector<16x384xf32> to vector<16x128xf32>
    %358 = vector.extract_strided_slice %340 {offsets = [0, 256], sizes = [16, 128], strides = [1, 1]} : vector<16x384xf32> to vector<16x128xf32>
    %359 = vector.broadcast %272 : vector<1x128xf32> to vector<16x128xf32>
    %360 = arith.addf %358, %359 : vector<16x128xf32>
    %361 = arith.mulf %348, %360 : vector<16x128xf32>
    %362 = arith.addf %357, %361 : vector<16x128xf32>
    %363 = math.tanh %362 : vector<16x128xf32>
    %cst_118 = arith.constant 1.000000e+00 : f32
    %364 = vector.broadcast %cst_118 : f32 to vector<16x128xf32>
    %365 = arith.subf %364, %356 : vector<16x128xf32>
    %366 = arith.mulf %365, %363 : vector<16x128xf32>
    %367 = arith.mulf %356, %336 : vector<16x128xf32>
    %368 = arith.addf %366, %367 : vector<16x128xf32>
    %369 = vector.extract_strided_slice %368 {offsets = [15, 0], sizes = [1, 128], strides = [1, 1]} : vector<16x128xf32> to vector<1x128xf32>
    %c48_119 = arith.constant 48 : index
    %c0_120 = arith.constant 0 : index
    %370 = vector.load %arg12[%c48_119, %c0_120] : memref<128x384xf32, #tpu.memory_space<vmem>>, vector<16x384xf32>
    %c0_121 = arith.constant 0 : index
    %c0_122 = arith.constant 0 : index
    %371 = vector.load %arg6[%c0_121, %c0_122] : memref<128x384xf32, #tpu.memory_space<vmem>>, vector<128x384xf32>
    %cst_123 = arith.constant dense<0.000000e+00> : vector<16x384xf32>
    %372 = tpu.matmul %368, %371, %cst_123 {dimension_numbers = #tpu.dot_dimension_numbers<[1], [0], [0], [1], [0, 0, 1, 1], [], []>} : vector<16x128xf32>, vector<128x384xf32>, vector<16x384xf32> -> vector<16x384xf32>
    %373 = vector.extract_strided_slice %370 {offsets = [0, 0], sizes = [16, 128], strides = [1, 1]} : vector<16x384xf32> to vector<16x128xf32>
    %374 = vector.extract_strided_slice %372 {offsets = [0, 0], sizes = [16, 128], strides = [1, 1]} : vector<16x384xf32> to vector<16x128xf32>
    %375 = arith.addf %373, %374 : vector<16x128xf32>
    %376 = arith.negf %375 : vector<16x128xf32>
    %377 = math.exp %376 : vector<16x128xf32>
    %cst_124 = arith.constant 1.000000e+00 : f32
    %378 = vector.broadcast %cst_124 : f32 to vector<16x128xf32>
    %379 = arith.addf %378, %377 : vector<16x128xf32>
    %380 = arith.divf %378, %379 : vector<16x128xf32>
    %381 = vector.extract_strided_slice %370 {offsets = [0, 128], sizes = [16, 128], strides = [1, 1]} : vector<16x384xf32> to vector<16x128xf32>
    %382 = vector.extract_strided_slice %372 {offsets = [0, 128], sizes = [16, 128], strides = [1, 1]} : vector<16x384xf32> to vector<16x128xf32>
    %383 = arith.addf %381, %382 : vector<16x128xf32>
    %384 = arith.negf %383 : vector<16x128xf32>
    %385 = math.exp %384 : vector<16x128xf32>
    %cst_125 = arith.constant 1.000000e+00 : f32
    %386 = vector.broadcast %cst_125 : f32 to vector<16x128xf32>
    %387 = arith.addf %386, %385 : vector<16x128xf32>
    %388 = arith.divf %386, %387 : vector<16x128xf32>
    %389 = vector.extract_strided_slice %370 {offsets = [0, 256], sizes = [16, 128], strides = [1, 1]} : vector<16x384xf32> to vector<16x128xf32>
    %390 = vector.extract_strided_slice %372 {offsets = [0, 256], sizes = [16, 128], strides = [1, 1]} : vector<16x384xf32> to vector<16x128xf32>
    %391 = vector.broadcast %272 : vector<1x128xf32> to vector<16x128xf32>
    %392 = arith.addf %390, %391 : vector<16x128xf32>
    %393 = arith.mulf %380, %392 : vector<16x128xf32>
    %394 = arith.addf %389, %393 : vector<16x128xf32>
    %395 = math.tanh %394 : vector<16x128xf32>
    %cst_126 = arith.constant 1.000000e+00 : f32
    %396 = vector.broadcast %cst_126 : f32 to vector<16x128xf32>
    %397 = arith.subf %396, %388 : vector<16x128xf32>
    %398 = arith.mulf %397, %395 : vector<16x128xf32>
    %399 = arith.mulf %388, %368 : vector<16x128xf32>
    %400 = arith.addf %398, %399 : vector<16x128xf32>
    %401 = vector.extract_strided_slice %400 {offsets = [15, 0], sizes = [1, 128], strides = [1, 1]} : vector<16x128xf32> to vector<1x128xf32>
    %c64_127 = arith.constant 64 : index
    %c0_128 = arith.constant 0 : index
    %402 = vector.load %arg12[%c64_127, %c0_128] : memref<128x384xf32, #tpu.memory_space<vmem>>, vector<16x384xf32>
    %c0_129 = arith.constant 0 : index
    %c0_130 = arith.constant 0 : index
    %403 = vector.load %arg6[%c0_129, %c0_130] : memref<128x384xf32, #tpu.memory_space<vmem>>, vector<128x384xf32>
    %cst_131 = arith.constant dense<0.000000e+00> : vector<16x384xf32>
    %404 = tpu.matmul %400, %403, %cst_131 {dimension_numbers = #tpu.dot_dimension_numbers<[1], [0], [0], [1], [0, 0, 1, 1], [], []>} : vector<16x128xf32>, vector<128x384xf32>, vector<16x384xf32> -> vector<16x384xf32>
    %405 = vector.extract_strided_slice %402 {offsets = [0, 0], sizes = [16, 128], strides = [1, 1]} : vector<16x384xf32> to vector<16x128xf32>
    %406 = vector.extract_strided_slice %404 {offsets = [0, 0], sizes = [16, 128], strides = [1, 1]} : vector<16x384xf32> to vector<16x128xf32>
    %407 = arith.addf %405, %406 : vector<16x128xf32>
    %408 = arith.negf %407 : vector<16x128xf32>
    %409 = math.exp %408 : vector<16x128xf32>
    %cst_132 = arith.constant 1.000000e+00 : f32
    %410 = vector.broadcast %cst_132 : f32 to vector<16x128xf32>
    %411 = arith.addf %410, %409 : vector<16x128xf32>
    %412 = arith.divf %410, %411 : vector<16x128xf32>
    %413 = vector.extract_strided_slice %402 {offsets = [0, 128], sizes = [16, 128], strides = [1, 1]} : vector<16x384xf32> to vector<16x128xf32>
    %414 = vector.extract_strided_slice %404 {offsets = [0, 128], sizes = [16, 128], strides = [1, 1]} : vector<16x384xf32> to vector<16x128xf32>
    %415 = arith.addf %413, %414 : vector<16x128xf32>
    %416 = arith.negf %415 : vector<16x128xf32>
    %417 = math.exp %416 : vector<16x128xf32>
    %cst_133 = arith.constant 1.000000e+00 : f32
    %418 = vector.broadcast %cst_133 : f32 to vector<16x128xf32>
    %419 = arith.addf %418, %417 : vector<16x128xf32>
    %420 = arith.divf %418, %419 : vector<16x128xf32>
    %421 = vector.extract_strided_slice %402 {offsets = [0, 256], sizes = [16, 128], strides = [1, 1]} : vector<16x384xf32> to vector<16x128xf32>
    %422 = vector.extract_strided_slice %404 {offsets = [0, 256], sizes = [16, 128], strides = [1, 1]} : vector<16x384xf32> to vector<16x128xf32>
    %423 = vector.broadcast %272 : vector<1x128xf32> to vector<16x128xf32>
    %424 = arith.addf %422, %423 : vector<16x128xf32>
    %425 = arith.mulf %412, %424 : vector<16x128xf32>
    %426 = arith.addf %421, %425 : vector<16x128xf32>
    %427 = math.tanh %426 : vector<16x128xf32>
    %cst_134 = arith.constant 1.000000e+00 : f32
    %428 = vector.broadcast %cst_134 : f32 to vector<16x128xf32>
    %429 = arith.subf %428, %420 : vector<16x128xf32>
    %430 = arith.mulf %429, %427 : vector<16x128xf32>
    %431 = arith.mulf %420, %400 : vector<16x128xf32>
    %432 = arith.addf %430, %431 : vector<16x128xf32>
    %433 = vector.extract_strided_slice %432 {offsets = [15, 0], sizes = [1, 128], strides = [1, 1]} : vector<16x128xf32> to vector<1x128xf32>
    %c80_135 = arith.constant 80 : index
    %c0_136 = arith.constant 0 : index
    %434 = vector.load %arg12[%c80_135, %c0_136] : memref<128x384xf32, #tpu.memory_space<vmem>>, vector<16x384xf32>
    %c0_137 = arith.constant 0 : index
    %c0_138 = arith.constant 0 : index
    %435 = vector.load %arg6[%c0_137, %c0_138] : memref<128x384xf32, #tpu.memory_space<vmem>>, vector<128x384xf32>
    %cst_139 = arith.constant dense<0.000000e+00> : vector<16x384xf32>
    %436 = tpu.matmul %432, %435, %cst_139 {dimension_numbers = #tpu.dot_dimension_numbers<[1], [0], [0], [1], [0, 0, 1, 1], [], []>} : vector<16x128xf32>, vector<128x384xf32>, vector<16x384xf32> -> vector<16x384xf32>
    %437 = vector.extract_strided_slice %434 {offsets = [0, 0], sizes = [16, 128], strides = [1, 1]} : vector<16x384xf32> to vector<16x128xf32>
    %438 = vector.extract_strided_slice %436 {offsets = [0, 0], sizes = [16, 128], strides = [1, 1]} : vector<16x384xf32> to vector<16x128xf32>
    %439 = arith.addf %437, %438 : vector<16x128xf32>
    %440 = arith.negf %439 : vector<16x128xf32>
    %441 = math.exp %440 : vector<16x128xf32>
    %cst_140 = arith.constant 1.000000e+00 : f32
    %442 = vector.broadcast %cst_140 : f32 to vector<16x128xf32>
    %443 = arith.addf %442, %441 : vector<16x128xf32>
    %444 = arith.divf %442, %443 : vector<16x128xf32>
    %445 = vector.extract_strided_slice %434 {offsets = [0, 128], sizes = [16, 128], strides = [1, 1]} : vector<16x384xf32> to vector<16x128xf32>
    %446 = vector.extract_strided_slice %436 {offsets = [0, 128], sizes = [16, 128], strides = [1, 1]} : vector<16x384xf32> to vector<16x128xf32>
    %447 = arith.addf %445, %446 : vector<16x128xf32>
    %448 = arith.negf %447 : vector<16x128xf32>
    %449 = math.exp %448 : vector<16x128xf32>
    %cst_141 = arith.constant 1.000000e+00 : f32
    %450 = vector.broadcast %cst_141 : f32 to vector<16x128xf32>
    %451 = arith.addf %450, %449 : vector<16x128xf32>
    %452 = arith.divf %450, %451 : vector<16x128xf32>
    %453 = vector.extract_strided_slice %434 {offsets = [0, 256], sizes = [16, 128], strides = [1, 1]} : vector<16x384xf32> to vector<16x128xf32>
    %454 = vector.extract_strided_slice %436 {offsets = [0, 256], sizes = [16, 128], strides = [1, 1]} : vector<16x384xf32> to vector<16x128xf32>
    %455 = vector.broadcast %272 : vector<1x128xf32> to vector<16x128xf32>
    %456 = arith.addf %454, %455 : vector<16x128xf32>
    %457 = arith.mulf %444, %456 : vector<16x128xf32>
    %458 = arith.addf %453, %457 : vector<16x128xf32>
    %459 = math.tanh %458 : vector<16x128xf32>
    %cst_142 = arith.constant 1.000000e+00 : f32
    %460 = vector.broadcast %cst_142 : f32 to vector<16x128xf32>
    %461 = arith.subf %460, %452 : vector<16x128xf32>
    %462 = arith.mulf %461, %459 : vector<16x128xf32>
    %463 = arith.mulf %452, %432 : vector<16x128xf32>
    %464 = arith.addf %462, %463 : vector<16x128xf32>
    %465 = vector.extract_strided_slice %464 {offsets = [15, 0], sizes = [1, 128], strides = [1, 1]} : vector<16x128xf32> to vector<1x128xf32>
    %c96_143 = arith.constant 96 : index
    %c0_144 = arith.constant 0 : index
    %466 = vector.load %arg12[%c96_143, %c0_144] : memref<128x384xf32, #tpu.memory_space<vmem>>, vector<16x384xf32>
    %c0_145 = arith.constant 0 : index
    %c0_146 = arith.constant 0 : index
    %467 = vector.load %arg6[%c0_145, %c0_146] : memref<128x384xf32, #tpu.memory_space<vmem>>, vector<128x384xf32>
    %cst_147 = arith.constant dense<0.000000e+00> : vector<16x384xf32>
    %468 = tpu.matmul %464, %467, %cst_147 {dimension_numbers = #tpu.dot_dimension_numbers<[1], [0], [0], [1], [0, 0, 1, 1], [], []>} : vector<16x128xf32>, vector<128x384xf32>, vector<16x384xf32> -> vector<16x384xf32>
    %469 = vector.extract_strided_slice %466 {offsets = [0, 0], sizes = [16, 128], strides = [1, 1]} : vector<16x384xf32> to vector<16x128xf32>
    %470 = vector.extract_strided_slice %468 {offsets = [0, 0], sizes = [16, 128], strides = [1, 1]} : vector<16x384xf32> to vector<16x128xf32>
    %471 = arith.addf %469, %470 : vector<16x128xf32>
    %472 = arith.negf %471 : vector<16x128xf32>
    %473 = math.exp %472 : vector<16x128xf32>
    %cst_148 = arith.constant 1.000000e+00 : f32
    %474 = vector.broadcast %cst_148 : f32 to vector<16x128xf32>
    %475 = arith.addf %474, %473 : vector<16x128xf32>
    %476 = arith.divf %474, %475 : vector<16x128xf32>
    %477 = vector.extract_strided_slice %466 {offsets = [0, 128], sizes = [16, 128], strides = [1, 1]} : vector<16x384xf32> to vector<16x128xf32>
    %478 = vector.extract_strided_slice %468 {offsets = [0, 128], sizes = [16, 128], strides = [1, 1]} : vector<16x384xf32> to vector<16x128xf32>
    %479 = arith.addf %477, %478 : vector<16x128xf32>
    %480 = arith.negf %479 : vector<16x128xf32>
    %481 = math.exp %480 : vector<16x128xf32>
    %cst_149 = arith.constant 1.000000e+00 : f32
    %482 = vector.broadcast %cst_149 : f32 to vector<16x128xf32>
    %483 = arith.addf %482, %481 : vector<16x128xf32>
    %484 = arith.divf %482, %483 : vector<16x128xf32>
    %485 = vector.extract_strided_slice %466 {offsets = [0, 256], sizes = [16, 128], strides = [1, 1]} : vector<16x384xf32> to vector<16x128xf32>
    %486 = vector.extract_strided_slice %468 {offsets = [0, 256], sizes = [16, 128], strides = [1, 1]} : vector<16x384xf32> to vector<16x128xf32>
    %487 = vector.broadcast %272 : vector<1x128xf32> to vector<16x128xf32>
    %488 = arith.addf %486, %487 : vector<16x128xf32>
    %489 = arith.mulf %476, %488 : vector<16x128xf32>
    %490 = arith.addf %485, %489 : vector<16x128xf32>
    %491 = math.tanh %490 : vector<16x128xf32>
    %cst_150 = arith.constant 1.000000e+00 : f32
    %492 = vector.broadcast %cst_150 : f32 to vector<16x128xf32>
    %493 = arith.subf %492, %484 : vector<16x128xf32>
    %494 = arith.mulf %493, %491 : vector<16x128xf32>
    %495 = arith.mulf %484, %464 : vector<16x128xf32>
    %496 = arith.addf %494, %495 : vector<16x128xf32>
    %497 = vector.extract_strided_slice %496 {offsets = [15, 0], sizes = [1, 128], strides = [1, 1]} : vector<16x128xf32> to vector<1x128xf32>
    %c112_151 = arith.constant 112 : index
    %c0_152 = arith.constant 0 : index
    %498 = vector.load %arg12[%c112_151, %c0_152] : memref<128x384xf32, #tpu.memory_space<vmem>>, vector<16x384xf32>
    %c0_153 = arith.constant 0 : index
    %c0_154 = arith.constant 0 : index
    %499 = vector.load %arg6[%c0_153, %c0_154] : memref<128x384xf32, #tpu.memory_space<vmem>>, vector<128x384xf32>
    %cst_155 = arith.constant dense<0.000000e+00> : vector<16x384xf32>
    %500 = tpu.matmul %496, %499, %cst_155 {dimension_numbers = #tpu.dot_dimension_numbers<[1], [0], [0], [1], [0, 0, 1, 1], [], []>} : vector<16x128xf32>, vector<128x384xf32>, vector<16x384xf32> -> vector<16x384xf32>
    %501 = vector.extract_strided_slice %498 {offsets = [0, 0], sizes = [16, 128], strides = [1, 1]} : vector<16x384xf32> to vector<16x128xf32>
    %502 = vector.extract_strided_slice %500 {offsets = [0, 0], sizes = [16, 128], strides = [1, 1]} : vector<16x384xf32> to vector<16x128xf32>
    %503 = arith.addf %501, %502 : vector<16x128xf32>
    %504 = arith.negf %503 : vector<16x128xf32>
    %505 = math.exp %504 : vector<16x128xf32>
    %cst_156 = arith.constant 1.000000e+00 : f32
    %506 = vector.broadcast %cst_156 : f32 to vector<16x128xf32>
    %507 = arith.addf %506, %505 : vector<16x128xf32>
    %508 = arith.divf %506, %507 : vector<16x128xf32>
    %509 = vector.extract_strided_slice %498 {offsets = [0, 128], sizes = [16, 128], strides = [1, 1]} : vector<16x384xf32> to vector<16x128xf32>
    %510 = vector.extract_strided_slice %500 {offsets = [0, 128], sizes = [16, 128], strides = [1, 1]} : vector<16x384xf32> to vector<16x128xf32>
    %511 = arith.addf %509, %510 : vector<16x128xf32>
    %512 = arith.negf %511 : vector<16x128xf32>
    %513 = math.exp %512 : vector<16x128xf32>
    %cst_157 = arith.constant 1.000000e+00 : f32
    %514 = vector.broadcast %cst_157 : f32 to vector<16x128xf32>
    %515 = arith.addf %514, %513 : vector<16x128xf32>
    %516 = arith.divf %514, %515 : vector<16x128xf32>
    %517 = vector.extract_strided_slice %498 {offsets = [0, 256], sizes = [16, 128], strides = [1, 1]} : vector<16x384xf32> to vector<16x128xf32>
    %518 = vector.extract_strided_slice %500 {offsets = [0, 256], sizes = [16, 128], strides = [1, 1]} : vector<16x384xf32> to vector<16x128xf32>
    %519 = vector.broadcast %272 : vector<1x128xf32> to vector<16x128xf32>
    %520 = arith.addf %518, %519 : vector<16x128xf32>
    %521 = arith.mulf %508, %520 : vector<16x128xf32>
    %522 = arith.addf %517, %521 : vector<16x128xf32>
    %523 = math.tanh %522 : vector<16x128xf32>
    %cst_158 = arith.constant 1.000000e+00 : f32
    %524 = vector.broadcast %cst_158 : f32 to vector<16x128xf32>
    %525 = arith.subf %524, %516 : vector<16x128xf32>
    %526 = arith.mulf %525, %523 : vector<16x128xf32>
    %527 = arith.mulf %516, %496 : vector<16x128xf32>
    %528 = arith.addf %526, %527 : vector<16x128xf32>
    %529 = vector.extract_strided_slice %528 {offsets = [15, 0], sizes = [1, 128], strides = [1, 1]} : vector<16x128xf32> to vector<1x128xf32>
    %530 = tpu.concatenate %305, %337, %369, %401, %433, %465, %497, %529 in 0 : vector<1x128xf32>, vector<1x128xf32>, vector<1x128xf32>, vector<1x128xf32>, vector<1x128xf32>, vector<1x128xf32>, vector<1x128xf32>, vector<1x128xf32> -> vector<8x128xf32>
    %c0_159 = arith.constant 0 : index
    %c0_160 = arith.constant 0 : index
    %531 = vector.load %arg9[%c0_159, %c0_160] : memref<128x128xf32, #tpu.memory_space<vmem>>, vector<128x128xf32>
    %cst_161 = arith.constant dense<0.000000e+00> : vector<8x128xf32>
    %532 = tpu.matmul %530, %531, %cst_161 {dimension_numbers = #tpu.dot_dimension_numbers<[1], [0], [0], [1], [0, 0, 1, 1], [], []>} : vector<8x128xf32>, vector<128x128xf32>, vector<8x128xf32> -> vector<8x128xf32>
    %c0_162 = arith.constant 0 : index
    %c0_163 = arith.constant 0 : index
    %533 = vector.load %arg10[%c0_162, %c0_163] : memref<1x128xf32, #tpu.memory_space<vmem>>, vector<1x128xf32>
    %534 = vector.broadcast %533 : vector<1x128xf32> to vector<8x128xf32>
    %535 = arith.addf %532, %534 : vector<8x128xf32>
    %c0_164 = arith.constant 0 : index
    %c0_165 = arith.constant 0 : index
    %536 = vector.load %arg11[%c0_164, %c0_165] : memref<8x128xf32, #tpu.memory_space<vmem>>, vector<8x128xf32>
    tpu.vector_store %arg11[%c0_164, %c0_165], %535 {strides = array<i32>} : memref<8x128xf32, #tpu.memory_space<vmem>>, vector<8x128xf32>,
    return
  }
}

</mosaic_0001>

<bundles_post_ra>
// kernel: gru_model_forward.1
= control target key start
LH: loop header
LB: loop body
LE: loop exit
PB: predicated region body
PF: predicated region fallthrough
CT: control target
= control target key end

     0   :  { %16 = vsyncpa [#allocation5], 0  ;;  %s7356_s0 = inlined_call_operand.hbm [shape: f32[128,64], index: 0, kind: input, shape index: {}]   ;;  %s7357_s1 = inlined_call_operand.vmem [shape: f32[64,384], index: 1, kind: input, shape index: {}]   ;;  %s7358_s2 = inlined_call_operand.vmem [shape: f32[128,384], index: 2, kind: input, shape index: {}]   ;;  %s7359_s3 = inlined_call_operand.vmem [shape: f32[1,384], index: 3, kind: input, shape index: {}]   ;;  %s7360_s4 = inlined_call_operand.vmem [shape: f32[1,128], index: 4, kind: input, shape index: {}]   ;;  %s7361_s5 = inlined_call_operand.hbm [shape: f32[128,384], index: 5, kind: input, shape index: {}]   ;;  %s7362_s6 = inlined_call_operand.hbm [shape: f32[128,384], index: 6, kind: input, shape index: {}]   ;;  %s7363_s7 = inlined_call_operand.vmem [shape: f32[1,384], index: 7, kind: input, shape index: {}]   ;;  %s7364_s8 = inlined_call_operand.vmem [shape: f32[1,128], index: 8, kind: input, shape index: {}]   ;;  %s7365_s9 = inlined_call_operand.vmem [shape: f32[128,128], index: 9, kind: input, shape index: {}]   ;;  %s7366_s10 = inlined_call_operand.vmem [shape: f32[1,128], index: 10, kind: input, shape index: {}]   ;;  %s7367_s11 = inlined_call_operand.hbm [shape: f32[8,128], index: 11, kind: output, shape index: {}]  }
   0x1   :  { %17 = vsyncpa [#allocation8], 0  ;;  %s44_s19 = sshll.u32 %s7361_s5, 4  ;;  %s45_s19 = int_to_ptr.hbm [resolvable:$true] %s44_s19 }
   0x2   :  { %18 = vsyncpa [#allocation6], 0  ;;  %s4585_s20 = smov [#allocation7]   ;;  %s23_s24 = sshll.u32 %s7356_s0, 4  ;;  %s24_s24 = int_to_ptr.hbm [resolvable:$true] %s23_s24 }
   0x3   :  { %s46_s21 = sshll.u32 %s4585_s20, 4  ;;  %s4586_s25 = smov 384   ;;  %s47_s21 = int_to_ptr.vmem [resolvable:$true] %s46_s21 }
   0x4   :  { %s4587_s26 = smov 24   ;;  %s4588_s27 = smov [#allocation4]  }
   0x5   :  { %52 = dma.hbm_to_vmem [thread:$0]  %s45_s19, 6144, %s47_s21, [#allocation8], %s4586_s25, %s4586_s25, %s4587_s26  }
   0x6   :  { %s25_s28 = sshll.u32 %s4588_s27, 4  ;;  %s4589_s29 = smov 128   ;;  %s26_s28 = int_to_ptr.vmem [resolvable:$true] %s25_s28 }
   0x7   :  { %s4590_s30 = smov 8   ;;  %s57_s13 = sshll.u32 %s7362_s6, 4  ;;  %s58_s13 = int_to_ptr.hbm [resolvable:$true] %s57_s13 }
   0x8   :  { %31 = dma.hbm_to_vmem [thread:$0]  %s24_s24, 2048, %s26_s28, [#allocation5], %s4589_s29, %s4589_s29, %s4590_s30  }
   0x9   :  { %s4591_s14 = smov [#allocation9]  }
   0xa   :  { %s59_s15 = sshll.u32 %s4591_s14, 4  ;;  %s60_s15 = int_to_ptr.vmem [resolvable:$true] %s59_s15 }
   0xb   :  { %65 = dma.hbm_to_vmem [thread:$0]  %s58_s13, 6144, %s60_s15, [#allocation8], %s4586_s25, %s4586_s25, %s4587_s26  }
   0xc   :  { %4579 = dma.done.wait [#allocation5], 2048  }
   0xd   :  { %4580 = vsyncadd [#allocation5], 4294965248 }
   0xe   :  { %4581 = dma.done.wait [#allocation8], 12288  }
   0xf   :  { %4582 = vsyncadd [#allocation8], 4294955008  ;;  %v4666_v0 = vld [vmem:[%s7358_s2 + $0x168] sm:$0xff]  ;;  %v4671_v1 = vld [vmem:[%s7358_s2 + $0x150] sm:$0xff]  ;;  %vm134_vm0 = vcmask 523264   ;;  %v7368_v39 = vmov 0.0  }
  0x10   :  { %481 = vmatpush.msra.mxu3 %v4666_v0  ;;  %v4677_v2 = vld [vmem:[%s7358_s2 + $0x138] sm:$0xff]  ;;  %v4683_v3 = vld [vmem:[%s7358_s2 + $0x120] sm:$0xff]  ;;  %v4689_v4 = vld [vmem:[%s7358_s2 + $0x108] sm:$0xff]  ;;  %s4593_s20 = smov [#allocation10]   ;;  %s3962_s24 = sshll.u32 %s7367_s11, 4  ;;  %s3963_s24 = int_to_ptr.hbm [resolvable:$true] %s3962_s24 }
  0x11   :  { %v123_v5 = vld [vmem:[%s7357_s1 + $0xa8] sm:$0xff]  ;;  %v120_v6 = vld [vmem:[%s7357_s1 + $0x90] sm:$0xff]  ;;  %v117_v8 = vld [vmem:[%s7357_s1 + $0x78] sm:$0xff]  ;;  %s3960_s21 = sshll.u32 %s4593_s20, 4  ;;  %s3961_s21 = int_to_ptr.vmem [resolvable:$true] %s3960_s21 }
  0x12   :  { %482 = vmatpush.msra.mxu3 %v4671_v1  ;;  %191 = vmatpush.msra.mxu0 %v123_v5  ;;  %v4701_v7 = vld [vmem:[%s7358_s2 + $0xf0] sm:$0xff]  ;;  %v4710_v9 = vld [vmem:[%s7358_s2 + $0xd8] sm:$0xff]  ;;  %v114_v10 = vld [vmem:[%s7357_s1 + $0x60] sm:$0xff] }
  0x13   :  { %v4719_v11 = vld [vmem:[%s7358_s2 + $0xc0] sm:$0xff]  ;;  %v111_v12 = vld [vmem:[%s7357_s1 + $0x48] sm:$0xff]  ;;  %v108_v14 = vld [vmem:[%s7357_s1 + $0x30] sm:$0xff] }
  0x14   :  { %483 = vmatpush.msra.mxu3 %v4677_v2  ;;  %192 = vmatpush.msra.mxu0 %v120_v6  ;;  %v4728_v13 = vld [vmem:[%s7358_s2 + $0xa8] sm:$0xff]  ;;  %v4737_v15 = vld [vmem:[%s7358_s2 + $0x90] sm:$0xff]  ;;  %v105_v16 = vld [vmem:[%s7357_s1 + $0x18] sm:$0xff] }
  0x15   :  { %v4746_v17 = vld [vmem:[%s7358_s2 + $0x78] sm:$0xff]  ;;  %v102_v18 = vld [vmem:[%s7357_s1] sm:$0xff]  ;;  %v124_v19 = vld [vmem:[%s7357_s1 + $0xb0] sm:$0xff] }
  0x16   :  { %484 = vmatpush.msra.mxu3 %v4683_v3  ;;  %193 = vmatpush.msra.mxu0 %v117_v8  ;;  %v4755_v20 = vld [vmem:[#allocation4] sm:$0xff]  ;;  %v121_v22 = vld [vmem:[%s7357_s1 + $0x98] sm:$0xff]  ;;  %v4769_v23 = vld [vmem:[%s7358_s2 + $0x48] sm:$0xff] }
  0x17   :  { %v4760_v21 = vld [vmem:[%s7358_s2 + $0x60] sm:$0xff]  ;;  %256 = vmatpush.msra.mxu1 %v124_v19  ;;  %v479_v24 = vld [vmem:[%s7358_s2 + $0x170] sm:$0xff]  ;;  %v476_v27 = vld [vmem:[%s7358_s2 + $0x158] sm:$0xff] }
  0x18   :  { %485 = vmatpush.msra.mxu3 %v4689_v4  ;;  %194 = vmatpush.msra.mxu0 %v114_v10  ;;  %v118_v25 = vld [vmem:[%s7357_s1 + $0x80] sm:$0xff]  ;;  %v4783_v26 = vld [vmem:[%s7358_s2 + $0x30] sm:$0xff]  ;;  %v115_v28 = vld [vmem:[%s7357_s1 + $0x68] sm:$0xff] }
  0x19   :  { %257 = vmatpush.msra.mxu1 %v121_v22  ;;  %v4795_v29 = vld [vmem:[%s7358_s2 + $0x18] sm:$0xff]  ;;  %v473_v30 = vld [vmem:[%s7358_s2 + $0x140] sm:$0xff]  ;;  %v112_v31 = vld [vmem:[%s7357_s1 + $0x50] sm:$0xff] }
  0x1a   :  { %486 = vmatpush.msra.mxu3 %v4701_v7  ;;  %195 = vmatpush.msra.mxu0 %v111_v12  ;;  %v4804_v32 = vld [vmem:[#allocation4 + $0x8] sm:$0xff]  ;;  %v4809_v33 = vld [vmem:[%s7358_s2] sm:$0xff]  ;;  %v109_v35 = vld [vmem:[%s7357_s1 + $0x38] sm:$0xff] }
  0x1b   :  { %258 = vmatpush.msra.mxu1 %v118_v25  ;;  %v470_v34 = vld [vmem:[%s7358_s2 + $0x128] sm:$0xff]  ;;  %v467_v36 = vld [vmem:[%s7358_s2 + $0x110] sm:$0xff]  ;;  %v106_v37 = vld [vmem:[%s7357_s1 + $0x20] sm:$0xff] }
  0x1c   :  { %487 = vmatpush.msra.mxu3 %v4710_v9  ;;  %196 = vmatpush.msra.mxu0 %v108_v14  ;;  %v464_v38 = vld [vmem:[%s7358_s2 + $0xf8] sm:$0xff]  ;;  %v103_v40 = vld [vmem:[%s7357_s1 + $0x8] sm:$0xff]  ;;  %v461_v41 = vld [vmem:[%s7358_s2 + $0xe0] sm:$0xff] }
  0x1d   :  { %259 = vmatpush.msra.mxu1 %v115_v28  ;;  %v4840_v42 = vld [vmem:[%s7358_s2 + $0x178] sm:$0xff]  ;;  %v458_v43 = vld [vmem:[%s7358_s2 + $0xc8] sm:$0xff]  ;;  %v4851_v44 = vld [vmem:[%s7358_s2 + $0x160] sm:$0xff] }
  0x1e   :  { %488 = vmatpush.msra.mxu3 %v4719_v11  ;;  %197 = vmatpush.msra.mxu0 %v105_v16  ;;  %v4857_v45 = vld [vmem:[%s7358_s2 + $0x148] sm:$0xff]  ;;  %v455_v46 = vld [vmem:[%s7358_s2 + $0xb0] sm:$0xff]  ;;  %v452_v48 = vld [vmem:[%s7358_s2 + $0x98] sm:$0xff] }
  0x1f   :  { %260 = vmatpush.msra.mxu1 %v112_v31  ;;  %v4867_v47 = vld [vmem:[%s7358_s2 + $0x130] sm:$0xff]  ;;  %v4876_v49 = vld [vmem:[%s7358_s2 + $0x118] sm:$0xff]  ;;  %v449_v50 = vld [vmem:[%s7358_s2 + $0x80] sm:$0xff] }
  0x20   :  { %489 = vmatpush.msra.mxu3 %v4728_v13  ;;  %198 = vmatpush.msra.mxu0 %v102_v18  ;;  %v4887_v51 = vld [vmem:[%s7358_s2 + $0x100] sm:$0xff]  ;;  %v4893_v52 = vld [vmem:[%s7358_s2 + $0xe8] sm:$0xff]  ;;  %v125_v53 = vld [vmem:[%s7357_s1 + $0xb8] sm:$0xff] }
  0x21   :  { %3973 = vmatmul.msk.f32.vlgmr.msra.gmra.mxu0 %vm134_vm0, %v4755_v20  ;;  %261 = vmatpush.msra.mxu1 %v109_v35  ;;  %v446_v54 = vld [vmem:[%s7358_s2 + $0x68] sm:$0xff]  ;;  %v4905_v55 = vld [vmem:[%s7358_s2 + $0xd0] sm:$0xff]  ;;  %v122_v56 = vld [vmem:[%s7357_s1 + $0xa0] sm:$0xff] }
  0x22   :  { %490 = vmatpush.msra.mxu3 %v4737_v15  ;;  %728 = vmatpush.msrb.mxu0 %v479_v24  ;;  %v443_v57 = vld [vmem:[%s7358_s2 + $0x50] sm:$0xff]  ;;  %v4917_v58 = vld [vmem:[%s7358_s2 + $0xb8] sm:$0xff]  ;;  %v119_v59 = vld [vmem:[%s7357_s1 + $0x88] sm:$0xff] }
  0x23   :  { %262 = vmatpush.msra.mxu1 %v106_v37  ;;  %321 = vmatpush.msra.mxu2 %v125_v53  ;;  %v440_v60 = vld [vmem:[%s7358_s2 + $0x38] sm:$0xff]  ;;  %v4929_v61 = vld [vmem:[%s7358_s2 + $0xa0] sm:$0xff]  ;;  %v116_v62 = vld [vmem:[%s7357_s1 + $0x70] sm:$0xff] }
  0x24   :  { %491 = vmatpush.msra.mxu3 %v4746_v17  ;;  %729 = vmatpush.msrb.mxu0 %v476_v27  ;;  %v437_v63 = vld [vmem:[%s7358_s2 + $0x20] sm:$0xff]  ;;  %v4941_v5 = vld [vmem:[%s7358_s2 + $0x88] sm:$0xff]  ;;  %v113_v6 = vld [vmem:[%s7357_s1 + $0x58] sm:$0xff] }
  0x25   :  { %263 = vmatpush.msra.mxu1 %v103_v40  ;;  %322 = vmatpush.msra.mxu2 %v122_v56  ;;  %v434_v8 = vld [vmem:[%s7358_s2 + $0x8] sm:$0xff]  ;;  %v4953_v10 = vld [vmem:[%s7358_s2 + $0x70] sm:$0xff]  ;;  %v110_v12 = vld [vmem:[%s7357_s1 + $0x40] sm:$0xff] }
  0x26   :  { %492 = vmatpush.msra.mxu3 %v4760_v21  ;;  %730 = vmatpush.msrb.mxu0 %v473_v30  ;;  %v444_v14 = vld [vmem:[%s7358_s2 + $0x58] sm:$0xff]  ;;  %v107_v16 = vld [vmem:[%s7357_s1 + $0x28] sm:$0xff]  ;;  %v441_v18 = vld [vmem:[%s7358_s2 + $0x40] sm:$0xff] }
  0x27   :  { %3989 = vmatmul.msk.f32.vlgmr.msra.gmra.mxu1 %vm134_vm0, %v4755_v20  ;;  %323 = vmatpush.msra.mxu2 %v119_v59  ;;  %v104_v19 = vld [vmem:[%s7357_s1 + $0x10] sm:$0xff]  ;;  %v438_v22 = vld [vmem:[%s7358_s2 + $0x28] sm:$0xff]  ;;  %v89_v25 = vld [vmem:[#allocation4 + $0x18] sm:$0xff] }
  0x28   :  { %493 = vmatpush.msra.mxu3 %v4769_v23  ;;  %731 = vmatpush.msrb.mxu0 %v470_v34  ;;  %v91_v28 = vld [vmem:[#allocation4 + $0x28] sm:$0xff] }
  0x29   :  { %3974 = vmatmul.msk.f32.gmra.mxu0 %vm134_vm0, %v4804_v32  ;;  %751 = vmatpush.msrb.mxu1 %v4840_v42 }
  0x2a   :  { %494 = vmatpush.msra.mxu3 %v4783_v26  ;;  %732 = vmatpush.msrb.mxu0 %v467_v36 }
  0x2b   :  { %752 = vmatpush.msrb.mxu1 %v4851_v44  ;;  %324 = vmatpush.msra.mxu2 %v116_v62 }
  0x2c   :  { %495 = vmatpush.msra.mxu3 %v4795_v29  ;;  %733 = vmatpush.msrb.mxu0 %v464_v38 }
  0x2d   :  { %753 = vmatpush.msrb.mxu1 %v4857_v45  ;;  %325 = vmatpush.msra.mxu2 %v113_v6 }
  0x2e   :  { %496 = vmatpush.msra.mxu3 %v4809_v33  ;;  %734 = vmatpush.msrb.mxu0 %v461_v41 }
  0x2f   :  { %497 = vmatmul.f32.vlgmr.msra.gmra.mxu3 %v7368_v39  ;;  %754 = vmatpush.msrb.mxu1 %v4867_v47 }
  0x30   :  { %504 = vmatpush.msrb.mxu3 %v479_v24  ;;  %735 = vmatpush.msrb.mxu0 %v458_v43  ;;  %v435_v24 = vld [vmem:[%s7358_s2 + $0x10] sm:$0xff] }
  0x31   :  { %3990 = vmatmul.msk.f32.gmra.mxu1 %vm134_vm0, %v4804_v32  ;;  %326 = vmatpush.msra.mxu2 %v110_v12 }
  0x32   :  { %505 = vmatpush.msrb.mxu3 %v476_v27  ;;  %736 = vmatpush.msrb.mxu0 %v455_v46  ;;  %v90_v27 = vld [vmem:[#allocation4 + $0x20] sm:$0xff] }
  0x33   :  { %755 = vmatpush.msrb.mxu1 %v4876_v49  ;;  %327 = vmatpush.msra.mxu2 %v107_v16 }
  0x34   :  { %506 = vmatpush.msrb.mxu3 %v473_v30  ;;  %737 = vmatpush.msrb.mxu0 %v452_v48  ;;  %v92_v30 = vld [vmem:[#allocation4 + $0x30] sm:$0xff] }
  0x35   :  { %756 = vmatpush.msrb.mxu1 %v4887_v51  ;;  %328 = vmatpush.msra.mxu2 %v104_v19 }
  0x36   :  { %507 = vmatpush.msrb.mxu3 %v470_v34  ;;  %738 = vmatpush.msrb.mxu0 %v449_v50  ;;  %v99_v34 = vld [vmem:[#allocation4 + $0x68] sm:$0xff] }
  0x37   :  { %500 = vmatmul.f32.gmra.mxu3 %v7368_v39  ;;  %757 = vmatpush.msrb.mxu1 %v4893_v52 }
  0x38   :  { %508 = vmatpush.msrb.mxu3 %v467_v36  ;;  %739 = vmatpush.msrb.mxu0 %v446_v54 }
  0x39   :  { %758 = vmatpush.msrb.mxu1 %v4905_v55  ;;  %4005 = vmatmul.msk.f32.vlgmr.msra.gmra.mxu2 %vm134_vm0, %v4755_v20  ;;  %v88_v20 = vld [vmem:[#allocation4 + $0x10] sm:$0xff] }
  0x3a   :  { %509 = vmatpush.msrb.mxu3 %v464_v38  ;;  %740 = vmatpush.msrb.mxu0 %v443_v57 }
  0x3b   :  { %759 = vmatpush.msrb.mxu1 %v4917_v58  ;;  %926 = vmatpush.msrb.mxu2 %v4666_v0 }
  0x3c   :  { %510 = vmatpush.msrb.mxu3 %v461_v41  ;;  %741 = vmatpush.msrb.mxu0 %v440_v60 }
  0x3d   :  { %760 = vmatpush.msrb.mxu1 %v4929_v61  ;;  %927 = vmatpush.msrb.mxu2 %v4671_v1 }
  0x3e   :  { %511 = vmatpush.msrb.mxu3 %v458_v43  ;;  %742 = vmatpush.msrb.mxu0 %v437_v63 }
  0x3f   :  { %761 = vmatpush.msrb.mxu1 %v4941_v5  ;;  %928 = vmatpush.msrb.mxu2 %v4677_v2 }
  0x40   :  { %512 = vmatpush.msrb.mxu3 %v455_v46  ;;  %743 = vmatpush.msrb.mxu0 %v434_v8 }
  0x41   :  { %762 = vmatpush.msrb.mxu1 %v4953_v10  ;;  %3975 = vmatmul.msk.f32.gmra.mxu0 %vm134_vm0, %v88_v20 }
  0x42   :  { %513 = vmatpush.msrb.mxu3 %v452_v48  ;;  %972 = vmatpush.msra.mxu0 %v4840_v42 }
  0x43   :  { %763 = vmatpush.msrb.mxu1 %v444_v14  ;;  %4006 = vmatmul.msk.f32.gmra.mxu2 %vm134_vm0, %v4804_v32 }
  0x44   :  { %514 = vmatpush.msrb.mxu3 %v449_v50  ;;  %973 = vmatpush.msra.mxu0 %v4851_v44 }
  0x45   :  { %764 = vmatpush.msrb.mxu1 %v441_v18  ;;  %929 = vmatpush.msrb.mxu2 %v4683_v3 }
  0x46   :  { %515 = vmatpush.msrb.mxu3 %v446_v54  ;;  %974 = vmatpush.msra.mxu0 %v4857_v45 }
  0x47   :  { %765 = vmatpush.msrb.mxu1 %v438_v22  ;;  %930 = vmatpush.msrb.mxu2 %v4689_v4 }
  0x48   :  { %516 = vmatpush.msrb.mxu3 %v443_v57  ;;  %975 = vmatpush.msra.mxu0 %v4867_v47 }
  0x49   :  { %766 = vmatpush.msrb.mxu1 %v435_v24  ;;  %931 = vmatpush.msrb.mxu2 %v4701_v7 }
  0x4a   :  { %517 = vmatpush.msrb.mxu3 %v440_v60  ;;  %976 = vmatpush.msra.mxu0 %v4876_v49 }
  0x4b   :  { %3991 = vmatmul.msk.f32.gmra.mxu1 %vm134_vm0, %v88_v20  ;;  %3976 = vmatmul.msk.f32.gmra.mxu0 %vm134_vm0, %v89_v25 }
  0x4c   :  { %518 = vmatpush.msrb.mxu3 %v437_v63  ;;  %977 = vmatpush.msra.mxu0 %v4887_v51 }
  0x4d   :  { %4007 = vmatmul.msk.f32.gmra.mxu2 %vm134_vm0, %v88_v20 }
  0x4e   :  { %519 = vmatpush.msrb.mxu3 %v434_v8  ;;  %978 = vmatpush.msra.mxu0 %v4893_v52 }
  0x4f   :  { %520 = vmatmul.f32.vlgmr.msrb.gmra.mxu3 %v7368_v39  ;;  %932 = vmatpush.msrb.mxu2 %v4710_v9 }
  0x50   :  { %527 = vmatpush.msra.mxu3 %v4840_v42  ;;  %979 = vmatpush.msra.mxu0 %v4905_v55  ;;  %v100_v42 = vld [vmem:[#allocation4 + $0x70] sm:$0xff] }
  0x51   :  { %933 = vmatpush.msrb.mxu2 %v4719_v11 }
  0x52   :  { %528 = vmatpush.msra.mxu3 %v4851_v44  ;;  %980 = vmatpush.msra.mxu0 %v4917_v58 }
  0x53   :  { %3992 = vmatmul.msk.f32.gmra.mxu1 %vm134_vm0, %v89_v25  ;;  %934 = vmatpush.msrb.mxu2 %v4728_v13 }
  0x54   :  { %529 = vmatpush.msra.mxu3 %v4857_v45  ;;  %981 = vmatpush.msra.mxu0 %v4929_v61 }
  0x55   :  { %3977 = vmatmul.msk.f32.gmra.mxu0 %vm134_vm0, %v90_v27  ;;  %4008 = vmatmul.msk.f32.gmra.mxu2 %vm134_vm0, %v89_v25 }
  0x56   :  { %530 = vmatpush.msra.mxu3 %v4867_v47  ;;  %982 = vmatpush.msra.mxu0 %v4941_v5 }
  0x57   :  { %523 = vmatmul.f32.gmra.mxu3 %v7368_v39  ;;  %935 = vmatpush.msrb.mxu2 %v4737_v15 }
  0x58   :  { %531 = vmatpush.msra.mxu3 %v4876_v49  ;;  %983 = vmatpush.msra.mxu0 %v4953_v10 }
  0x5a   :  { %532 = vmatpush.msra.mxu3 %v4887_v51  ;;  %v101_v51 = vld [vmem:[#allocation4 + $0x78] sm:$0xff] }
  0x5b   :  { %3993 = vmatmul.msk.f32.gmra.mxu1 %vm134_vm0, %v90_v27 }
  0x5c   :  { %533 = vmatpush.msra.mxu3 %v4893_v52 }
  0x5d   :  { %3978 = vmatmul.msk.f32.gmra.mxu0 %vm134_vm0, %v91_v28  ;;  %4009 = vmatmul.msk.f32.gmra.mxu2 %vm134_vm0, %v90_v27 }
  0x5e   :  { %534 = vmatpush.msra.mxu3 %v4905_v55 }
  0x60   :  { %535 = vmatpush.msra.mxu3 %v4917_v58 }
  0x62   :  { %536 = vmatpush.msra.mxu3 %v4929_v61 }
  0x63   :  { %3994 = vmatmul.msk.f32.gmra.mxu1 %vm134_vm0, %v91_v28 }
  0x64   :  { %537 = vmatpush.msra.mxu3 %v4941_v5 }
  0x65   :  { %3979 = vmatmul.msk.f32.gmra.mxu0 %vm134_vm0, %v92_v30  ;;  %4010 = vmatmul.msk.f32.gmra.mxu2 %vm134_vm0, %v91_v28 }
  0x66   :  { %538 = vmatpush.msra.mxu3 %v4953_v10 }
  0x68   :  { %539 = vmatpush.msra.mxu3 %v444_v14 }
  0x6a   :  { %540 = vmatpush.msra.mxu3 %v441_v18 }
  0x6b   :  { %3995 = vmatmul.msk.f32.gmra.mxu1 %vm134_vm0, %v92_v30 }
  0x6c   :  { %541 = vmatpush.msra.mxu3 %v438_v22  ;;  %v5111_v22 = vld [vmem:[%s7360_s4] ss:$0 sm:$0xff] }
  0x6d   :  { %4011 = vmatmul.msk.f32.gmra.mxu2 %vm134_vm0, %v92_v30 }
  0x6e   :  { %542 = vmatpush.msra.mxu3 %v435_v24 }
  0x6f   :  { %543 = vmatmul.f32.vlgmr.msra.gmra.mxu3 %v7368_v39 }
  0x70   :  { %705 = vmatpush.msrb.mxu3 %v4666_v0  ;;  %v93_v0 = vld [vmem:[#allocation4 + $0x38] sm:$0xff] }
  0x71   :  { %3980 = vmatmul.msk.f32.gmra.mxu0 %vm134_vm0, %v93_v0 }
  0x72   :  { %706 = vmatpush.msrb.mxu3 %v4671_v1  ;;  %v94_v1 = vld [vmem:[#allocation4 + $0x40] sm:$0xff] }
  0x73   :  { %3996 = vmatmul.msk.f32.gmra.mxu1 %vm134_vm0, %v93_v0 }
  0x74   :  { %707 = vmatpush.msrb.mxu3 %v4677_v2  ;;  %v95_v2 = vld [vmem:[#allocation4 + $0x48] sm:$0xff] }
  0x75   :  { %4012 = vmatmul.msk.f32.gmra.mxu2 %vm134_vm0, %v93_v0 }
  0x76   :  { %708 = vmatpush.msrb.mxu3 %v4683_v3  ;;  %v96_v3 = vld [vmem:[#allocation4 + $0x50] sm:$0xff] }
  0x77   :  { %546 = vmatmul.f32.gmra.mxu3 %v7368_v39 }
  0x78   :  { %709 = vmatpush.msrb.mxu3 %v4689_v4  ;;  %v5065_v4 = vld [vmem:[%s7359_s3] sm:$0x7] }
  0x79   :  { %3981 = vmatmul.msk.f32.gmra.mxu0 %vm134_vm0, %v94_v1  ;;  %v5114_v24 = vperm.slane %v5065_v4, 2 }
  0x7a   :  { %710 = vmatpush.msrb.mxu3 %v4701_v7 }
  0x7b   :  { %3997 = vmatmul.msk.f32.gmra.mxu1 %vm134_vm0, %v94_v1  ;;  %7415 = vst [vmem:[#allocation16_spill] sm:$0xff] %v5114_v24 }
  0x7c   :  { %711 = vmatpush.msrb.mxu3 %v4710_v9  ;;  %v5068_v9 = vperm.slane %v5065_v4, 0 }
  0x7d   :  { %4013 = vmatmul.msk.f32.gmra.mxu2 %vm134_vm0, %v94_v1 }
  0x7e   :  { %712 = vmatpush.msrb.mxu3 %v4719_v11  ;;  %7411 = vst [vmem:[#allocation14_spill] sm:$0xff] %v5068_v9  ;;  %v97_v11 = vld [vmem:[#allocation4 + $0x58] sm:$0xff] }
  0x80   :  { %713 = vmatpush.msrb.mxu3 %v4728_v13 }
  0x81   :  { %3982 = vmatmul.msk.f32.gmra.mxu0 %vm134_vm0, %v95_v2 }
  0x82   :  { %714 = vmatpush.msrb.mxu3 %v4737_v15 }
  0x83   :  { %3998 = vmatmul.msk.f32.gmra.mxu1 %vm134_vm0, %v95_v2 }
  0x84   :  { %715 = vmatpush.msrb.mxu3 %v4746_v17 }
  0x85   :  { %4014 = vmatmul.msk.f32.gmra.mxu2 %vm134_vm0, %v95_v2 }
  0x86   :  { %716 = vmatpush.msrb.mxu3 %v4760_v21 }
  0x88   :  { %717 = vmatpush.msrb.mxu3 %v4769_v23  ;;  %v98_v23 = vld [vmem:[#allocation4 + $0x60] sm:$0xff] }
  0x89   :  { %3983 = vmatmul.msk.f32.gmra.mxu0 %vm134_vm0, %v96_v3 }
  0x8a   :  { %718 = vmatpush.msrb.mxu3 %v4783_v26 }
  0x8b   :  { %3999 = vmatmul.msk.f32.gmra.mxu1 %vm134_vm0, %v96_v3 }
  0x8c   :  { %719 = vmatpush.msrb.mxu3 %v4795_v29 }
  0x8d   :  { %4015 = vmatmul.msk.f32.gmra.mxu2 %vm134_vm0, %v96_v3 }
  0x8e   :  { %720 = vmatpush.msrb.mxu3 %v4809_v33  ;;  %v5079_v33 = vperm.slane %v5065_v4, 1 }
  0x90   :  { %7412 = vst [vmem:[#allocation15_spill] sm:$0xff] %v5079_v33 }
  0x91   :  { %3984 = vmatmul.msk.f32.gmra.mxu0 %vm134_vm0, %v97_v11 }
  0x93   :  { %4000 = vmatmul.msk.f32.gmra.mxu1 %vm134_vm0, %v97_v11 }
  0x95   :  { %4016 = vmatmul.msk.f32.gmra.mxu2 %vm134_vm0, %v97_v11 }
  0x99   :  { %3985 = vmatmul.msk.f32.gmra.mxu0 %vm134_vm0, %v98_v23 }
  0x9b   :  { %4001 = vmatmul.msk.f32.gmra.mxu1 %vm134_vm0, %v98_v23 }
  0x9d   :  { %4017 = vmatmul.msk.f32.gmra.mxu2 %vm134_vm0, %v98_v23 }
  0x9e   :  { %v200_v7 = vpop.f32.mrf.mxu0 }
  0x9f   :  { %v201_v15 = vadd.f32 %v200_v7, %v5068_v9 }
  0xa1   :  { %3986 = vmatmul.msk.f32.gmra.mxu0 %vm134_vm0, %v99_v34 }
  0xa3   :  { %4002 = vmatmul.msk.f32.gmra.mxu1 %vm134_vm0, %v99_v34 }
  0xa4   :  { %v265_v35 = vpop.f32.mrf.mxu1 }
  0xa5   :  { %4018 = vmatmul.msk.f32.gmra.mxu2 %vm134_vm0, %v99_v34  ;;  %v266_v37 = vadd.f32 %v265_v35, %v5079_v33 }
  0xa6   :  { %v203_v17 = vpop.f32.mrf.mxu0 }
  0xa7   :  { %v204_v26 = vadd.f32 %v203_v17, %v5068_v9  ;;  %v5209_v17 = vld [vmem:[%s7358_s2 + $0x170] sm:$0xff] }
  0xa8   :  { %949 = vmatpush.msra.mxu3 %v5209_v17 }
  0xa9   :  { %3987 = vmatmul.msk.f32.gmra.mxu0 %vm134_vm0, %v100_v42 }
  0xab   :  { %4003 = vmatmul.msk.f32.gmra.mxu1 %vm134_vm0, %v100_v42 }
  0xad   :  { %4019 = vmatmul.msk.f32.gmra.mxu2 %vm134_vm0, %v100_v42 }
  0xae   :  { %v268_v44 = vpop.f32.mrf.mxu1 }
  0xaf   :  { %v269_v47 = vadd.f32 %v268_v44, %v5079_v33 }
  0xb1   :  { %3988 = vmatmul.msk.f32.gmra.mxu0 %vm134_vm0, %v101_v51 }
  0xb2   :  { %v498_v13 = vpop.f32.mrf.mxu3 }
  0xb3   :  { %v550_v21 = vadd.f32 %v498_v13, %v201_v15  ;;  %4004 = vmatmul.msk.f32.gmra.mxu1 %vm134_vm0, %v101_v51 }
  0xb5   :  { %v4021_v31 = vmul.f32 -1.442695, %v550_v21  ;;  %4020 = vmatmul.msk.f32.gmra.mxu2 %vm134_vm0, %v101_v51 }
  0xb7   :  { %4095 = vpow2.f32 %v4021_v31  ;;  %v5229_v31 = vld [vmem:[%s7358_s2 + $0x128] sm:$0xff] }
  0xba   :  { %v501_v29 = vpop.f32.mrf.mxu3 }
  0xbb   :  { %v551_v32 = vadd.f32 %v501_v29, %v204_v26 }
  0xbc   :  { %v330_v19 = vpop.f32.mrf.mxu2 }
  0xbd   :  { %v4022_v36 = vmul.f32 -1.442695, %v551_v32  ;;  %v4096_v38 = vpop.eup %4095  ;;  %v331_v4 = vadd.f32 %v330_v19, %v5114_v24 }
  0xbe   :  { %v558_v43 = vadd.f32 1.0, %v4096_v38  ;;  %v5132_v29 = vpop.f32.mrf.mxu0 }
  0xbf   :  { %4097 = vpow2.f32 %v4022_v36 }
  0xc0   :  { %vm565_vm1 = vweird.f32 %v558_v43  ;;  %v571_v8 = vand.u32 2147483648, %v558_v43  ;;  %v569_v12 = vand.u32 2147483647, %v558_v43 }
  0xc2   :  { %v572_v27 = vor.u32 1.1754944e-38, %v571_v8  ;;  %vm570_vm4 = vcmp.eq.f32.partialorder %v569_v12, 8.507059e+37 }
  0xc5   :  { %v4098_v46 = vpop.eup %4097 }
  0xc6   :  { %v5089_v48 = vadd.f32 1.0, %v4098_v46  ;;  %v333_v38 = vpop.f32.mrf.mxu2 }
  0xc8   :  { %vm580_vm7 = vweird.f32 %v5089_v48  ;;  %v586_v1 = vand.u32 2147483648, %v5089_v48  ;;  %v584_v26 = vand.u32 2147483647, %v5089_v48  ;;  %v271_v8 = vpop.f32.mrf.mxu1 }
  0xca   :  { %vm585_vm12 = vcmp.eq.f32.partialorder %v584_v26, 8.507059e+37  ;;  %v5223_v26 = vld [vmem:[%s7358_s2 + $0x140] sm:$0xff] }
  0xd0   :  { %v274_v12 = vpop.f32.mrf.mxu1 }
  0xd2   :  { %v521_v40 = vpop.f32.mrf.mxu3 }
  0xd3   :  { %v590_v41 = vadd.f32 %v521_v40, %v266_v37  ;;  %v587_v37 = vor.u32 1.1754944e-38, %v586_v1 }
  0xd5   :  { %v4023_v45 = vmul.f32 -1.442695, %v590_v41 }
  0xd7   :  { %4099 = vpow2.f32 %v4023_v45  ;;  %v334_v45 = vadd.f32 %v333_v38, %v5114_v24 }
  0xd8   :  { %4101 = vrcp.f32 %v558_v43 }
  0xd9   :  { %4103 = vrcp.f32 %v5089_v48 }
  0xda   :  { %v524_v49 = vpop.f32.mrf.mxu3 }
  0xdb   :  { %v591_v50 = vadd.f32 %v524_v49, %v269_v47 }
  0xdd   :  { %v4100_v52 = vpop.eup %4099  ;;  %v4024_v53 = vmul.f32 -1.442695, %v591_v50 }
  0xde   :  { %v4102_v54 = vpop.eup %4101  ;;  %v598_v55 = vadd.f32 1.0, %v4100_v52 }
  0xdf   :  { %4105 = vpow2.f32 %v4024_v53  ;;  %v561_v56 = vmul.f32 %v4102_v54, %v558_v43  ;;  %v5095_v57 = vpop.eup %4103  ;;  %vm566_vm2 = vweird.f32 %v4102_v54 }
  0xe0   :  { %4107 = vrcp.f32 %v598_v55  ;;  %v576_v5 = vmul.f32 %v5095_v57, %v5089_v48  ;;  %vm5104_vm3 = vmor %vm565_vm1, %vm566_vm2  ;;  %vm605_vm5 = vweird.f32 %v598_v55  ;;  %v611_v2 = vand.u32 2147483648, %v598_v55 }
  0xe1   :  { %v562_v59 = vsub.f32 1.0, %v561_v56  ;;  %vm581_vm8 = vweird.f32 %v5095_v57  ;;  %v609_v15 = vand.u32 2147483647, %v598_v55 }
  0xe2   :  { %v577_v14 = vsub.f32 1.0, %v576_v5  ;;  %vm5136_vm10 = vmor %vm580_vm7, %vm581_vm8  ;;  %v612_v32 = vor.u32 1.1754944e-38, %v611_v2 }
  0xe3   :  { %v563_v63 = vmul.f32 %v4102_v54, %v562_v59  ;;  %vm610_vm11 = vcmp.eq.f32.partialorder %v609_v15, 8.507059e+37 }
  0xe4   :  { %v578_v30 = vmul.f32 %v5095_v57, %v577_v14 }
  0xe5   :  { %v4106_v58 = vpop.eup %4105  ;;  %v564_v10 = vadd.f32 %v4102_v54, %v563_v63 }
  0xe6   :  { %v4108_v60 = vpop.eup %4107  ;;  %v5097_v61 = vadd.f32 1.0, %v4106_v58  ;;  %v579_v23 = vadd.f32 %v5095_v57, %v578_v30 }
  0xe7   :  { %v601_v62 = vmul.f32 %v4108_v60, %v598_v55  ;;  %v568_v28 = vsel %vm5104_vm3, %v4102_v54, %v564_v10  ;;  %vm606_vm6 = vweird.f32 %v4108_v60  ;;  %v5153_v54 = vpop.f32.mrf.mxu0 }
  0xe8   :  { %4109 = vrcp.f32 %v5097_v61  ;;  %v573_v11 = vsel %vm570_vm4, %v572_v27, %v568_v28  ;;  %vm5126_vm9 = vmor %vm605_vm5, %vm606_vm6  ;;  %v583_v40 = vsel %vm5136_vm10, %v5095_v57, %v579_v23  ;;  %vm620_vm13 = vweird.f32 %v5097_v61  ;;  %v5217_v23 = vld [vmem:[%s7358_s2 + $0x158] sm:$0xff] }
  0xe9   :  { %v602_v6 = vsub.f32 1.0, %v601_v62  ;;  %v626_v42 = vand.u32 2147483648, %v5097_v61  ;;  %v588_v46 = vsel %vm585_vm12, %v587_v37, %v583_v40  ;;  %v624_v48 = vand.u32 2147483647, %v5097_v61  ;;  %950 = vmatpush.msra.mxu3 %v5217_v23  ;;  %v5250_v40 = vld [vmem:[%s7358_s2 + $0xe0] sm:$0xff] }
  0xeb   :  { %v603_v20 = vmul.f32 %v4108_v60, %v602_v6  ;;  %v627_v52 = vor.u32 1.1754944e-38, %v626_v42  ;;  %vm625_vm0 = vcmp.eq.f32.partialorder %v624_v48, 8.507059e+37  ;;  %951 = vmatpush.msra.mxu3 %v5223_v26  ;;  %v5256_v42 = vld [vmem:[%s7358_s2 + $0x78] sm:$0xff] }
  0xec   :  { %936 = vmatpush.msrb.mxu2 %v5256_v42 }
  0xed   :  { %v604_v13 = vadd.f32 %v4108_v60, %v603_v20  ;;  %952 = vmatpush.msra.mxu3 %v5229_v31 }
  0xee   :  { %v5102_v16 = vpop.eup %4109 }
  0xef   :  { %v616_v25 = vmul.f32 %v5102_v16, %v5097_v61  ;;  %v608_v36 = vsel %vm5126_vm9, %v4108_v60, %v604_v13  ;;  %vm621_vm14 = vweird.f32 %v5102_v16  ;;  %v5161_v5 = vpop.f32.mrf.mxu0 }
  0xf0   :  { %v613_v43 = vsel %vm610_vm11, %v612_v32, %v608_v36  ;;  %vm622_vm15 = vmor %vm620_vm13, %vm621_vm14  ;;  %v5235_v32 = vld [vmem:[%s7358_s2 + $0x110] sm:$0xff]  ;;  %v5244_v36 = vld [vmem:[%s7358_s2 + $0xf8] sm:$0xff] }
  0xf1   :  { %v617_v7 = vsub.f32 1.0, %v616_v25  ;;  %v641_v50 = vsub.f32 1.0, %v613_v43  ;;  %v645_v56 = vmul.f32 0.0, %v613_v43  ;;  %953 = vmatpush.msra.mxu3 %v5235_v32  ;;  %v5261_v43 = vld [vmem:[%s7358_s2 + $0x60] sm:$0xff] }
  0xf2   :  { %v544_v0 = vpop.f32.mrf.mxu3  ;;  %937 = vmatpush.msrb.mxu2 %v5261_v43 }
  0xf3   :  { %v633_v3 = vadd.f32 %v5111_v22, %v544_v0  ;;  %v618_v35 = vmul.f32 %v5102_v16, %v617_v7  ;;  %954 = vmatpush.msra.mxu3 %v5244_v36 }
  0xf5   :  { %v635_v21 = vmul.f32 %v633_v3, %v573_v11  ;;  %v619_v47 = vadd.f32 %v5102_v16, %v618_v35  ;;  %955 = vmatpush.msra.mxu3 %v5250_v40 }
  0xf7   :  { %v637_v34 = vadd.f32 %v635_v21, %v331_v4  ;;  %v623_v57 = vsel %vm622_vm15, %v5102_v16, %v619_v47  ;;  %v5168_v10 = vpop.f32.mrf.mxu0  ;;  %v5172_v16 = vpop.f32.mrf.mxu1  ;;  %v5280_v47 = vld [vmem:[%s7358_s2 + $0xb0] sm:$0xff] }
  0xf8   :  { %v628_v59 = vsel %vm625_vm0, %v627_v52, %v623_v57 }
  0xf9   :  { %4111 = vtanh.f32 %v637_v34  ;;  %v642_v60 = vsub.f32 1.0, %v628_v59  ;;  %v646_v63 = vmul.f32 0.0, %v628_v59  ;;  %v272_v34 = vadd.f32 %v271_v8, %v5079_v33  ;;  %v5318_v8 = vld [vmem:[%s7358_s2 + $0x58] sm:$0xff] }
  0xfa   :  { %v547_v41 = vpop.f32.mrf.mxu3  ;;  %984 = vmatpush.msra.mxu0 %v5318_v8 }
  0xfb   :  { %v634_v44 = vadd.f32 %v5111_v22, %v547_v41 }
  0xfd   :  { %v636_v49 = vmul.f32 %v634_v44, %v588_v46  ;;  %v5267_v44 = vld [vmem:[%s7358_s2 + $0xc8] sm:$0xff] }
  0xfe   :  { %v5274_v46 = vld [vmem:[%s7358_s2 + $0x48] sm:$0xff]  ;;  %956 = vmatpush.msra.mxu3 %v5267_v44 }
  0xff   :  { %v4112_v51 = vpop.eup %4111  ;;  %v638_v53 = vadd.f32 %v636_v49, %v334_v45  ;;  %v5170_v14 = vpop.f32.mrf.mxu0  ;;  %v207_v45 = vadd.f32 %v5132_v29, %v5068_v9  ;;  %v275_v49 = vadd.f32 %v274_v12, %v5079_v33  ;;  %v5288_v29 = vld [vmem:[%s7358_s2 + $0x98] sm:$0xff]  ;;  %938 = vmatpush.msrb.mxu2 %v5274_v46 }
 0x100   :  { %v643_v55 = vmul.f32 %v4112_v51, %v641_v50  ;;  %7422 = vst [vmem:[#allocation19_spill] sm:$0xff] %v5170_v14  ;;  %v5176_v19 = vpop.f32.mrf.mxu1  ;;  %957 = vmatpush.msra.mxu3 %v5280_v47 }
 0x101   :  { %4113 = vtanh.f32 %v638_v53 }
 0x102   :  { %v5156_v58 = vadd.f32 %v645_v56, %v643_v55  ;;  %958 = vmatpush.msra.mxu3 %v5288_v29  ;;  %v5297_v56 = vld [vmem:[%s7358_s2 + $0x80] sm:$0xff] }
 0x104   :  { %7420 = vst [vmem:[#allocation17_spill] sm:$0xff] %v5156_v58  ;;  %721 = vmatmul.f32.vlgmr.msrb.gmra.mxu3 %v5156_v58  ;;  %744 = vmatmul.f32.vlgmr.msrb.gmra.mxu0 %v5156_v58 }
 0x105   :  { %767 = vmatmul.f32.vlgmr.msrb.gmra.mxu1 %v5156_v58  ;;  %959 = vmatpush.msra.mxu3 %v5297_v56 }
 0x107   :  { %v4114_v61 = vpop.eup %4113  ;;  %v5174_v18 = vpop.f32.mrf.mxu0 }
 0x108   :  { %v644_v62 = vmul.f32 %v4114_v61, %v642_v60  ;;  %7423 = vst [vmem:[#allocation20_spill] sm:$0xff] %v5174_v18  ;;  %v5180_v25 = vpop.f32.mrf.mxu1  ;;  %v5303_v60 = vld [vmem:[%s7358_s2 + $0x68] sm:$0xff]  ;;  %v5631_v18 = vld [vmem:[%s7358_s2 + $0x70] sm:$0xff] }
 0x109   :  { %7425 = vst [vmem:[#allocation22_spill] sm:$0xff] %v5180_v25  ;;  %960 = vmatpush.msra.mxu3 %v5303_v60 }
 0x10a   :  { %v5163_v6 = vadd.f32 %v646_v63, %v644_v62  ;;  %v210_v62 = vadd.f32 %v5153_v54, %v5068_v9  ;;  %v5313_v63 = vld [vmem:[%s7358_s2 + $0x50] sm:$0xff] }
 0x10b   :  { %v5325_v54 = vld [vmem:[%s7358_s2 + $0x30] sm:$0xff]  ;;  %961 = vmatpush.msra.mxu3 %v5313_v63 }
 0x10c   :  { %7421 = vst [vmem:[#allocation18_spill] sm:$0xff] %v5163_v6  ;;  %724 = vmatmul.f32.gmra.mxu3 %v5163_v6  ;;  %747 = vmatmul.f32.gmra.mxu0 %v5163_v6 }
 0x10d   :  { %770 = vmatmul.f32.gmra.mxu1 %v5163_v6  ;;  %939 = vmatpush.msrb.mxu2 %v5325_v54 }
 0x10f   :  { %v5178_v20 = vpop.f32.mrf.mxu0 }
 0x110   :  { %7424 = vst [vmem:[#allocation21_spill] sm:$0xff] %v5178_v20  ;;  %v5184_v28 = vpop.f32.mrf.mxu1 }
 0x111   :  { %7427 = vst [vmem:[#allocation24_spill] sm:$0xff] %v5184_v28 }
 0x117   :  { %v5182_v27 = vpop.f32.mrf.mxu0 }
 0x118   :  { %7426 = vst [vmem:[#allocation23_spill] sm:$0xff] %v5182_v27  ;;  %v5188_v0 = vpop.f32.mrf.mxu1 }
 0x119   :  { %7429 = vst [vmem:[#allocation26_spill] sm:$0xff] %v5188_v0 }
 0x11f   :  { %v5186_v30 = vpop.f32.mrf.mxu0 }
 0x120   :  { %7428 = vst [vmem:[#allocation25_spill] sm:$0xff] %v5186_v30  ;;  %v5192_v2 = vpop.f32.mrf.mxu1 }
 0x121   :  { %7431 = vst [vmem:[#allocation28_spill] sm:$0xff] %v5192_v2 }
 0x127   :  { %v5190_v1 = vpop.f32.mrf.mxu0 }
 0x128   :  { %7430 = vst [vmem:[#allocation27_spill] sm:$0xff] %v5190_v1  ;;  %v5196_v4 = vpop.f32.mrf.mxu1 }
 0x129   :  { %7433 = vst [vmem:[#allocation30_spill] sm:$0xff] %v5196_v4 }
 0x12f   :  { %v5194_v3 = vpop.f32.mrf.mxu0 }
 0x130   :  { %7432 = vst [vmem:[#allocation29_spill] sm:$0xff] %v5194_v3  ;;  %v5200_v11 = vpop.f32.mrf.mxu1 }
 0x131   :  { %7435 = vst [vmem:[#allocation32_spill] sm:$0xff] %v5200_v11 }
 0x137   :  { %v5198_v7 = vpop.f32.mrf.mxu0 }
 0x138   :  { %7434 = vst [vmem:[#allocation31_spill] sm:$0xff] %v5198_v7  ;;  %v5204_v15 = vpop.f32.mrf.mxu1  ;;  %v336_v7 = vpop.f32.mrf.mxu2 }
 0x139   :  { %7437 = vst [vmem:[#allocation34_spill] sm:$0xff] %v5204_v15  ;;  %v337_v2 = vadd.f32 %v336_v7, %v5114_v24 }
 0x13f   :  { %v5202_v13 = vpop.f32.mrf.mxu0 }
 0x140   :  { %7436 = vst [vmem:[#allocation33_spill] sm:$0xff] %v5202_v13  ;;  %v5239_v35 = vpop.f32.mrf.mxu1 }
 0x141   :  { %7439 = vst [vmem:[#allocation36_spill] sm:$0xff] %v5239_v35 }
 0x147   :  { %v5211_v21 = vpop.f32.mrf.mxu0 }
 0x148   :  { %7438 = vst [vmem:[#allocation35_spill] sm:$0xff] %v5211_v21  ;;  %v5291_v52 = vpop.f32.mrf.mxu1 }
 0x149   :  { %7440 = vst [vmem:[#allocation37_spill] sm:$0xff] %v5291_v52 }
 0x181   :  { %v745_v37 = vpop.f32.mrf.mxu0 }
 0x182   :  { %v814_v38 = vadd.f32 %v745_v37, %v272_v34  ;;  %v5331_v37 = vld [vmem:[%s7358_s2 + $0x38] sm:$0xff] }
 0x183   :  { %962 = vmatpush.msra.mxu3 %v5331_v37 }
 0x184   :  { %v4027_v41 = vmul.f32 -1.442695, %v814_v38  ;;  %v5336_v38 = vld [vmem:[%s7358_s2 + $0x40] sm:$0xff] }
 0x185   :  { %985 = vmatpush.msra.mxu0 %v5336_v38 }
 0x186   :  { %4115 = vpow2.f32 %v4027_v41 }
 0x187   :  { %v722_v48 = vpop.f32.mrf.mxu3 }
 0x188   :  { %v774_v50 = vadd.f32 %v722_v48, %v207_v45  ;;  %v5343_v48 = vld [vmem:[%s7358_s2 + $0x18] sm:$0xff] }
 0x189   :  { %v748_v51 = vpop.f32.mrf.mxu0  ;;  %940 = vmatpush.msrb.mxu2 %v5343_v48 }
 0x18a   :  { %v4025_v53 = vmul.f32 -1.442695, %v774_v50  ;;  %v815_v55 = vadd.f32 %v748_v51, %v275_v49  ;;  %v5349_v49 = vld [vmem:[%s7358_s2 + $0x20] sm:$0xff]  ;;  %v5354_v50 = vld [vmem:[%s7358_s2 + $0x28] sm:$0xff] }
 0x18b   :  { %986 = vmatpush.msra.mxu0 %v5354_v50  ;;  %963 = vmatpush.msra.mxu3 %v5349_v49 }
 0x18c   :  { %v4116_v57 = vpop.eup %4115  ;;  %4117 = vpow2.f32 %v4025_v53  ;;  %v4028_v59 = vmul.f32 -1.442695, %v815_v55  ;;  %v5358_v55 = vpop.f32.mrf.mxu1 }
 0x18d   :  { %v5305_v61 = vadd.f32 1.0, %v4116_v57  ;;  %7441 = vst [vmem:[#allocation38_spill] sm:$0xff] %v5358_v55  ;;  %v5364_v57 = vld [vmem:[%s7358_s2] sm:$0xff] }
 0x18e   :  { %4119 = vpow2.f32 %v4028_v59  ;;  %v5369_v59 = vld [vmem:[%s7358_s2 + $0x8] sm:$0xff]  ;;  %941 = vmatpush.msrb.mxu2 %v5364_v57 }
 0x18f   :  { %v725_v12 = vpop.f32.mrf.mxu3  ;;  %4121 = vrcp.f32 %v5305_v61  ;;  %964 = vmatpush.msra.mxu3 %v5369_v59  ;;  %v835_v0 = vand.u32 2147483648, %v5305_v61  ;;  %vm829_vm6 = vweird.f32 %v5305_v61  ;;  %v833_v7 = vand.u32 2147483647, %v5305_v61 }
 0x190   :  { %v775_v34 = vadd.f32 %v725_v12, %v210_v62  ;;  %v5374_v62 = vld [vmem:[%s7358_s2 + $0x10] sm:$0xff]  ;;  %1170 = vmatpush.msra.mxu2 %v5209_v17 }
 0x191   :  { %987 = vmatpush.msra.mxu0 %v5374_v62  ;;  %vm834_vm10 = vcmp.eq.f32.partialorder %v833_v7, 8.507059e+37 }
 0x192   :  { %v4118_v41 = vpop.eup %4117  ;;  %v4026_v45 = vmul.f32 -1.442695, %v775_v34  ;;  %1171 = vmatpush.msra.mxu2 %v5217_v23 }
 0x193   :  { %v782_v51 = vadd.f32 1.0, %v4118_v41 }
 0x194   :  { %v4120_v53 = vpop.eup %4119  ;;  %4123 = vpow2.f32 %v4026_v45  ;;  %1172 = vmatpush.msra.mxu2 %v5223_v26  ;;  %v768_v13 = vpop.f32.mrf.mxu1 }
 0x195   :  { %4125 = vrcp.f32 %v782_v51  ;;  %v5376_v12 = vadd.f32 1.0, %v4120_v53  ;;  %v5380_v34 = vpop.eup %4121  ;;  %v795_v15 = vand.u32 2147483648, %v782_v51  ;;  %v793_v1 = vand.u32 2147483647, %v782_v51 }
 0x196   :  { %v825_v41 = vmul.f32 %v5380_v34, %v5305_v61  ;;  %1173 = vmatpush.msra.mxu2 %v5229_v31  ;;  %vm789_vm2 = vweird.f32 %v782_v51  ;;  %vm830_vm5 = vweird.f32 %v5380_v34 }
 0x197   :  { %4127 = vrcp.f32 %v5376_v12  ;;  %v796_v4 = vor.u32 1.1754944e-38, %v795_v15  ;;  %vm794_vm4 = vcmp.eq.f32.partialorder %v793_v1, 8.507059e+37  ;;  %vm5412_vm7 = vmor %vm829_vm6, %vm830_vm5  ;;  %vm844_vm14 = vweird.f32 %v5376_v12 }
 0x198   :  { %v826_v21 = vsub.f32 1.0, %v825_v41  ;;  %1174 = vmatpush.msra.mxu2 %v5235_v32 }
 0x19a   :  { %v4124_v45 = vpop.eup %4123  ;;  %1175 = vmatpush.msra.mxu2 %v5244_v36 }
 0x19b   :  { %v4126_v53 = vpop.eup %4125  ;;  %v5389_v39 = vadd.f32 1.0, %v4124_v45  ;;  %v827_v45 = vmul.f32 %v5380_v34, %v826_v21 }
 0x19c   :  { %v785_v55 = vmul.f32 %v4126_v53, %v782_v51  ;;  %vm790_vm1 = vweird.f32 %v4126_v53  ;;  %1176 = vmatpush.msra.mxu2 %v5250_v40  ;;  %v771_v15 = vpop.f32.mrf.mxu1 }
 0x19d   :  { %4129 = vrcp.f32 %v5389_v39  ;;  %v5393_v52 = vpop.eup %4127  ;;  %vm791_vm3 = vmor %vm789_vm2, %vm790_vm1  ;;  %v828_v51 = vadd.f32 %v5380_v34, %v827_v45  ;;  %v810_v1 = vand.u32 2147483648, %v5389_v39  ;;  %vm804_vm9 = vweird.f32 %v5389_v39 }
 0x19e   :  { %v786_v35 = vsub.f32 1.0, %v785_v55  ;;  %v840_v41 = vmul.f32 %v5393_v52, %v5376_v12  ;;  %v854_v55 = vadd.f32 %v5111_v22, %v768_v13  ;;  %1177 = vmatpush.msra.mxu2 %v5267_v44  ;;  %vm845_vm13 = vweird.f32 %v5393_v52 }
 0x19f   :  { %v832_v61 = vsel %vm5412_vm7, %v5380_v34, %v828_v51  ;;  %vm846_vm15 = vmor %vm844_vm14, %vm845_vm13 }
 0x1a0   :  { %v787_v3 = vmul.f32 %v4126_v53, %v786_v35  ;;  %v841_v21 = vsub.f32 1.0, %v840_v41  ;;  %1178 = vmatpush.msra.mxu2 %v5280_v47  ;;  %v339_v41 = vpop.f32.mrf.mxu2 }
 0x1a2   :  { %v788_v11 = vadd.f32 %v4126_v53, %v787_v3  ;;  %1179 = vmatpush.msra.mxu2 %v5288_v29  ;;  %v842_v45 = vmul.f32 %v5393_v52, %v841_v21  ;;  %v340_v21 = vadd.f32 %v339_v41, %v5114_v24 }
 0x1a3   :  { %v4130_v30 = vpop.eup %4129 }
 0x1a4   :  { %v800_v35 = vmul.f32 %v4130_v30, %v5389_v39  ;;  %v792_v27 = vsel %vm791_vm3, %v4126_v53, %v788_v11  ;;  %vm805_vm8 = vweird.f32 %v4130_v30  ;;  %v808_v53 = vand.u32 2147483647, %v5389_v39  ;;  %1180 = vmatpush.msra.mxu2 %v5297_v56 }
 0x1a5   :  { %v797_v3 = vsel %vm794_vm4, %v796_v4, %v792_v27  ;;  %vm806_vm11 = vmor %vm804_vm9, %vm805_vm8  ;;  %v843_v34 = vadd.f32 %v5393_v52, %v842_v45  ;;  %v850_v39 = vand.u32 2147483648, %v5376_v12 }
 0x1a6   :  { %v856_v20 = vmul.f32 %v854_v55, %v797_v3  ;;  %v801_v13 = vsub.f32 1.0, %v800_v35  ;;  %v836_v55 = vor.u32 1.1754944e-38, %v835_v0  ;;  %vm809_vm12 = vcmp.eq.f32.partialorder %v808_v53, 8.507059e+37  ;;  %1181 = vmatpush.msra.mxu2 %v5303_v60 }
 0x1a7   :  { %v851_v53 = vor.u32 1.1754944e-38, %v850_v39 }
 0x1a8   :  { %v858_v27 = vadd.f32 %v856_v20, %v337_v2  ;;  %v802_v4 = vmul.f32 %v4130_v30, %v801_v13  ;;  %v855_v20 = vadd.f32 %v5111_v22, %v771_v15  ;;  %v811_v2 = vor.u32 1.1754944e-38, %v810_v1  ;;  %1182 = vmatpush.msra.mxu2 %v5313_v63 }
 0x1a9   :  { %v837_v3 = vsel %vm834_vm10, %v836_v55, %v832_v61  ;;  %v848_v1 = vand.u32 2147483647, %v5376_v12 }
 0x1aa   :  { %4131 = vtanh.f32 %v858_v27  ;;  %v803_v35 = vadd.f32 %v4130_v30, %v802_v4  ;;  %v862_v7 = vsub.f32 1.0, %v837_v3  ;;  %1183 = vmatpush.msra.mxu2 %v5331_v37  ;;  %v866_v27 = vmul.f32 %v837_v3, %v5156_v58 }
 0x1ab   :  { %v847_v4 = vsel %vm846_vm15, %v5393_v52, %v843_v34  ;;  %vm849_vm0 = vcmp.eq.f32.partialorder %v848_v1, 8.507059e+37  ;;  %v278_v58 = vadd.f32 %v5172_v16, %v5079_v33 }
 0x1ac   :  { %v807_v13 = vsel %vm806_vm11, %v4130_v30, %v803_v35  ;;  %1184 = vmatpush.msra.mxu2 %v5349_v49  ;;  %v852_v61 = vsel %vm849_vm0, %v851_v53, %v847_v4  ;;  %v5502_v53 = vld [vmem:[%s7358_s2 + $0x138] sm:$0xff] }
 0x1ad   :  { %v812_v0 = vsel %vm809_vm12, %v811_v2, %v807_v13  ;;  %v863_v12 = vsub.f32 1.0, %v852_v61  ;;  %v867_v52 = vmul.f32 %v852_v61, %v5163_v6  ;;  %v5507_v61 = vld [vmem:[%s7358_s2 + $0x148] sm:$0xff]  ;;  %v213_v6 = vadd.f32 %v5161_v5, %v5068_v9 }
 0x1ae   :  { %v857_v51 = vmul.f32 %v855_v20, %v812_v0  ;;  %1185 = vmatpush.msra.mxu2 %v5369_v59  ;;  %v5449_v20 = vpop.f32.mrf.mxu2 }
 0x1b0   :  { %v4132_v11 = vpop.eup %4131  ;;  %v859_v30 = vadd.f32 %v857_v51, %v340_v21 }
 0x1b1   :  { %v864_v15 = vmul.f32 %v4132_v11, %v862_v7  ;;  %v5474_v11 = vld [vmem:[%s7358_s2 + $0x168] sm:$0xff] }
 0x1b2   :  { %4133 = vtanh.f32 %v859_v30  ;;  %v5479_v30 = vld [vmem:[%s7358_s2 + $0x178] sm:$0xff]  ;;  %1147 = vmatpush.msra.mxu1 %v5474_v11  ;;  %1368 = vmatpush.msrb.mxu0 %v5474_v11 }
 0x1b3   :  { %v5437_v45 = vadd.f32 %v866_v27, %v864_v15  ;;  %1193 = vmatpush.msrb.mxu3 %v5479_v30  ;;  %v5486_v15 = vld [vmem:[%s7358_s2 + $0x150] sm:$0xff]  ;;  %v5491_v27 = vld [vmem:[%s7358_s2 + $0x160] sm:$0xff] }
 0x1b4   :  { %1148 = vmatpush.msra.mxu1 %v5486_v15  ;;  %1369 = vmatpush.msrb.mxu0 %v5486_v15 }
 0x1b5   :  { %942 = vmatmul.f32.vlgmr.msrb.gmra.mxu2 %v5437_v45  ;;  %965 = vmatmul.f32.vlgmr.msra.gmra.mxu3 %v5437_v45 }
 0x1b6   :  { %988 = vmatmul.f32.vlgmr.msra.gmra.mxu0 %v5437_v45  ;;  %v5451_v2 = vpop.f32.mrf.mxu2  ;;  %1414 = vmatpush.msrb.mxu2 %v5479_v30 }
 0x1b7   :  { %1194 = vmatpush.msrb.mxu3 %v5491_v27  ;;  %1149 = vmatpush.msra.mxu1 %v5502_v53 }
 0x1b8   :  { %v4134_v41 = vpop.eup %4133  ;;  %1415 = vmatpush.msrb.mxu2 %v5491_v27  ;;  %1370 = vmatpush.msrb.mxu0 %v5502_v53 }
 0x1b9   :  { %v865_v55 = vmul.f32 %v4134_v41, %v863_v12  ;;  %1195 = vmatpush.msrb.mxu3 %v5507_v61  ;;  %v5516_v12 = vld [vmem:[%s7358_s2 + $0x120] sm:$0xff]  ;;  %v5521_v41 = vld [vmem:[%s7358_s2 + $0x130] sm:$0xff] }
 0x1ba   :  { %1416 = vmatpush.msrb.mxu2 %v5507_v61  ;;  %1150 = vmatpush.msra.mxu1 %v5516_v12 }
 0x1bb   :  { %v5444_v35 = vadd.f32 %v867_v52, %v865_v55  ;;  %1196 = vmatpush.msrb.mxu3 %v5521_v41  ;;  %v5530_v55 = vld [vmem:[%s7358_s2 + $0x108] sm:$0xff]  ;;  %v5535_v52 = vld [vmem:[%s7358_s2 + $0x118] sm:$0xff]  ;;  %1371 = vmatpush.msrb.mxu0 %v5516_v12 }
 0x1bc   :  { %1417 = vmatpush.msrb.mxu2 %v5521_v41  ;;  %1151 = vmatpush.msra.mxu1 %v5530_v55 }
 0x1bd   :  { %945 = vmatmul.f32.gmra.mxu2 %v5444_v35  ;;  %968 = vmatmul.f32.gmra.mxu3 %v5444_v35 }
 0x1be   :  { %991 = vmatmul.f32.gmra.mxu0 %v5444_v35  ;;  %v5453_v3 = vpop.f32.mrf.mxu2  ;;  %1197 = vmatpush.msrb.mxu3 %v5535_v52 }
 0x1bf   :  { %7444 = vst [vmem:[#allocation39_spill] sm:$0xff] %v5453_v3  ;;  %1372 = vmatpush.msrb.mxu0 %v5530_v55  ;;  %1418 = vmatpush.msrb.mxu2 %v5535_v52  ;;  %v5595_v3 = vld [vmem:[%s7358_s2 + $0xb8] sm:$0xff] }
 0x1c6   :  { %v5455_v21 = vpop.f32.mrf.mxu2 }
 0x1c7   :  { %7445 = vst [vmem:[#allocation40_spill] sm:$0xff] %v5455_v21  ;;  %v5590_v21 = vld [vmem:[%s7358_s2 + $0xa8] sm:$0xff] }
 0x1ce   :  { %v5457_v13 = vpop.f32.mrf.mxu2 }
 0x1cf   :  { %7446 = vst [vmem:[#allocation41_spill] sm:$0xff] %v5457_v13  ;;  %v5581_v13 = vld [vmem:[%s7358_s2 + $0xd0] sm:$0xff] }
 0x1d6   :  { %v5459_v0 = vpop.f32.mrf.mxu2 }
 0x1d7   :  { %7447 = vst [vmem:[#allocation42_spill] sm:$0xff] %v5459_v0  ;;  %v5576_v0 = vld [vmem:[%s7358_s2 + $0xc0] sm:$0xff] }
 0x1de   :  { %v5461_v34 = vpop.f32.mrf.mxu2 }
 0x1df   :  { %7448 = vst [vmem:[#allocation43_spill] sm:$0xff] %v5461_v34 }
 0x1e6   :  { %v5463_v39 = vpop.f32.mrf.mxu2 }
 0x1e7   :  { %7449 = vst [vmem:[#allocation44_spill] sm:$0xff] %v5463_v39 }
 0x1ee   :  { %v5465_v51 = vpop.f32.mrf.mxu2 }
 0x1ef   :  { %7450 = vst [vmem:[#allocation45_spill] sm:$0xff] %v5465_v51  ;;  %v5563_v51 = vld [vmem:[%s7358_s2 + $0xe8] sm:$0xff] }
 0x1f6   :  { %v5467_v7 = vpop.f32.mrf.mxu2 }
 0x1f7   :  { %7451 = vst [vmem:[#allocation46_spill] sm:$0xff] %v5467_v7  ;;  %v5558_v7 = vld [vmem:[%s7358_s2 + $0xd8] sm:$0xff] }
 0x1fe   :  { %v5469_v1 = vpop.f32.mrf.mxu2 }
 0x1ff   :  { %7452 = vst [vmem:[#allocation47_spill] sm:$0xff] %v5469_v1  ;;  %v5549_v1 = vld [vmem:[%s7358_s2 + $0x100] sm:$0xff] }
 0x200   :  { %1198 = vmatpush.msrb.mxu3 %v5549_v1  ;;  %1419 = vmatpush.msrb.mxu2 %v5549_v1 }
 0x202   :  { %1199 = vmatpush.msrb.mxu3 %v5563_v51  ;;  %1420 = vmatpush.msrb.mxu2 %v5563_v51 }
 0x204   :  { %1200 = vmatpush.msrb.mxu3 %v5581_v13  ;;  %1421 = vmatpush.msrb.mxu2 %v5581_v13 }
 0x206   :  { %v5497_v4 = vpop.f32.mrf.mxu2  ;;  %1201 = vmatpush.msrb.mxu3 %v5595_v3  ;;  %1422 = vmatpush.msrb.mxu2 %v5595_v3 }
 0x207   :  { %7453 = vst [vmem:[#allocation48_spill] sm:$0xff] %v5497_v4  ;;  %v5544_v4 = vld [vmem:[%s7358_s2 + $0xf0] sm:$0xff] }
 0x208   :  { %1152 = vmatpush.msra.mxu1 %v5544_v4  ;;  %1373 = vmatpush.msrb.mxu0 %v5544_v4 }
 0x20a   :  { %1153 = vmatpush.msra.mxu1 %v5558_v7  ;;  %1374 = vmatpush.msrb.mxu0 %v5558_v7 }
 0x20c   :  { %1154 = vmatpush.msra.mxu1 %v5576_v0  ;;  %1375 = vmatpush.msrb.mxu0 %v5576_v0 }
 0x20e   :  { %1155 = vmatpush.msra.mxu1 %v5590_v21  ;;  %1376 = vmatpush.msrb.mxu0 %v5590_v21 }
 0x238   :  { %v943_v39 = vpop.f32.mrf.mxu2  ;;  %v966_v34 = vpop.f32.mrf.mxu3 }
 0x239   :  { %v995_v5 = vadd.f32 %v943_v39, %v213_v6  ;;  %v1035_v16 = vadd.f32 %v966_v34, %v278_v58  ;;  %v5604_v34 = vld [vmem:[%s7358_s2 + $0x90] sm:$0xff]  ;;  %v5609_v39 = vld [vmem:[%s7358_s2 + $0xa0] sm:$0xff] }
 0x23a   :  { %1156 = vmatpush.msra.mxu1 %v5604_v34  ;;  %1202 = vmatpush.msrb.mxu3 %v5609_v39 }
 0x23b   :  { %v4029_v6 = vmul.f32 -1.442695, %v995_v5  ;;  %v4031_v58 = vmul.f32 -1.442695, %v1035_v16  ;;  %v5618_v5 = vld [vmem:[%s7358_s2 + $0x88] sm:$0xff]  ;;  %1377 = vmatpush.msrb.mxu0 %v5604_v34  ;;  %1423 = vmatpush.msrb.mxu2 %v5609_v39  ;;  %v216_v16 = vadd.f32 %v5168_v10, %v5068_v9 }
 0x23c   :  { %1157 = vmatpush.msra.mxu1 %v5256_v42  ;;  %1203 = vmatpush.msrb.mxu3 %v5618_v5 }
 0x23d   :  { %4135 = vpow2.f32 %v4029_v6  ;;  %v281_v6 = vadd.f32 %v5176_v19, %v5079_v33  ;;  %1378 = vmatpush.msrb.mxu0 %v5256_v42  ;;  %1424 = vmatpush.msrb.mxu2 %v5618_v5 }
 0x23e   :  { %4137 = vpow2.f32 %v4031_v58  ;;  %1158 = vmatpush.msra.mxu1 %v5261_v43  ;;  %1204 = vmatpush.msrb.mxu3 %v5631_v18 }
 0x23f   :  { %1379 = vmatpush.msrb.mxu0 %v5261_v43  ;;  %1425 = vmatpush.msrb.mxu2 %v5631_v18 }
 0x240   :  { %v946_v58 = vpop.f32.mrf.mxu2  ;;  %v969_v28 = vpop.f32.mrf.mxu3  ;;  %1159 = vmatpush.msra.mxu1 %v5274_v46  ;;  %1205 = vmatpush.msrb.mxu3 %v5318_v8 }
 0x241   :  { %v996_v25 = vadd.f32 %v946_v58, %v216_v16  ;;  %v1036_v10 = vadd.f32 %v969_v28, %v281_v6  ;;  %1380 = vmatpush.msrb.mxu0 %v5274_v46  ;;  %1426 = vmatpush.msrb.mxu2 %v5318_v8  ;;  %v343_v6 = vadd.f32 %v5449_v20, %v5114_v24 }
 0x242   :  { %1160 = vmatpush.msra.mxu1 %v5325_v54  ;;  %1206 = vmatpush.msrb.mxu3 %v5336_v38 }
 0x243   :  { %v4136_v19 = vpop.eup %4135  ;;  %v4030_v33 = vmul.f32 -1.442695, %v996_v25  ;;  %v4032_v9 = vmul.f32 -1.442695, %v1036_v10  ;;  %1381 = vmatpush.msrb.mxu0 %v5325_v54  ;;  %1427 = vmatpush.msrb.mxu2 %v5336_v38  ;;  %v989_v38 = vpop.f32.mrf.mxu0 }
 0x244   :  { %v4138_v14 = vpop.eup %4137  ;;  %v1003_v42 = vadd.f32 1.0, %v4136_v19  ;;  %1161 = vmatpush.msra.mxu1 %v5343_v48  ;;  %1207 = vmatpush.msrb.mxu3 %v5354_v50 }
 0x245   :  { %v5643_v28 = vadd.f32 1.0, %v4138_v14  ;;  %4139 = vpow2.f32 %v4030_v33  ;;  %1382 = vmatpush.msrb.mxu0 %v5343_v48  ;;  %1428 = vmatpush.msrb.mxu2 %v5354_v50 }
 0x246   :  { %4141 = vrcp.f32 %v1003_v42  ;;  %1162 = vmatpush.msra.mxu1 %v5364_v57  ;;  %1208 = vmatpush.msrb.mxu3 %v5374_v62  ;;  %vm1010_vm2 = vweird.f32 %v1003_v42 }
 0x247   :  { %4143 = vrcp.f32 %v5643_v28  ;;  %1383 = vmatpush.msrb.mxu0 %v5364_v57  ;;  %1429 = vmatpush.msrb.mxu2 %v5374_v62  ;;  %v1014_v57 = vand.u32 2147483647, %v1003_v42  ;;  %v1056_v58 = vand.u32 2147483648, %v5643_v28  ;;  %vm1050_vm6 = vweird.f32 %v5643_v28 }
 0x248   :  { %4145 = vpow2.f32 %v4032_v9  ;;  %1391 = vmatpush.msrb.mxu1 %v5209_v17  ;;  %1589 = vmatpush.msra.mxu3 %v5474_v11 }
 0x249   :  { %vm1015_vm4 = vcmp.eq.f32.partialorder %v1014_v57, 8.507059e+37 }
 0x24a   :  { %1392 = vmatpush.msrb.mxu1 %v5217_v23  ;;  %1590 = vmatpush.msra.mxu3 %v5486_v15  ;;  %v1016_v23 = vand.u32 2147483648, %v1003_v42 }
 0x24b   :  { %v4140_v33 = vpop.eup %4139 }
 0x24c   :  { %v4142_v14 = vpop.eup %4141  ;;  %v5660_v25 = vadd.f32 1.0, %v4140_v33  ;;  %1393 = vmatpush.msrb.mxu1 %v5223_v26  ;;  %1591 = vmatpush.msra.mxu3 %v5502_v53  ;;  %v1017_v15 = vor.u32 1.1754944e-38, %v1016_v23 }
 0x24d   :  { %v5663_v9 = vpop.eup %4143  ;;  %v1006_v43 = vmul.f32 %v4142_v14, %v1003_v42  ;;  %vm1011_vm1 = vweird.f32 %v4142_v14 }
 0x24e   :  { %v4146_v46 = vpop.eup %4145  ;;  %v1046_v17 = vmul.f32 %v5663_v9, %v5643_v28  ;;  %4147 = vrcp.f32 %v5660_v25  ;;  %1394 = vmatpush.msrb.mxu1 %v5229_v31  ;;  %1592 = vmatpush.msra.mxu3 %v5516_v12  ;;  %vm1012_vm3 = vmor %vm1010_vm2, %vm1011_vm1  ;;  %v1075_v31 = vadd.f32 %v5111_v22, %v989_v38  ;;  %vm1051_vm5 = vweird.f32 %v5663_v9 }
 0x24f   :  { %v1007_v8 = vsub.f32 1.0, %v1006_v43  ;;  %v5670_v54 = vadd.f32 1.0, %v4146_v46  ;;  %v1031_v19 = vand.u32 2147483648, %v5660_v25  ;;  %vm5695_vm7 = vmor %vm1050_vm6, %vm1051_vm5  ;;  %vm1025_vm9 = vweird.f32 %v5660_v25 }
 0x250   :  { %v1047_v48 = vsub.f32 1.0, %v1046_v17  ;;  %1395 = vmatpush.msrb.mxu1 %v5235_v32  ;;  %1593 = vmatpush.msra.mxu3 %v5530_v55 }
 0x251   :  { %v1008_v50 = vmul.f32 %v4142_v14, %v1007_v8  ;;  %4149 = vrcp.f32 %v5670_v54  ;;  %v1032_v17 = vor.u32 1.1754944e-38, %v1031_v19  ;;  %vm1065_vm14 = vweird.f32 %v5670_v54 }
 0x252   :  { %v1048_v62 = vmul.f32 %v5663_v9, %v1047_v48  ;;  %1396 = vmatpush.msrb.mxu1 %v5244_v36  ;;  %1594 = vmatpush.msra.mxu3 %v5544_v4  ;;  %v1054_v4 = vand.u32 2147483647, %v5643_v28  ;;  %v992_v28 = vpop.f32.mrf.mxu0  ;;  %v1071_v48 = vand.u32 2147483648, %v5670_v54 }
 0x253   :  { %v1009_v26 = vadd.f32 %v4142_v14, %v1008_v50 }
 0x254   :  { %v4148_v11 = vpop.eup %4147  ;;  %v1049_v32 = vadd.f32 %v5663_v9, %v1048_v62  ;;  %1397 = vmatpush.msrb.mxu1 %v5250_v40  ;;  %1595 = vmatpush.msra.mxu3 %v5558_v7  ;;  %vm1055_vm10 = vcmp.eq.f32.partialorder %v1054_v4, 8.507059e+37 }
 0x255   :  { %v1013_v53 = vsel %vm1012_vm3, %v4142_v14, %v1009_v26  ;;  %v1021_v16 = vmul.f32 %v4148_v11, %v5660_v25  ;;  %vm1026_vm8 = vweird.f32 %v4148_v11  ;;  %v1029_v14 = vand.u32 2147483647, %v5660_v25 }
 0x256   :  { %v1018_v12 = vsel %vm1015_vm4, %v1017_v15, %v1013_v53  ;;  %1398 = vmatpush.msrb.mxu1 %v5267_v44  ;;  %1596 = vmatpush.msra.mxu3 %v5576_v0  ;;  %v1053_v7 = vsel %vm5695_vm7, %v5663_v9, %v1049_v32  ;;  %v1057_v44 = vor.u32 1.1754944e-38, %v1056_v58  ;;  %vm1027_vm11 = vmor %vm1025_vm9, %vm1026_vm8  ;;  %v1076_v9 = vadd.f32 %v5111_v22, %v992_v28 }
 0x257   :  { %v4150_v55 = vpop.eup %4149  ;;  %v1077_v36 = vmul.f32 %v1075_v31, %v1018_v12  ;;  %v1022_v10 = vsub.f32 1.0, %v1021_v16  ;;  %vm1030_vm12 = vcmp.eq.f32.partialorder %v1029_v14, 8.507059e+37  ;;  %v1069_v22 = vand.u32 2147483647, %v5670_v54 }
 0x258   :  { %v1061_v42 = vmul.f32 %v4150_v55, %v5670_v54  ;;  %1399 = vmatpush.msrb.mxu1 %v5280_v47  ;;  %1597 = vmatpush.msra.mxu3 %v5590_v21  ;;  %v1058_v0 = vsel %vm1055_vm10, %v1057_v44, %v1053_v7  ;;  %vm1066_vm13 = vweird.f32 %v4150_v55  ;;  %v346_v21 = vadd.f32 %v5451_v2, %v5114_v24 }
 0x259   :  { %v1079_v40 = vadd.f32 %v1077_v36, %v343_v6  ;;  %v1023_v20 = vmul.f32 %v4148_v11, %v1022_v10  ;;  %v1083_v50 = vsub.f32 1.0, %v1058_v0  ;;  %vm1067_vm15 = vmor %vm1065_vm14, %vm1066_vm13  ;;  %v1087_v62 = vmul.f32 %v1058_v0, %v5437_v45 }
 0x25a   :  { %v1062_v43 = vsub.f32 1.0, %v1061_v42  ;;  %1400 = vmatpush.msrb.mxu1 %v5288_v29  ;;  %1598 = vmatpush.msra.mxu3 %v5604_v34  ;;  %v1072_v2 = vor.u32 1.1754944e-38, %v1071_v48  ;;  %vm1070_vm0 = vcmp.eq.f32.partialorder %v1069_v22, 8.507059e+37 }
 0x25b   :  { %4151 = vtanh.f32 %v1079_v40  ;;  %v1024_v46 = vadd.f32 %v4148_v11, %v1023_v20 }
 0x25c   :  { %v1063_v8 = vmul.f32 %v4150_v55, %v1062_v43  ;;  %1401 = vmatpush.msrb.mxu1 %v5297_v56 }
 0x25d   :  { %v1028_v38 = vsel %vm1027_vm11, %v4148_v11, %v1024_v46 }
 0x25e   :  { %v1033_v47 = vsel %vm1030_vm12, %v1032_v17, %v1028_v38  ;;  %v1064_v23 = vadd.f32 %v4150_v55, %v1063_v8  ;;  %1402 = vmatpush.msrb.mxu1 %v5303_v60 }
 0x25f   :  { %v1078_v25 = vmul.f32 %v1076_v9, %v1033_v47 }
 0x260   :  { %v1068_v56 = vsel %vm1067_vm15, %v4150_v55, %v1064_v23  ;;  %1403 = vmatpush.msrb.mxu1 %v5313_v63  ;;  %v7461_v55 = vld [vmem:[#allocation24_spill] sm:$0xff] }
 0x261   :  { %v4152_v29 = vpop.eup %4151  ;;  %v1080_v34 = vadd.f32 %v1078_v25, %v346_v21  ;;  %v1073_v11 = vsel %vm1070_vm0, %v1072_v2, %v1068_v56  ;;  %v5759_v25 = vld [vmem:[%s7360_s4] ss:$0 sm:$0xff] }
 0x262   :  { %v1085_v57 = vmul.f32 %v4152_v29, %v1083_v50  ;;  %1404 = vmatpush.msrb.mxu1 %v5331_v37  ;;  %v1084_v60 = vsub.f32 1.0, %v1073_v11  ;;  %v1088_v15 = vmul.f32 %v1073_v11, %v5444_v35  ;;  %v7456_v37 = vld [vmem:[#allocation14_spill] sm:$0xff]  ;;  %v7462_v50 = vld [vmem:[#allocation39_spill] sm:$0xff] }
 0x263   :  { %4153 = vtanh.f32 %v1080_v34  ;;  %v349_v22 = vadd.f32 %v7462_v50, %v5114_v24 }
 0x264   :  { %v5719_v26 = vadd.f32 %v1087_v62, %v1085_v57  ;;  %1405 = vmatpush.msrb.mxu1 %v5349_v49  ;;  %v7457_v49 = vld [vmem:[#allocation19_spill] sm:$0xff] }
 0x266   :  { %1163 = vmatmul.f32.vlgmr.msra.gmra.mxu1 %v5719_v26  ;;  %1186 = vmatmul.f32.vlgmr.msra.gmra.mxu2 %v5719_v26 }
 0x267   :  { %1209 = vmatmul.f32.vlgmr.msrb.gmra.mxu3 %v5719_v26  ;;  %1406 = vmatpush.msrb.mxu1 %v5369_v59  ;;  %v219_v59 = vadd.f32 %v7457_v49, %v7456_v37 }
 0x269   :  { %v4154_v54 = vpop.eup %4153  ;;  %1635 = vmatpush.msra.mxu1 %v5479_v30 }
 0x26a   :  { %v1086_v63 = vmul.f32 %v4154_v54, %v1084_v60 }
 0x26b   :  { %1636 = vmatpush.msra.mxu1 %v5491_v27 }
 0x26c   :  { %v5729_v31 = vadd.f32 %v1088_v15, %v1086_v63 }
 0x26d   :  { %1637 = vmatpush.msra.mxu1 %v5507_v61 }
 0x26e   :  { %1166 = vmatmul.f32.gmra.mxu1 %v5729_v31  ;;  %1189 = vmatmul.f32.gmra.mxu2 %v5729_v31 }
 0x26f   :  { %1212 = vmatmul.f32.gmra.mxu3 %v5729_v31  ;;  %1638 = vmatpush.msra.mxu1 %v5521_v41  ;;  %v7458_v41 = vld [vmem:[#allocation15_spill] sm:$0xff] }
 0x270   :  { %v287_v6 = vadd.f32 %v7461_v55, %v7458_v41 }
 0x271   :  { %1639 = vmatpush.msra.mxu1 %v5535_v52 }
 0x273   :  { %1640 = vmatpush.msra.mxu1 %v5549_v1  ;;  %v7459_v1 = vld [vmem:[#allocation22_spill] sm:$0xff] }
 0x274   :  { %v284_v52 = vadd.f32 %v7459_v1, %v7458_v41 }
 0x275   :  { %1641 = vmatpush.msra.mxu1 %v5563_v51 }
 0x277   :  { %1642 = vmatpush.msra.mxu1 %v5581_v13  ;;  %v7460_v13 = vld [vmem:[#allocation20_spill] sm:$0xff] }
 0x279   :  { %1643 = vmatpush.msra.mxu1 %v5595_v3  ;;  %v222_v3 = vadd.f32 %v7460_v13, %v7456_v37 }
 0x27b   :  { %1644 = vmatpush.msra.mxu1 %v5609_v39 }
 0x27d   :  { %1645 = vmatpush.msra.mxu1 %v5618_v5 }
 0x27f   :  { %1646 = vmatpush.msra.mxu1 %v5631_v18 }
 0x2e3   :  { %v1164_v30 = vpop.f32.mrf.mxu1 }
 0x2e4   :  { %v1216_v27 = vadd.f32 %v1164_v30, %v219_v59 }
 0x2e6   :  { %v4033_v61 = vmul.f32 -1.442695, %v1216_v27 }
 0x2e8   :  { %4155 = vpow2.f32 %v4033_v61 }
 0x2e9   :  { %v1187_v51 = vpop.f32.mrf.mxu2 }
 0x2ea   :  { %v1256_v53 = vadd.f32 %v1187_v51, %v284_v52  ;;  %v1210_v43 = vpop.f32.mrf.mxu3 }
 0x2eb   :  { %v1167_v39 = vpop.f32.mrf.mxu1  ;;  %v1296_v48 = vadd.f32 %v5759_v25, %v1210_v43 }
 0x2ec   :  { %v4035_v16 = vmul.f32 -1.442695, %v1256_v53  ;;  %v1217_v5 = vadd.f32 %v1167_v39, %v222_v3 }
 0x2ee   :  { %v4156_v12 = vpop.eup %4155  ;;  %4157 = vpow2.f32 %v4035_v16  ;;  %v4034_v18 = vmul.f32 -1.442695, %v1217_v5 }
 0x2ef   :  { %v1224_v32 = vadd.f32 1.0, %v4156_v12  ;;  %v7463_v12 = vld [vmem:[#allocation40_spill] sm:$0xff] }
 0x2f0   :  { %4159 = vpow2.f32 %v4034_v18  ;;  %v352_v18 = vadd.f32 %v7463_v12, %v5114_v24 }
 0x2f1   :  { %4161 = vrcp.f32 %v1224_v32  ;;  %v1190_v36 = vpop.f32.mrf.mxu2  ;;  %v1237_v7 = vand.u32 2147483648, %v1224_v32  ;;  %v1235_v46 = vand.u32 2147483647, %v1224_v32  ;;  %vm1231_vm2 = vweird.f32 %v1224_v32 }
 0x2f2   :  { %v1257_v58 = vadd.f32 %v1190_v36, %v287_v6  ;;  %v1213_v1 = vpop.f32.mrf.mxu3 }
 0x2f3   :  { %v1238_v38 = vor.u32 1.1754944e-38, %v1237_v7  ;;  %vm1236_vm4 = vcmp.eq.f32.partialorder %v1235_v46, 8.507059e+37  ;;  %v1297_v39 = vadd.f32 %v5759_v25, %v1213_v1 }
 0x2f4   :  { %v4158_v10 = vpop.eup %4157  ;;  %v4036_v4 = vmul.f32 -1.442695, %v1257_v58 }
 0x2f5   :  { %v1264_v19 = vadd.f32 1.0, %v4158_v10 }
 0x2f6   :  { %v4160_v42 = vpop.eup %4159  ;;  %4163 = vpow2.f32 %v4036_v4 }
 0x2f7   :  { %v4162_v40 = vpop.eup %4161  ;;  %4165 = vrcp.f32 %v1264_v19  ;;  %v1225_v20 = vadd.f32 1.0, %v4160_v42  ;;  %v1277_v62 = vand.u32 2147483648, %v1264_v19  ;;  %v1275_v2 = vand.u32 2147483647, %v1264_v19 }
 0x2f8   :  { %v1227_v33 = vmul.f32 %v4162_v40, %v1224_v32  ;;  %vm1232_vm1 = vweird.f32 %v4162_v40  ;;  %vm1271_vm6 = vweird.f32 %v1264_v19 }
 0x2f9   :  { %4167 = vrcp.f32 %v1225_v20  ;;  %vm1233_vm3 = vmor %vm1231_vm2, %vm1232_vm1  ;;  %v1252_v63 = vand.u32 2147483648, %v1225_v20  ;;  %v1250_v59 = vand.u32 2147483647, %v1225_v20  ;;  %v1278_v30 = vor.u32 1.1754944e-38, %v1277_v62 }
 0x2fa   :  { %v1228_v14 = vsub.f32 1.0, %v1227_v33  ;;  %vm1276_vm9 = vcmp.eq.f32.partialorder %v1275_v2, 8.507059e+37  ;;  %vm1246_vm10 = vweird.f32 %v1225_v20 }
 0x2fb   :  { %v1253_v3 = vor.u32 1.1754944e-38, %v1252_v63  ;;  %vm1251_vm12 = vcmp.eq.f32.partialorder %v1250_v59, 8.507059e+37  ;;  %v5850_v63 = vld [vmem:[%s7358_s2 + $0x78] sm:$0xff] }
 0x2fc   :  { %v4164_v28 = vpop.eup %4163  ;;  %v1229_v44 = vmul.f32 %v4162_v40, %v1228_v14  ;;  %1599 = vmatpush.msra.mxu3 %v5850_v63 }
 0x2fd   :  { %v4166_v17 = vpop.eup %4165  ;;  %v5753_v8 = vadd.f32 1.0, %v4164_v28 }
 0x2fe   :  { %v1267_v0 = vmul.f32 %v4166_v17, %v1264_v19  ;;  %v1230_v9 = vadd.f32 %v4162_v40, %v1229_v44  ;;  %vm1272_vm5 = vweird.f32 %v4166_v17 }
 0x2ff   :  { %4169 = vrcp.f32 %v5753_v8  ;;  %v4168_v47 = vpop.eup %4167  ;;  %vm1273_vm7 = vmor %vm1271_vm6, %vm1272_vm5  ;;  %v1292_v55 = vand.u32 2147483648, %v5753_v8  ;;  %vm1286_vm14 = vweird.f32 %v5753_v8  ;;  %v1290_v10 = vand.u32 2147483647, %v5753_v8 }
 0x300   :  { %v1268_v23 = vsub.f32 1.0, %v1267_v0  ;;  %v1234_v21 = vsel %vm1233_vm3, %v4162_v40, %v1230_v9  ;;  %v1242_v34 = vmul.f32 %v4168_v47, %v1225_v20  ;;  %vm1247_vm8 = vweird.f32 %v4168_v47  ;;  %v5798_v0 = vld [vmem:[%s7358_s2 + $0x140] sm:$0xff]  ;;  %v5804_v9 = vld [vmem:[%s7358_s2 + $0x128] sm:$0xff] }
 0x301   :  { %v1239_v29 = vsel %vm1236_vm4, %v1238_v38, %v1234_v21  ;;  %vm1248_vm11 = vmor %vm1246_vm10, %vm1247_vm8  ;;  %v1293_v20 = vor.u32 1.1754944e-38, %v1292_v55  ;;  %vm1291_vm0 = vcmp.eq.f32.partialorder %v1290_v10, 8.507059e+37  ;;  %v5810_v38 = vld [vmem:[%s7358_s2 + $0x110] sm:$0xff]  ;;  %v5908_v10 = vld [vmem:[%s7358_s2 + $0x40] sm:$0xff] }
 0x302   :  { %v1269_v57 = vmul.f32 %v4166_v17, %v1268_v23  ;;  %v1298_v56 = vmul.f32 %v1296_v48, %v1239_v29  ;;  %v1243_v11 = vsub.f32 1.0, %v1242_v34  ;;  %v7464_v23 = vld [vmem:[#allocation21_spill] sm:$0xff]  ;;  %v7465_v48 = vld [vmem:[#allocation26_spill] sm:$0xff] }
 0x303   :  { %v225_v21 = vadd.f32 %v7464_v23, %v7456_v37  ;;  %v290_v50 = vadd.f32 %v7465_v48, %v7458_v41 }
 0x304   :  { %v1270_v60 = vadd.f32 %v4166_v17, %v1269_v57  ;;  %v1300_v54 = vadd.f32 %v1298_v56, %v349_v22  ;;  %v1244_v49 = vmul.f32 %v4168_v47, %v1243_v11  ;;  %v5826_v22 = vld [vmem:[%s7358_s2 + $0xe0] sm:$0xff]  ;;  %v5832_v56 = vld [vmem:[%s7358_s2 + $0xc8] sm:$0xff] }
 0x305   :  { %v4170_v15 = vpop.eup %4169 }
 0x306   :  { %v1274_v27 = vsel %vm1273_vm7, %v4166_v17, %v1270_v60  ;;  %4171 = vtanh.f32 %v1300_v54  ;;  %v1282_v61 = vmul.f32 %v4170_v15, %v5753_v8  ;;  %v1245_v52 = vadd.f32 %v4168_v47, %v1244_v49  ;;  %v5786_v17 = vld [vmem:[%s7358_s2 + $0x170] sm:$0xff]  ;;  %v5792_v8 = vld [vmem:[%s7358_s2 + $0x158] sm:$0xff] }
 0x307   :  { %v1279_v51 = vsel %vm1276_vm9, %v1278_v30, %v1274_v27  ;;  %vm1287_vm13 = vweird.f32 %v4170_v15  ;;  %1612 = vmatpush.msra.mxu0 %v5786_v17  ;;  %v5838_v60 = vld [vmem:[%s7358_s2 + $0xb0] sm:$0xff]  ;;  %v5844_v54 = vld [vmem:[%s7358_s2 + $0x98] sm:$0xff] }
 0x308   :  { %v1283_v13 = vsub.f32 1.0, %v1282_v61  ;;  %v1249_v53 = vsel %vm1248_vm11, %v4168_v47, %v1245_v52  ;;  %v1304_v32 = vsub.f32 1.0, %v1279_v51  ;;  %v1308_v19 = vmul.f32 %v1279_v51, %v5719_v26  ;;  %vm1288_vm15 = vmor %vm1286_vm14, %vm1287_vm13  ;;  %v5816_v47 = vld [vmem:[%s7358_s2 + $0xf8] sm:$0xff]  ;;  %v7466_v49 = vld [vmem:[#allocation23_spill] sm:$0xff] }
 0x309   :  { %v1254_v5 = vsel %vm1251_vm12, %v1253_v3, %v1249_v53  ;;  %1613 = vmatpush.msra.mxu0 %v5792_v8  ;;  %v228_v59 = vadd.f32 %v7466_v49, %v7456_v37  ;;  %v7467_v30 = vld [vmem:[#allocation28_spill] sm:$0xff]  ;;  %v5866_v52 = vld [vmem:[%s7358_s2 + $0x60] sm:$0xff]  ;;  %v5871_v51 = vld [vmem:[%s7358_s2 + $0x68] sm:$0xff] }
 0x30a   :  { %v1284_v16 = vmul.f32 %v4170_v15, %v1283_v13  ;;  %v1299_v6 = vmul.f32 %v1297_v39, %v1254_v5  ;;  %v293_v27 = vadd.f32 %v7467_v30, %v7458_v41  ;;  %1600 = vmatpush.msra.mxu3 %v5866_v52  ;;  %v5878_v39 = vld [vmem:[%s7358_s2 + $0x48] sm:$0xff]  ;;  %v5888_v5 = vld [vmem:[%s7358_s2 + $0x58] sm:$0xff] }
 0x30b   :  { %1614 = vmatpush.msra.mxu0 %v5798_v0  ;;  %1647 = vmatpush.msra.mxu1 %v5888_v5 }
 0x30c   :  { %v4172_v36 = vpop.eup %4171  ;;  %v1285_v58 = vadd.f32 %v4170_v15, %v1284_v16  ;;  %v1301_v42 = vadd.f32 %v1299_v6, %v352_v18  ;;  %v5883_v16 = vld [vmem:[%s7358_s2 + $0x50] sm:$0xff]  ;;  %1601 = vmatpush.msra.mxu3 %v5878_v39 }
 0x30d   :  { %v1306_v4 = vmul.f32 %v4172_v36, %v1304_v32  ;;  %1615 = vmatpush.msra.mxu0 %v5804_v9  ;;  %v5898_v36 = vld [vmem:[%s7358_s2 + $0x30] sm:$0xff]  ;;  %1648 = vmatpush.msra.mxu1 %v5908_v10 }
 0x30e   :  { %v1289_v40 = vsel %vm1288_vm15, %v4170_v15, %v1285_v58  ;;  %4173 = vtanh.f32 %v1301_v42  ;;  %v5855_v15 = vld [vmem:[%s7358_s2 + $0x80] sm:$0xff]  ;;  %v5903_v58 = vld [vmem:[%s7358_s2 + $0x38] sm:$0xff]  ;;  %1602 = vmatpush.msra.mxu3 %v5898_v36  ;;  %v5927_v42 = vld [vmem:[%s7358_s2 + $0x28] sm:$0xff] }
 0x30f   :  { %v5772_v33 = vadd.f32 %v1308_v19, %v1306_v4  ;;  %v1294_v14 = vsel %vm1291_vm0, %v1293_v20, %v1289_v40  ;;  %1616 = vmatpush.msra.mxu0 %v5810_v38  ;;  %v5917_v4 = vld [vmem:[%s7358_s2 + $0x18] sm:$0xff]  ;;  %v5922_v19 = vld [vmem:[%s7358_s2 + $0x20] sm:$0xff]  ;;  %1649 = vmatpush.msra.mxu1 %v5927_v42  ;;  %v5940_v20 = vld [vmem:[%s7358_s2 + $0x8] sm:$0xff] }
 0x310   :  { %v1305_v7 = vsub.f32 1.0, %v1294_v14  ;;  %v1309_v44 = vmul.f32 %v1294_v14, %v5729_v31  ;;  %1603 = vmatpush.msra.mxu3 %v5917_v4  ;;  %v5935_v40 = vld [vmem:[%s7358_s2] sm:$0xff]  ;;  %v5945_v14 = vld [vmem:[%s7358_s2 + $0x10] sm:$0xff] }
 0x311   :  { %1384 = vmatmul.f32.vlgmr.msrb.gmra.mxu0 %v5772_v33  ;;  %1407 = vmatmul.f32.vlgmr.msrb.gmra.mxu1 %v5772_v33 }
 0x312   :  { %1430 = vmatmul.f32.vlgmr.msrb.gmra.mxu2 %v5772_v33  ;;  %1617 = vmatpush.msra.mxu0 %v5816_v47 }
 0x313   :  { %1604 = vmatpush.msra.mxu3 %v5935_v40  ;;  %1650 = vmatpush.msra.mxu1 %v5945_v14 }
 0x314   :  { %v4174_v28 = vpop.eup %4173  ;;  %1618 = vmatpush.msra.mxu0 %v5826_v22 }
 0x315   :  { %v1307_v43 = vmul.f32 %v4174_v28, %v1305_v7  ;;  %1833 = vmatpush.msrb.mxu3 %v5786_v17 }
 0x316   :  { %1619 = vmatpush.msra.mxu0 %v5832_v56 }
 0x317   :  { %v5778_v46 = vadd.f32 %v1309_v44, %v1307_v43  ;;  %1834 = vmatpush.msrb.mxu3 %v5792_v8 }
 0x318   :  { %1620 = vmatpush.msra.mxu0 %v5838_v60 }
 0x319   :  { %1387 = vmatmul.f32.gmra.mxu0 %v5778_v46  ;;  %1410 = vmatmul.f32.gmra.mxu1 %v5778_v46 }
 0x31a   :  { %1433 = vmatmul.f32.gmra.mxu2 %v5778_v46  ;;  %1621 = vmatpush.msra.mxu0 %v5844_v54 }
 0x31b   :  { %1835 = vmatpush.msrb.mxu3 %v5798_v0 }
 0x31c   :  { %1622 = vmatpush.msra.mxu0 %v5855_v15 }
 0x31d   :  { %1836 = vmatpush.msrb.mxu3 %v5804_v9 }
 0x31e   :  { %1623 = vmatpush.msra.mxu0 %v5871_v51 }
 0x31f   :  { %1837 = vmatpush.msrb.mxu3 %v5810_v38 }
 0x320   :  { %1624 = vmatpush.msra.mxu0 %v5883_v16 }
 0x321   :  { %1838 = vmatpush.msrb.mxu3 %v5816_v47 }
 0x322   :  { %1625 = vmatpush.msra.mxu0 %v5903_v58 }
 0x323   :  { %1839 = vmatpush.msrb.mxu3 %v5826_v22 }
 0x324   :  { %1626 = vmatpush.msra.mxu0 %v5922_v19 }
 0x325   :  { %1840 = vmatpush.msrb.mxu3 %v5832_v56 }
 0x326   :  { %1627 = vmatpush.msra.mxu0 %v5940_v20 }
 0x327   :  { %1841 = vmatpush.msrb.mxu3 %v5838_v60 }
 0x329   :  { %1842 = vmatpush.msrb.mxu3 %v5844_v54 }
 0x32b   :  { %1843 = vmatpush.msrb.mxu3 %v5855_v15 }
 0x32d   :  { %1844 = vmatpush.msrb.mxu3 %v5871_v51 }
 0x32f   :  { %1845 = vmatpush.msrb.mxu3 %v5883_v16 }
 0x331   :  { %1846 = vmatpush.msrb.mxu3 %v5903_v58 }
 0x333   :  { %1847 = vmatpush.msrb.mxu3 %v5922_v19 }
 0x335   :  { %1848 = vmatpush.msrb.mxu3 %v5940_v20 }
 0x38e   :  { %v1385_v29 = vpop.f32.mrf.mxu0  ;;  %v1408_v34 = vpop.f32.mrf.mxu1 }
 0x38f   :  { %v1437_v57 = vadd.f32 %v1385_v29, %v225_v21  ;;  %v1477_v62 = vadd.f32 %v1408_v34, %v290_v50 }
 0x391   :  { %v4037_v2 = vmul.f32 -1.442695, %v1437_v57  ;;  %v4039_v11 = vmul.f32 -1.442695, %v1477_v62 }
 0x393   :  { %4175 = vpow2.f32 %v4037_v2 }
 0x394   :  { %4177 = vpow2.f32 %v4039_v11 }
 0x395   :  { %v1431_v49 = vpop.f32.mrf.mxu2 }
 0x396   :  { %v1388_v61 = vpop.f32.mrf.mxu0  ;;  %v1411_v1 = vpop.f32.mrf.mxu1 }
 0x397   :  { %v1438_v13 = vadd.f32 %v1388_v61, %v228_v59  ;;  %v1478_v3 = vadd.f32 %v1411_v1, %v293_v27  ;;  %v1517_v61 = vadd.f32 %v5759_v25, %v1431_v49 }
 0x399   :  { %v4176_v53 = vpop.eup %4175  ;;  %v4038_v32 = vmul.f32 -1.442695, %v1438_v13  ;;  %v4040_v6 = vmul.f32 -1.442695, %v1478_v3 }
 0x39a   :  { %v4178_v12 = vpop.eup %4177  ;;  %v1445_v18 = vadd.f32 1.0, %v4176_v53  ;;  %v7468_v53 = vld [vmem:[#allocation41_spill] sm:$0xff] }
 0x39b   :  { %v5892_v55 = vadd.f32 1.0, %v4178_v12  ;;  %v355_v12 = vadd.f32 %v7468_v53, %v5114_v24 }
 0x39c   :  { %4179 = vrcp.f32 %v1445_v18  ;;  %v1458_v34 = vand.u32 2147483648, %v1445_v18  ;;  %v1456_v2 = vand.u32 2147483647, %v1445_v18  ;;  %vm1452_vm2 = vweird.f32 %v1445_v18 }
 0x39d   :  { %4181 = vrcp.f32 %v5892_v55  ;;  %vm1492_vm6 = vweird.f32 %v5892_v55 }
 0x39e   :  { %4183 = vpow2.f32 %v4038_v32  ;;  %v1459_v30 = vor.u32 1.1754944e-38, %v1458_v34  ;;  %vm1457_vm4 = vcmp.eq.f32.partialorder %v1456_v2, 8.507059e+37  ;;  %v1498_v32 = vand.u32 2147483648, %v5892_v55 }
 0x39f   :  { %4185 = vpow2.f32 %v4040_v6 }
 0x3a0   :  { %v1499_v34 = vor.u32 1.1754944e-38, %v1498_v32 }
 0x3a2   :  { %v4180_v7 = vpop.eup %4179 }
 0x3a3   :  { %v4182_v28 = vpop.eup %4181  ;;  %v1448_v43 = vmul.f32 %v4180_v7, %v1445_v18  ;;  %vm1453_vm1 = vweird.f32 %v4180_v7 }
 0x3a4   :  { %v4184_v44 = vpop.eup %4183  ;;  %v1488_v23 = vmul.f32 %v4182_v28, %v5892_v55  ;;  %vm1454_vm3 = vmor %vm1452_vm2, %vm1453_vm1  ;;  %vm1493_vm5 = vweird.f32 %v4182_v28 }
 0x3a5   :  { %v4186_v21 = vpop.eup %4185  ;;  %v1449_v48 = vsub.f32 1.0, %v1448_v43  ;;  %v1446_v50 = vadd.f32 1.0, %v4184_v44  ;;  %vm5967_vm7 = vmor %vm1492_vm6, %vm1493_vm5 }
 0x3a6   :  { %v1489_v29 = vsub.f32 1.0, %v1488_v23  ;;  %v5954_v57 = vadd.f32 1.0, %v4186_v21 }
 0x3a7   :  { %v1450_v62 = vmul.f32 %v4180_v7, %v1449_v48  ;;  %4187 = vrcp.f32 %v1446_v50  ;;  %v1473_v2 = vand.u32 2147483648, %v1446_v50  ;;  %vm1467_vm10 = vweird.f32 %v1446_v50 }
 0x3a8   :  { %v1490_v11 = vmul.f32 %v4182_v28, %v1489_v29  ;;  %4189 = vrcp.f32 %v5954_v57  ;;  %v1513_v44 = vand.u32 2147483648, %v5954_v57  ;;  %vm1507_vm14 = vweird.f32 %v5954_v57 }
 0x3a9   :  { %v1451_v59 = vadd.f32 %v4180_v7, %v1450_v62 }
 0x3aa   :  { %v1491_v1 = vadd.f32 %v4182_v28, %v1490_v11  ;;  %v1471_v11 = vand.u32 2147483647, %v1446_v50 }
 0x3ab   :  { %v1455_v27 = vsel %vm1454_vm3, %v4180_v7, %v1451_v59  ;;  %v1496_v7 = vand.u32 2147483647, %v5892_v55 }
 0x3ac   :  { %v1460_v13 = vsel %vm1457_vm4, %v1459_v30, %v1455_v27  ;;  %v1495_v48 = vsel %vm5967_vm7, %v4182_v28, %v1491_v1  ;;  %v1434_v30 = vpop.f32.mrf.mxu2  ;;  %v1474_v28 = vor.u32 1.1754944e-38, %v1473_v2  ;;  %vm1472_vm12 = vcmp.eq.f32.partialorder %v1471_v11, 8.507059e+37 }
 0x3ad   :  { %v4188_v3 = vpop.eup %4187  ;;  %v1519_v18 = vmul.f32 %v1517_v61, %v1460_v13  ;;  %vm1497_vm8 = vcmp.eq.f32.partialorder %v1496_v7, 8.507059e+37  ;;  %v1518_v13 = vadd.f32 %v5759_v25, %v1434_v30  ;;  %v1803_v30 = vld [vmem:[%s7358_s2 + $0x148] sm:$0xff] }
 0x3ae   :  { %v4190_v6 = vpop.eup %4189  ;;  %v1463_v43 = vmul.f32 %v4188_v3, %v1446_v50  ;;  %vm1468_vm9 = vweird.f32 %v4188_v3  ;;  %v1500_v49 = vsel %vm1497_vm8, %v1499_v34, %v1495_v48  ;;  %v1514_v34 = vor.u32 1.1754944e-38, %v1513_v44 }
 0x3af   :  { %v1521_v23 = vadd.f32 %v1519_v18, %v355_v12  ;;  %v1503_v21 = vmul.f32 %v4190_v6, %v5954_v57  ;;  %vm1469_vm11 = vmor %vm1467_vm10, %vm1468_vm9  ;;  %v1525_v61 = vsub.f32 1.0, %v1500_v49  ;;  %v7471_v12 = vld [vmem:[#allocation42_spill] sm:$0xff]  ;;  %vm1508_vm13 = vweird.f32 %v4190_v6 }
 0x3b0   :  { %v1464_v29 = vsub.f32 1.0, %v1463_v43  ;;  %v358_v32 = vadd.f32 %v7471_v12, %v5114_v24  ;;  %v1529_v50 = vmul.f32 %v1500_v49, %v5772_v33  ;;  %vm1509_vm15 = vmor %vm1507_vm14, %vm1508_vm13  ;;  %v1809_v49 = vld [vmem:[%s7358_s2 + $0x178] sm:$0xff] }
 0x3b1   :  { %4191 = vtanh.f32 %v1521_v23  ;;  %v1504_v62 = vsub.f32 1.0, %v1503_v21  ;;  %1856 = vmatpush.msrb.mxu0 %v1809_v49  ;;  %v1785_v12 = vld [vmem:[%s7358_s2 + $0xb8] sm:$0xff] }
 0x3b2   :  { %v1465_v55 = vmul.f32 %v4188_v3, %v1464_v29 }
 0x3b3   :  { %v1505_v59 = vmul.f32 %v4190_v6, %v1504_v62 }
 0x3b4   :  { %v1466_v27 = vadd.f32 %v4188_v3, %v1465_v55 }
 0x3b5   :  { %v1506_v18 = vadd.f32 %v4190_v6, %v1505_v59  ;;  %v1806_v59 = vld [vmem:[%s7358_s2 + $0x160] sm:$0xff] }
 0x3b6   :  { %v1470_v1 = vsel %vm1469_vm11, %v4188_v3, %v1466_v27  ;;  %v1511_v3 = vand.u32 2147483647, %v5954_v57  ;;  %1857 = vmatpush.msrb.mxu0 %v1806_v59  ;;  %v1800_v27 = vld [vmem:[%s7358_s2 + $0x130] sm:$0xff] }
 0x3b7   :  { %v4192_v53 = vpop.eup %4191  ;;  %v1475_v7 = vsel %vm1472_vm12, %v1474_v28, %v1470_v1  ;;  %v1510_v29 = vsel %vm1509_vm15, %v4190_v6, %v1506_v18  ;;  %v1797_v28 = vld [vmem:[%s7358_s2 + $0x118] sm:$0xff]  ;;  %v1791_v1 = vld [vmem:[%s7358_s2 + $0xe8] sm:$0xff]  ;;  %v1782_v18 = vld [vmem:[%s7358_s2 + $0xa0] sm:$0xff] }
 0x3b8   :  { %v1527_v43 = vmul.f32 %v4192_v53, %v1525_v61  ;;  %v1520_v23 = vmul.f32 %v1518_v13, %v1475_v7  ;;  %vm1512_vm0 = vcmp.eq.f32.partialorder %v1511_v3, 8.507059e+37  ;;  %1858 = vmatpush.msrb.mxu0 %v1803_v30  ;;  %v1794_v61 = vld [vmem:[%s7358_s2 + $0x100] sm:$0xff]  ;;  %v1788_v13 = vld [vmem:[%s7358_s2 + $0xd0] sm:$0xff]  ;;  %v1807_v53 = vld [vmem:[%s7358_s2 + $0x168] sm:$0xff] }
 0x3b9   :  { %v1515_v57 = vsel %vm1512_vm0, %v1514_v34, %v1510_v29  ;;  %1810 = vmatpush.msra.mxu2 %v1807_v53  ;;  %2031 = vmatpush.msrb.mxu1 %v1807_v53  ;;  %v1801_v7 = vld [vmem:[%s7358_s2 + $0x138] sm:$0xff]  ;;  %v1795_v34 = vld [vmem:[%s7358_s2 + $0x108] sm:$0xff]  ;;  %v2256_v53 = vld [vmem:[#allocation7 + $0x150] sm:$0xff] }
 0x3ba   :  { %v5987_v21 = vadd.f32 %v1529_v50, %v1527_v43  ;;  %v1522_v48 = vadd.f32 %v1520_v23, %v358_v32  ;;  %v1526_v62 = vsub.f32 1.0, %v1515_v57  ;;  %v1530_v6 = vmul.f32 %v1515_v57, %v5778_v46  ;;  %1859 = vmatpush.msrb.mxu0 %v1800_v27  ;;  %v1804_v32 = vld [vmem:[%s7358_s2 + $0x150] sm:$0xff]  ;;  %v1779_v43 = vld [vmem:[%s7358_s2 + $0x88] sm:$0xff]  ;;  %v1798_v23 = vld [vmem:[%s7358_s2 + $0x120] sm:$0xff] }
 0x3bb   :  { %1811 = vmatpush.msra.mxu2 %v1804_v32  ;;  %2032 = vmatpush.msrb.mxu1 %v1804_v32  ;;  %v7472_v50 = vld [vmem:[#allocation30_spill] sm:$0xff] }
 0x3bc   :  { %4193 = vtanh.f32 %v1522_v48  ;;  %1605 = vmatmul.f32.vlgmr.msra.gmra.mxu3 %v5987_v21  ;;  %1628 = vmatmul.f32.vlgmr.msra.gmra.mxu0 %v5987_v21  ;;  %v296_v44 = vadd.f32 %v7472_v50, %v7458_v41  ;;  %v1776_v48 = vld [vmem:[%s7358_s2 + $0x70] sm:$0xff] }
 0x3bd   :  { %1651 = vmatmul.f32.vlgmr.msra.gmra.mxu1 %v5987_v21  ;;  %2077 = vmatpush.msra.mxu3 %v1809_v49 }
 0x3be   :  { %1860 = vmatpush.msrb.mxu0 %v1797_v28  ;;  %1812 = vmatpush.msra.mxu2 %v1801_v7 }
 0x3bf   :  { %2078 = vmatpush.msra.mxu3 %v1806_v59  ;;  %2033 = vmatpush.msrb.mxu1 %v1801_v7  ;;  %v2250_v7 = vld [vmem:[#allocation7 + $0x120] sm:$0xff] }
 0x3c0   :  { %1861 = vmatpush.msrb.mxu0 %v1794_v61  ;;  %1813 = vmatpush.msra.mxu2 %v1798_v23 }
 0x3c1   :  { %2079 = vmatpush.msra.mxu3 %v1803_v30  ;;  %2034 = vmatpush.msrb.mxu1 %v1798_v23 }
 0x3c2   :  { %v4194_v2 = vpop.eup %4193  ;;  %1862 = vmatpush.msrb.mxu0 %v1791_v1  ;;  %1814 = vmatpush.msra.mxu2 %v1795_v34 }
 0x3c3   :  { %v1528_v55 = vmul.f32 %v4194_v2, %v1526_v62  ;;  %2080 = vmatpush.msra.mxu3 %v1800_v27  ;;  %2035 = vmatpush.msrb.mxu1 %v1795_v34  ;;  %v1792_v62 = vld [vmem:[%s7358_s2 + $0xf0] sm:$0xff]  ;;  %v7473_v2 = vld [vmem:[#allocation25_spill] sm:$0xff]  ;;  %v2259_v27 = vld [vmem:[#allocation7 + $0x168] sm:$0xff] }
 0x3c4   :  { %1863 = vmatpush.msrb.mxu0 %v1788_v13  ;;  %1815 = vmatpush.msra.mxu2 %v1792_v62  ;;  %v2244_v34 = vld [vmem:[#allocation7 + $0xf0] sm:$0xff] }
 0x3c5   :  { %v5996_v11 = vadd.f32 %v1530_v6, %v1528_v55  ;;  %2081 = vmatpush.msra.mxu3 %v1797_v28  ;;  %2036 = vmatpush.msrb.mxu1 %v1792_v62  ;;  %v231_v55 = vadd.f32 %v7473_v2, %v7456_v37  ;;  %v1789_v6 = vld [vmem:[%s7358_s2 + $0xd8] sm:$0xff]  ;;  %v2238_v2 = vld [vmem:[#allocation7 + $0xc0] sm:$0xff] }
 0x3c6   :  { %1864 = vmatpush.msrb.mxu0 %v1785_v12  ;;  %1816 = vmatpush.msra.mxu2 %v1789_v6  ;;  %v7474_v28 = vld [vmem:[#allocation32_spill] sm:$0xff] }
 0x3c7   :  { %1608 = vmatmul.f32.gmra.mxu3 %v5996_v11  ;;  %1631 = vmatmul.f32.gmra.mxu0 %v5996_v11  ;;  %v2241_v62 = vld [vmem:[#allocation7 + $0xd8] sm:$0xff] }
 0x3c8   :  { %1654 = vmatmul.f32.gmra.mxu1 %v5996_v11  ;;  %2082 = vmatpush.msra.mxu3 %v1794_v61  ;;  %v299_v61 = vadd.f32 %v7474_v28, %v7458_v41 }
 0x3c9   :  { %1865 = vmatpush.msrb.mxu0 %v1782_v18  ;;  %2037 = vmatpush.msrb.mxu1 %v1789_v6 }
 0x3ca   :  { %2083 = vmatpush.msra.mxu3 %v1791_v1 }
 0x3cb   :  { %1866 = vmatpush.msrb.mxu0 %v1779_v43 }
 0x3cc   :  { %2084 = vmatpush.msra.mxu3 %v1788_v13  ;;  %v1780_v13 = vld [vmem:[%s7358_s2 + $0x90] sm:$0xff] }
 0x3cd   :  { %1867 = vmatpush.msrb.mxu0 %v1776_v48 }
 0x3ce   :  { %2085 = vmatpush.msra.mxu3 %v1785_v12 }
 0x3cf   :  { %1868 = vmatpush.msrb.mxu0 %v5888_v5 }
 0x3d0   :  { %2086 = vmatpush.msra.mxu3 %v1782_v18 }
 0x3d1   :  { %1869 = vmatpush.msrb.mxu0 %v5908_v10 }
 0x3d2   :  { %2087 = vmatpush.msra.mxu3 %v1779_v43  ;;  %v7475_v43 = vld [vmem:[#allocation27_spill] sm:$0xff] }
 0x3d3   :  { %1870 = vmatpush.msrb.mxu0 %v5927_v42  ;;  %v234_v50 = vadd.f32 %v7475_v43, %v7456_v37 }
 0x3d4   :  { %2088 = vmatpush.msra.mxu3 %v1776_v48 }
 0x3d5   :  { %1871 = vmatpush.msrb.mxu0 %v5945_v14 }
 0x3d6   :  { %2089 = vmatpush.msra.mxu3 %v5888_v5  ;;  %v1786_v5 = vld [vmem:[%s7358_s2 + $0xc0] sm:$0xff] }
 0x3d7   :  { %1817 = vmatpush.msra.mxu2 %v1786_v5  ;;  %2038 = vmatpush.msrb.mxu1 %v1786_v5  ;;  %v2229_v5 = vld [vmem:[#allocation7 + $0x78] sm:$0xff] }
 0x3d8   :  { %2090 = vmatpush.msra.mxu3 %v5908_v10  ;;  %v1783_v10 = vld [vmem:[%s7358_s2 + $0xa8] sm:$0xff]  ;;  %2270 = vmatpush.msra.mxu0 %v2259_v27  ;;  %v2226_v27 = vld [vmem:[#allocation7 + $0x60] sm:$0xff] }
 0x3d9   :  { %1818 = vmatpush.msra.mxu2 %v1783_v10  ;;  %2039 = vmatpush.msrb.mxu1 %v1783_v10 }
 0x3da   :  { %2091 = vmatpush.msra.mxu3 %v5927_v42  ;;  %2271 = vmatpush.msra.mxu0 %v2256_v53  ;;  %v2220_v53 = vld [vmem:[#allocation7 + $0x30] sm:$0xff] }
 0x3db   :  { %1819 = vmatpush.msra.mxu2 %v1780_v13  ;;  %2040 = vmatpush.msrb.mxu1 %v1780_v13 }
 0x3dc   :  { %2092 = vmatpush.msra.mxu3 %v5945_v14  ;;  %v2253_v14 = vld [vmem:[#allocation7 + $0x138] sm:$0xff] }
 0x3dd   :  { %1820 = vmatpush.msra.mxu2 %v5850_v63  ;;  %2272 = vmatpush.msra.mxu0 %v2253_v14 }
 0x3de   :  { %2041 = vmatpush.msrb.mxu1 %v5850_v63 }
 0x3df   :  { %1821 = vmatpush.msra.mxu2 %v5866_v52  ;;  %2273 = vmatpush.msra.mxu0 %v2250_v7 }
 0x3e0   :  { %2042 = vmatpush.msrb.mxu1 %v5866_v52 }
 0x3e1   :  { %1822 = vmatpush.msra.mxu2 %v5878_v39 }
 0x3e2   :  { %2043 = vmatpush.msrb.mxu1 %v5878_v39 }
 0x3e3   :  { %1823 = vmatpush.msra.mxu2 %v5898_v36 }
 0x3e4   :  { %2044 = vmatpush.msrb.mxu1 %v5898_v36 }
 0x3e5   :  { %1824 = vmatpush.msra.mxu2 %v5917_v4 }
 0x3e6   :  { %2045 = vmatpush.msrb.mxu1 %v5917_v4 }
 0x3e7   :  { %1825 = vmatpush.msra.mxu2 %v5935_v40 }
 0x3e8   :  { %2046 = vmatpush.msrb.mxu1 %v5935_v40 }
 0x3e9   :  { %2054 = vmatpush.msrb.mxu2 %v5786_v17 }
 0x3eb   :  { %2055 = vmatpush.msrb.mxu2 %v5792_v8 }
 0x3ed   :  { %2056 = vmatpush.msrb.mxu2 %v5798_v0  ;;  %v2223_v0 = vld [vmem:[#allocation7 + $0x48] sm:$0xff] }
 0x3ef   :  { %2057 = vmatpush.msrb.mxu2 %v5804_v9 }
 0x3f1   :  { %2058 = vmatpush.msrb.mxu2 %v5810_v38  ;;  %v7476_v38 = vld [vmem:[#allocation43_spill] sm:$0xff] }
 0x3f3   :  { %2059 = vmatpush.msrb.mxu2 %v5816_v47 }
 0x3f5   :  { %2060 = vmatpush.msrb.mxu2 %v5826_v22 }
 0x3f7   :  { %2061 = vmatpush.msrb.mxu2 %v5832_v56 }
 0x3f9   :  { %2062 = vmatpush.msrb.mxu2 %v5838_v60 }
 0x3fb   :  { %2063 = vmatpush.msrb.mxu2 %v5844_v54 }
 0x3fd   :  { %2064 = vmatpush.msrb.mxu2 %v5855_v15  ;;  %v7477_v15 = vld [vmem:[#allocation44_spill] sm:$0xff] }
 0x3ff   :  { %2065 = vmatpush.msrb.mxu2 %v5871_v51 }
 0x401   :  { %2066 = vmatpush.msrb.mxu2 %v5883_v16 }
 0x403   :  { %2067 = vmatpush.msrb.mxu2 %v5903_v58 }
 0x405   :  { %2068 = vmatpush.msrb.mxu2 %v5922_v19  ;;  %v7479_v19 = vld [vmem:[#allocation18_spill] sm:$0xff] }
 0x407   :  { %2069 = vmatpush.msrb.mxu2 %v5940_v20  ;;  %v6176_v20 = vld [vmem:[#allocation9 + $0x168] sm:$0xff] }
 0x439   :  { %v1629_v3 = vpop.f32.mrf.mxu0 }
 0x43a   :  { %v1698_v29 = vadd.f32 %v1629_v3, %v296_v44  ;;  %v2247_v3 = vld [vmem:[#allocation7 + $0x108] sm:$0xff] }
 0x43b   :  { %2274 = vmatpush.msra.mxu0 %v2247_v3 }
 0x43c   :  { %v4043_v57 = vmul.f32 -1.442695, %v1698_v29 }
 0x43d   :  { %2275 = vmatpush.msra.mxu0 %v2244_v34 }
 0x43e   :  { %4195 = vpow2.f32 %v4043_v57 }
 0x43f   :  { %v1606_v49 = vpop.f32.mrf.mxu3  ;;  %2276 = vmatpush.msra.mxu0 %v2241_v62 }
 0x440   :  { %v1658_v59 = vadd.f32 %v1606_v49, %v231_v55  ;;  %v2235_v55 = vld [vmem:[#allocation7 + $0xa8] sm:$0xff]  ;;  %v2232_v49 = vld [vmem:[#allocation7 + $0x90] sm:$0xff] }
 0x441   :  { %2277 = vmatpush.msra.mxu0 %v2238_v2 }
 0x442   :  { %v4041_v30 = vmul.f32 -1.442695, %v1658_v59 }
 0x443   :  { %2278 = vmatpush.msra.mxu0 %v2235_v55 }
 0x444   :  { %v4196_v1 = vpop.eup %4195  ;;  %4197 = vpow2.f32 %v4041_v30  ;;  %v1632_v42 = vpop.f32.mrf.mxu0 }
 0x445   :  { %v6081_v12 = vadd.f32 1.0, %v4196_v1  ;;  %v1699_v32 = vadd.f32 %v1632_v42, %v299_v61  ;;  %2279 = vmatpush.msra.mxu0 %v2232_v49  ;;  %v1652_v42 = vpop.f32.mrf.mxu1 }
 0x446   :  { %v1738_v14 = vadd.f32 %v5759_v25, %v1652_v42 }
 0x447   :  { %4199 = vrcp.f32 %v6081_v12  ;;  %v4044_v18 = vmul.f32 -1.442695, %v1699_v32  ;;  %2280 = vmatpush.msra.mxu0 %v2229_v5  ;;  %vm1713_vm6 = vweird.f32 %v6081_v12  ;;  %v1717_v47 = vand.u32 2147483647, %v6081_v12 }
 0x449   :  { %4201 = vpow2.f32 %v4044_v18  ;;  %2281 = vmatpush.msra.mxu0 %v2226_v27  ;;  %v2217_v18 = vld [vmem:[#allocation7 + $0x18] sm:$0xff]  ;;  %vm1718_vm8 = vcmp.eq.f32.partialorder %v1717_v47, 8.507059e+37 }
 0x44a   :  { %v4198_v44 = vpop.eup %4197  ;;  %v1609_v23 = vpop.f32.mrf.mxu3 }
 0x44b   :  { %v1666_v48 = vadd.f32 1.0, %v4198_v44  ;;  %v1659_v29 = vadd.f32 %v1609_v23, %v234_v50  ;;  %2282 = vmatpush.msra.mxu0 %v2223_v0  ;;  %v361_v44 = vadd.f32 %v7476_v38, %v5114_v24  ;;  %v1719_v23 = vand.u32 2147483648, %v6081_v12  ;;  %v7481_v38 = vld [vmem:[#allocation34_spill] sm:$0xff] }
 0x44d   :  { %4203 = vrcp.f32 %v1666_v48  ;;  %v6093_v63 = vpop.eup %4199  ;;  %v4042_v57 = vmul.f32 -1.442695, %v1659_v29  ;;  %v1679_v28 = vand.u32 2147483648, %v1666_v48  ;;  %v1677_v40 = vand.u32 2147483647, %v1666_v48  ;;  %2283 = vmatpush.msra.mxu0 %v2220_v53 }
 0x44e   :  { %v1709_v39 = vmul.f32 %v6093_v63, %v6081_v12  ;;  %vm1673_vm2 = vweird.f32 %v1666_v48  ;;  %vm1714_vm5 = vweird.f32 %v6093_v63 }
 0x44f   :  { %v4202_v52 = vpop.eup %4201  ;;  %4205 = vpow2.f32 %v4042_v57  ;;  %v1680_v32 = vor.u32 1.1754944e-38, %v1679_v28  ;;  %vm1678_vm4 = vcmp.eq.f32.partialorder %v1677_v40, 8.507059e+37  ;;  %2284 = vmatpush.msra.mxu0 %v2217_v18  ;;  %vm1715_vm7 = vmor %vm1713_vm6, %vm1714_vm5  ;;  %v6185_v18 = vld [vmem:[#allocation9 + $0x120] sm:$0xff] }
 0x450   :  { %v6100_v6 = vadd.f32 1.0, %v4202_v52  ;;  %v1710_v4 = vsub.f32 1.0, %v1709_v39  ;;  %v1720_v52 = vor.u32 1.1754944e-38, %v1719_v23  ;;  %v6195_v23 = vld [vmem:[#allocation9 + $0xf0] sm:$0xff] }
 0x452   :  { %4207 = vrcp.f32 %v6100_v6  ;;  %v1711_v1 = vmul.f32 %v6093_v63, %v1710_v4  ;;  %vm1728_vm14 = vweird.f32 %v6100_v6 }
 0x453   :  { %v4204_v36 = vpop.eup %4203 }
 0x454   :  { %v1669_v59 = vmul.f32 %v4204_v36, %v1666_v48  ;;  %vm1674_vm1 = vweird.f32 %v4204_v36  ;;  %v1712_v7 = vadd.f32 %v6093_v63, %v1711_v1  ;;  %v2214_v48 = vld [vmem:[#allocation7] sm:$0xff] }
 0x455   :  { %v4206_v30 = vpop.eup %4205  ;;  %vm1675_vm3 = vmor %vm1673_vm2, %vm1674_vm1  ;;  %2285 = vmatpush.msra.mxu0 %v2214_v48 }
 0x456   :  { %v1670_v10 = vsub.f32 1.0, %v1669_v59  ;;  %v6108_v61 = vadd.f32 1.0, %v4206_v30  ;;  %v1716_v62 = vsel %vm1715_vm7, %v6093_v63, %v1712_v7  ;;  %v1655_v63 = vpop.f32.mrf.mxu1  ;;  %v6188_v7 = vld [vmem:[#allocation9 + $0x108] sm:$0xff] }
 0x457   :  { %v1721_v12 = vsel %vm1718_vm8, %v1720_v52, %v1716_v62  ;;  %v1739_v30 = vadd.f32 %v5759_v25, %v1655_v63  ;;  %v1732_v25 = vand.u32 2147483647, %v6100_v6  ;;  %v2260_v52 = vld [vmem:[#allocation7 + $0x170] sm:$0xff]  ;;  %v2255_v63 = vld [vmem:[#allocation7 + $0x148] sm:$0xff] }
 0x458   :  { %v1671_v17 = vmul.f32 %v4204_v36, %v1670_v10  ;;  %4209 = vrcp.f32 %v6108_v61  ;;  %v6113_v8 = vpop.eup %4207  ;;  %v1694_v22 = vand.u32 2147483648, %v6108_v61  ;;  %v1692_v49 = vand.u32 2147483647, %v6108_v61  ;;  %2335 = vmatpush.msra.mxu1 %v2260_v52 }
 0x459   :  { %v1724_v50 = vmul.f32 %v6113_v8, %v6100_v6  ;;  %vm1688_vm10 = vweird.f32 %v6108_v61  ;;  %v1746_v59 = vsub.f32 1.0, %v1721_v12  ;;  %v1750_v4 = vmul.f32 %v1721_v12, %v5987_v21  ;;  %v2257_v12 = vld [vmem:[#allocation7 + $0x158] sm:$0xff] }
 0x45a   :  { %v1672_v13 = vadd.f32 %v4204_v36, %v1671_v17  ;;  %v1695_v60 = vor.u32 1.1754944e-38, %v1694_v22  ;;  %vm1693_vm12 = vcmp.eq.f32.partialorder %v1692_v49, 8.507059e+37  ;;  %vm1729_vm13 = vweird.f32 %v6113_v8  ;;  %v6204_v22 = vld [vmem:[#allocation9 + $0xa8] sm:$0xff]  ;;  %v6207_v49 = vld [vmem:[#allocation9 + $0x90] sm:$0xff]  ;;  %2336 = vmatpush.msra.mxu1 %v2257_v12  ;;  %v2237_v12 = vld [vmem:[#allocation7 + $0xb8] sm:$0xff] }
 0x45b   :  { %v1725_v2 = vsub.f32 1.0, %v1724_v50  ;;  %v1734_v17 = vand.u32 2147483648, %v6100_v6  ;;  %vm1730_vm15 = vmor %vm1728_vm14, %vm1729_vm13  ;;  %vm1733_vm0 = vcmp.eq.f32.partialorder %v1732_v25, 8.507059e+37 }
 0x45c   :  { %v1676_v9 = vsel %vm1675_vm3, %v4204_v36, %v1672_v13 }
 0x45d   :  { %v1681_v43 = vsel %vm1678_vm4, %v1680_v32, %v1676_v9  ;;  %v1726_v56 = vmul.f32 %v6113_v8, %v1725_v2  ;;  %v1735_v13 = vor.u32 1.1754944e-38, %v1734_v17  ;;  %v7478_v32 = vld [vmem:[#allocation17_spill] sm:$0xff]  ;;  %v6182_v9 = vld [vmem:[#allocation9 + $0x138] sm:$0xff] }
 0x45e   :  { %v1740_v3 = vmul.f32 %v1738_v14, %v1681_v43  ;;  %v4210_v29 = vpop.eup %4209  ;;  %v6179_v14 = vld [vmem:[#allocation9 + $0x150] sm:$0xff]  ;;  %v7480_v43 = vld [vmem:[#allocation29_spill] sm:$0xff] }
 0x45f   :  { %v1684_v57 = vmul.f32 %v4210_v29, %v6108_v61  ;;  %vm1689_vm9 = vweird.f32 %v4210_v29  ;;  %v1727_v54 = vadd.f32 %v6113_v8, %v1726_v56  ;;  %v364_v61 = vadd.f32 %v7477_v15, %v5114_v24  ;;  %v6201_v2 = vld [vmem:[#allocation9 + $0xc0] sm:$0xff] }
 0x460   :  { %v1742_v34 = vadd.f32 %v1740_v3, %v361_v44  ;;  %vm1690_vm11 = vmor %vm1688_vm10, %vm1689_vm9  ;;  %v237_v50 = vadd.f32 %v7480_v43, %v7456_v37  ;;  %v302_v44 = vadd.f32 %v7481_v38, %v7458_v41  ;;  %v2254_v56 = vld [vmem:[#allocation7 + $0x140] sm:$0xff]  ;;  %v2243_v38 = vld [vmem:[#allocation7 + $0xe8] sm:$0xff] }
 0x461   :  { %v1685_v55 = vsub.f32 1.0, %v1684_v57  ;;  %v1731_v42 = vsel %vm1730_vm15, %v6113_v8, %v1727_v54  ;;  %2337 = vmatpush.msra.mxu1 %v2254_v56  ;;  %v2252_v54 = vld [vmem:[#allocation7 + $0x130] sm:$0xff]  ;;  %v6246_v56 = vld [vmem:[#allocation9 + $0x158] sm:$0xff] }
 0x462   :  { %4211 = vtanh.f32 %v1742_v34  ;;  %v1736_v16 = vsel %vm1733_vm0, %v1735_v13, %v1731_v42  ;;  %v6198_v34 = vld [vmem:[#allocation9 + $0xd8] sm:$0xff]  ;;  %v2248_v42 = vld [vmem:[#allocation7 + $0x110] sm:$0xff] }
 0x463   :  { %v1686_v39 = vmul.f32 %v4210_v29, %v1685_v55  ;;  %v1747_v6 = vsub.f32 1.0, %v1736_v16  ;;  %v1751_v58 = vmul.f32 %v1736_v16, %v5996_v11  ;;  %v2261_v55 = vld [vmem:[#allocation7 + $0x178] sm:$0xff]  ;;  %v6224_v16 = vld [vmem:[#allocation9 + $0x48] sm:$0xff] }
 0x464   :  { %v2249_v13 = vld [vmem:[#allocation7 + $0x118] sm:$0xff] }
 0x465   :  { %v1687_v36 = vadd.f32 %v4210_v29, %v1686_v39  ;;  %v2258_v39 = vld [vmem:[#allocation7 + $0x160] sm:$0xff] }
 0x467   :  { %v1691_v10 = vsel %vm1690_vm11, %v4210_v29, %v1687_v36  ;;  %v6210_v36 = vld [vmem:[#allocation9 + $0x78] sm:$0xff] }
 0x468   :  { %v4212_v5 = vpop.eup %4211  ;;  %v1696_v27 = vsel %vm1693_vm12, %v1695_v60, %v1691_v10  ;;  %v7482_v60 = vld [vmem:[#allocation31_spill] sm:$0xff]  ;;  %v2251_v10 = vld [vmem:[#allocation7 + $0x128] sm:$0xff] }
 0x469   :  { %v1748_v28 = vmul.f32 %v4212_v5, %v1746_v59  ;;  %v1741_v40 = vmul.f32 %v1739_v30, %v1696_v27  ;;  %v240_v5 = vadd.f32 %v7482_v60, %v7456_v37  ;;  %v6217_v27 = vld [vmem:[#allocation9 + $0x60] sm:$0xff]  ;;  %2338 = vmatpush.msra.mxu1 %v2251_v10 }
 0x46a   :  { %v2234_v60 = vld [vmem:[#allocation7 + $0xa0] sm:$0xff] }
 0x46b   :  { %v6149_v1 = vadd.f32 %v1750_v4, %v1748_v28  ;;  %v1743_v51 = vadd.f32 %v1741_v40, %v364_v61  ;;  %v7483_v4 = vld [vmem:[#allocation36_spill] sm:$0xff]  ;;  %2339 = vmatpush.msra.mxu1 %v2248_v42  ;;  %v6250_v10 = vld [vmem:[#allocation9 + $0x140] sm:$0xff] }
 0x46c   :  { %v305_v30 = vadd.f32 %v7483_v4, %v7458_v41 }
 0x46d   :  { %1826 = vmatmul.f32.vlgmr.msra.gmra.mxu2 %v6149_v1  ;;  %1849 = vmatmul.f32.vlgmr.msrb.gmra.mxu3 %v6149_v1  ;;  %4213 = vtanh.f32 %v1743_v51 }
 0x46e   :  { %1872 = vmatmul.f32.vlgmr.msrb.gmra.mxu0 %v6149_v1  ;;  %2568 = vmatpush.msrb.mxu3 %v6176_v20 }
 0x46f   :  { %2400 = vmatpush.msra.mxu2 %v2261_v55  ;;  %v2236_v55 = vld [vmem:[#allocation7 + $0xb0] sm:$0xff] }
 0x470   :  { %2569 = vmatpush.msrb.mxu3 %v6179_v14 }
 0x471   :  { %2401 = vmatpush.msra.mxu2 %v2258_v39 }
 0x472   :  { %2570 = vmatpush.msrb.mxu3 %v6182_v9 }
 0x473   :  { %v4214_v0 = vpop.eup %4213  ;;  %2402 = vmatpush.msra.mxu2 %v2255_v63 }
 0x474   :  { %v1749_v53 = vmul.f32 %v4214_v0, %v1747_v6  ;;  %2571 = vmatpush.msrb.mxu3 %v6185_v18  ;;  %v2245_v6 = vld [vmem:[#allocation7 + $0xf8] sm:$0xff]  ;;  %v2246_v0 = vld [vmem:[#allocation7 + $0x100] sm:$0xff] }
 0x475   :  { %2403 = vmatpush.msra.mxu2 %v2252_v54  ;;  %2340 = vmatpush.msra.mxu1 %v2245_v6 }
 0x476   :  { %v6159_v8 = vadd.f32 %v1751_v58, %v1749_v53  ;;  %2572 = vmatpush.msrb.mxu3 %v6188_v7  ;;  %v6229_v58 = vld [vmem:[#allocation9 + $0x30] sm:$0xff] }
 0x477   :  { %2404 = vmatpush.msra.mxu2 %v2249_v13 }
 0x478   :  { %1829 = vmatmul.f32.gmra.mxu2 %v6159_v8  ;;  %1852 = vmatmul.f32.gmra.mxu3 %v6159_v8 }
 0x479   :  { %1875 = vmatmul.f32.gmra.mxu0 %v6159_v8  ;;  %2573 = vmatpush.msrb.mxu3 %v6195_v23 }
 0x47a   :  { %2405 = vmatpush.msra.mxu2 %v2246_v0  ;;  %v6260_v0 = vld [vmem:[#allocation9 + $0x128] sm:$0xff] }
 0x47b   :  { %2574 = vmatpush.msrb.mxu3 %v6198_v34 }
 0x47c   :  { %2406 = vmatpush.msra.mxu2 %v2243_v38  ;;  %v2216_v38 = vld [vmem:[#allocation7 + $0x10] sm:$0xff] }
 0x47d   :  { %2575 = vmatpush.msrb.mxu3 %v6201_v2 }
 0x47f   :  { %2576 = vmatpush.msrb.mxu3 %v6204_v22 }
 0x481   :  { %2286 = vmatmul.f32.vlgmr.msra.gmra.mxu0 %v7478_v32  ;;  %2577 = vmatpush.msrb.mxu3 %v6207_v49 }
 0x483   :  { %2578 = vmatpush.msrb.mxu3 %v6210_v36 }
 0x485   :  { %2579 = vmatpush.msrb.mxu3 %v6217_v27 }
 0x487   :  { %2580 = vmatpush.msrb.mxu3 %v6224_v16 }
 0x489   :  { %2289 = vmatmul.f32.gmra.mxu0 %v7479_v19  ;;  %2581 = vmatpush.msrb.mxu3 %v6229_v58 }
 0x491   :  { %2292 = vmatmul.f32.gmra.mxu0 %v5437_v45 }
 0x499   :  { %2295 = vmatmul.f32.gmra.mxu0 %v5444_v35 }
 0x4a1   :  { %2298 = vmatmul.f32.gmra.mxu0 %v5719_v26 }
 0x4a9   :  { %2301 = vmatmul.f32.gmra.mxu0 %v5729_v31 }
 0x4b1   :  { %2304 = vmatmul.f32.gmra.mxu0 %v5772_v33 }
 0x4b9   :  { %2307 = vmatmul.f32.gmra.mxu0 %v5778_v46 }
 0x4c1   :  { %2310 = vmatmul.f32.gmra.mxu0 %v5987_v21 }
 0x4c9   :  { %2313 = vmatmul.f32.gmra.mxu0 %v5996_v11 }
 0x4d1   :  { %2316 = vmatmul.f32.gmra.mxu0 %v6149_v1 }
 0x4d9   :  { %2319 = vmatmul.f32.gmra.mxu0 %v6159_v8 }
 0x4eb   :  { %v1873_v42 = vpop.f32.mrf.mxu0 }
 0x4f0   :  { %v1827_v3 = vpop.f32.mrf.mxu2  ;;  %v1850_v48 = vpop.f32.mrf.mxu3 }
 0x4f1   :  { %v1879_v29 = vadd.f32 %v1827_v3, %v237_v50  ;;  %v1919_v47 = vadd.f32 %v1850_v48, %v302_v44  ;;  %v2242_v50 = vld [vmem:[#allocation7 + $0xe0] sm:$0xff]  ;;  %v6232_v44 = vld [vmem:[#allocation9 + $0x18] sm:$0xff]  ;;  %v2239_v3 = vld [vmem:[#allocation7 + $0xc8] sm:$0xff] }
 0x4f2   :  { %2341 = vmatpush.msra.mxu1 %v2242_v50  ;;  %2582 = vmatpush.msrb.mxu3 %v6232_v44  ;;  %v2240_v48 = vld [vmem:[#allocation7 + $0xd0] sm:$0xff] }
 0x4f3   :  { %v4045_v57 = vmul.f32 -1.442695, %v1879_v29  ;;  %v4047_v62 = vmul.f32 -1.442695, %v1919_v47  ;;  %v6235_v29 = vld [vmem:[#allocation9] sm:$0xff]  ;;  %2407 = vmatpush.msra.mxu2 %v2240_v48  ;;  %v2224_v48 = vld [vmem:[#allocation7 + $0x50] sm:$0xff] }
 0x4f4   :  { %2342 = vmatpush.msra.mxu1 %v2239_v3  ;;  %2583 = vmatpush.msrb.mxu3 %v6235_v29  ;;  %v6270_v3 = vld [vmem:[#allocation9 + $0x110] sm:$0xff] }
 0x4f5   :  { %4215 = vpow2.f32 %v4045_v57  ;;  %v6237_v57 = vld [vmem:[#allocation9 + $0x170] sm:$0xff]  ;;  %2408 = vmatpush.msra.mxu2 %v2237_v12 }
 0x4f6   :  { %4217 = vpow2.f32 %v4047_v62  ;;  %2765 = vmatpush.msrb.mxu0 %v6237_v57  ;;  %2343 = vmatpush.msra.mxu1 %v2236_v55  ;;  %v6275_v55 = vld [vmem:[%s7360_s4] ss:$0 sm:$0xff] }
 0x4f7   :  { %2409 = vmatpush.msra.mxu2 %v2234_v60  ;;  %v1959_v12 = vadd.f32 %v6275_v55, %v1873_v42  ;;  %v2219_v42 = vld [vmem:[#allocation7 + $0x28] sm:$0xff] }
 0x4f8   :  { %2766 = vmatpush.msrb.mxu0 %v6246_v56 }
 0x4fa   :  { %2767 = vmatpush.msrb.mxu0 %v6250_v10 }
 0x4fb   :  { %v4216_v59 = vpop.eup %4215  ;;  %v1830_v61 = vpop.f32.mrf.mxu2 }
 0x4fc   :  { %v4218_v28 = vpop.eup %4217  ;;  %v6219_v15 = vadd.f32 1.0, %v4216_v59  ;;  %v1853_v17 = vpop.f32.mrf.mxu3  ;;  %v1880_v25 = vadd.f32 %v1830_v61, %v240_v5  ;;  %v2233_v59 = vld [vmem:[#allocation7 + $0x98] sm:$0xff]  ;;  %2768 = vmatpush.msrb.mxu0 %v6260_v0 }
 0x4fd   :  { %v6221_v40 = vadd.f32 1.0, %v4218_v28  ;;  %v1920_v51 = vadd.f32 %v1853_v17, %v305_v30  ;;  %2344 = vmatpush.msra.mxu1 %v2233_v59 }
 0x4fe   :  { %4219 = vrcp.f32 %v6219_v15  ;;  %v4046_v53 = vmul.f32 -1.442695, %v1880_v25  ;;  %v1900_v4 = vand.u32 2147483648, %v6219_v15  ;;  %v1898_v61 = vand.u32 2147483647, %v6219_v15  ;;  %v2230_v25 = vld [vmem:[#allocation7 + $0x80] sm:$0xff]  ;;  %2769 = vmatpush.msrb.mxu0 %v6270_v3 }
 0x4ff   :  { %4221 = vrcp.f32 %v6221_v40  ;;  %v4048_v43 = vmul.f32 -1.442695, %v1920_v51  ;;  %v2231_v51 = vld [vmem:[#allocation7 + $0x88] sm:$0xff]  ;;  %vm1894_vm2 = vweird.f32 %v6219_v15  ;;  %2345 = vmatpush.msra.mxu1 %v2230_v25  ;;  %vm1934_vm6 = vweird.f32 %v6221_v40  ;;  %v6291_v25 = vld [vmem:[#allocation9 + $0xe0] sm:$0xff] }
 0x500   :  { %4223 = vpow2.f32 %v4046_v53  ;;  %2410 = vmatpush.msra.mxu2 %v2231_v51  ;;  %v2227_v53 = vld [vmem:[#allocation7 + $0x68] sm:$0xff]  ;;  %vm1899_vm4 = vcmp.eq.f32.partialorder %v1898_v61, 8.507059e+37  ;;  %v1938_v61 = vand.u32 2147483647, %v6221_v40  ;;  %v2218_v51 = vld [vmem:[#allocation7 + $0x20] sm:$0xff] }
 0x501   :  { %4225 = vpow2.f32 %v4048_v43  ;;  %v2228_v43 = vld [vmem:[#allocation7 + $0x70] sm:$0xff]  ;;  %2346 = vmatpush.msra.mxu1 %v2227_v53 }
 0x502   :  { %2411 = vmatpush.msra.mxu2 %v2228_v43  ;;  %vm1939_vm8 = vcmp.eq.f32.partialorder %v1938_v61, 8.507059e+37 }
 0x503   :  { %2347 = vmatpush.msra.mxu1 %v2224_v48 }
 0x504   :  { %v4220_v47 = vpop.eup %4219 }
 0x505   :  { %v6239_v62 = vpop.eup %4221  ;;  %v1890_v52 = vmul.f32 %v4220_v47, %v6219_v15  ;;  %vm1895_vm1 = vweird.f32 %v4220_v47  ;;  %v1901_v15 = vor.u32 1.1754944e-38, %v1900_v4  ;;  %v2222_v4 = vld [vmem:[#allocation7 + $0x40] sm:$0xff] }
 0x506   :  { %v1930_v39 = vmul.f32 %v6239_v62, %v6221_v40  ;;  %v4224_v5 = vpop.eup %4223  ;;  %vm6263_vm3 = vmor %vm1894_vm2, %vm1895_vm1  ;;  %vm1935_vm5 = vweird.f32 %v6239_v62 }
 0x507   :  { %v1891_v63 = vsub.f32 1.0, %v1890_v52  ;;  %v4226_v54 = vpop.eup %4225  ;;  %v6253_v17 = vadd.f32 1.0, %v4224_v5  ;;  %v2225_v52 = vld [vmem:[#allocation7 + $0x58] sm:$0xff]  ;;  %vm6295_vm7 = vmor %vm1934_vm6, %vm1935_vm5 }
 0x508   :  { %v1931_v30 = vsub.f32 1.0, %v1930_v39  ;;  %v6258_v6 = vadd.f32 1.0, %v4226_v54  ;;  %2412 = vmatpush.msra.mxu2 %v2225_v52  ;;  %v6283_v5 = vld [vmem:[#allocation9 + $0xf8] sm:$0xff]  ;;  %v6306_v52 = vld [vmem:[#allocation9 + $0xc8] sm:$0xff] }
 0x509   :  { %v1892_v28 = vmul.f32 %v4220_v47, %v1891_v63  ;;  %4227 = vrcp.f32 %v6253_v17  ;;  %v2221_v63 = vld [vmem:[#allocation7 + $0x38] sm:$0xff]  ;;  %2770 = vmatpush.msrb.mxu0 %v6283_v5  ;;  %vm1909_vm10 = vweird.f32 %v6253_v17 }
 0x50a   :  { %v1932_v13 = vmul.f32 %v6239_v62, %v1931_v30  ;;  %4229 = vrcp.f32 %v6258_v6  ;;  %v7486_v30 = vld [vmem:[#allocation45_spill] sm:$0xff]  ;;  %2348 = vmatpush.msra.mxu1 %v2221_v63  ;;  %2413 = vmatpush.msra.mxu2 %v2222_v4  ;;  %vm1949_vm14 = vweird.f32 %v6258_v6 }
 0x50b   :  { %v1893_v50 = vadd.f32 %v4220_v47, %v1892_v28  ;;  %v367_v54 = vadd.f32 %v7486_v30, %v5114_v24  ;;  %2771 = vmatpush.msrb.mxu0 %v6291_v25  ;;  %v1876_v30 = vpop.f32.mrf.mxu0 }
 0x50c   :  { %v1933_v60 = vadd.f32 %v6239_v62, %v1932_v13  ;;  %2349 = vmatpush.msra.mxu1 %v2218_v51  ;;  %2414 = vmatpush.msra.mxu2 %v2219_v42 }
 0x50d   :  { %v1897_v39 = vsel %vm6263_vm3, %v4220_v47, %v1893_v50  ;;  %v1940_v47 = vand.u32 2147483648, %v6221_v40  ;;  %v2215_v50 = vld [vmem:[#allocation7 + $0x8] sm:$0xff]  ;;  %2772 = vmatpush.msrb.mxu0 %v6306_v52 }
 0x50e   :  { %v1902_v59 = vsel %vm1899_vm4, %v1901_v15, %v1897_v39  ;;  %v1937_v40 = vsel %vm6295_vm7, %v6239_v62, %v1933_v60  ;;  %2350 = vmatpush.msra.mxu1 %v2215_v50  ;;  %2415 = vmatpush.msra.mxu2 %v2216_v38  ;;  %v1915_v60 = vand.u32 2147483648, %v6253_v17  ;;  %v1960_v50 = vadd.f32 %v6275_v55, %v1876_v30 }
 0x50f   :  { %v1961_v28 = vmul.f32 %v1959_v12, %v1902_v59  ;;  %v4228_v13 = vpop.eup %4227  ;;  %v1941_v12 = vor.u32 1.1754944e-38, %v1940_v47  ;;  %v6311_v59 = vld [vmem:[#allocation9 + $0xb0] sm:$0xff]  ;;  %v6316_v47 = vld [vmem:[#allocation9 + $0x98] sm:$0xff] }
 0x510   :  { %v6300_v15 = vpop.eup %4229  ;;  %v1905_v48 = vmul.f32 %v4228_v13, %v6253_v17  ;;  %2773 = vmatpush.msrb.mxu0 %v6311_v59  ;;  %vm1910_vm9 = vweird.f32 %v4228_v13  ;;  %v1916_v38 = vor.u32 1.1754944e-38, %v1915_v60 }
 0x511   :  { %v1963_v53 = vadd.f32 %v1961_v28, %v367_v54  ;;  %v1945_v39 = vmul.f32 %v6300_v15, %v6258_v6  ;;  %v1942_v62 = vsel %vm1939_vm8, %v1941_v12, %v1937_v40  ;;  %v1913_v28 = vand.u32 2147483647, %v6253_v17  ;;  %vm1911_vm11 = vmor %vm1909_vm10, %vm1910_vm9  ;;  %v7489_v17 = vld [vmem:[#allocation46_spill] sm:$0xff] }
 0x512   :  { %v1906_v63 = vsub.f32 1.0, %v1905_v48  ;;  %2774 = vmatpush.msrb.mxu0 %v6316_v47  ;;  %v1967_v51 = vsub.f32 1.0, %v1942_v62  ;;  %v1971_v48 = vmul.f32 %v1942_v62, %v6149_v1  ;;  %vm1950_vm13 = vweird.f32 %v6300_v15  ;;  %v6336_v62 = vld [vmem:[#allocation9 + $0x50] sm:$0xff] }
 0x513   :  { %4231 = vtanh.f32 %v1963_v53  ;;  %v1946_v4 = vsub.f32 1.0, %v1945_v39  ;;  %v6321_v53 = vld [vmem:[#allocation9 + $0x80] sm:$0xff]  ;;  %vm1914_vm12 = vcmp.eq.f32.partialorder %v1913_v28, 8.507059e+37  ;;  %v6326_v39 = vld [vmem:[#allocation9 + $0x68] sm:$0xff]  ;;  %v370_v30 = vadd.f32 %v7489_v17, %v5114_v24  ;;  %vm1951_vm15 = vmor %vm1949_vm14, %vm1950_vm13 }
 0x514   :  { %v1907_v54 = vmul.f32 %v4228_v13, %v1906_v63  ;;  %2775 = vmatpush.msrb.mxu0 %v6321_v53  ;;  %v6369_v17 = vld [vmem:[#allocation9 + $0x148] sm:$0xff]  ;;  %v6457_v24 = vld [vmem:[#allocation9 + $0x10] sm:$0xff] }
 0x515   :  { %v1947_v61 = vmul.f32 %v6300_v15, %v1946_v4 }
 0x516   :  { %v1908_v42 = vadd.f32 %v4228_v13, %v1907_v54  ;;  %2776 = vmatpush.msrb.mxu0 %v6326_v39 }
 0x517   :  { %v1948_v4 = vadd.f32 %v6300_v15, %v1947_v61 }
 0x518   :  { %v1912_v12 = vsel %vm1911_vm11, %v4228_v13, %v1908_v42  ;;  %v1953_v13 = vand.u32 2147483647, %v6258_v6  ;;  %2777 = vmatpush.msrb.mxu0 %v6336_v62  ;;  %v6346_v42 = vld [vmem:[#allocation9 + $0x38] sm:$0xff] }
 0x519   :  { %v4232_v43 = vpop.eup %4231  ;;  %v1917_v63 = vsel %vm1914_vm12, %v1916_v38, %v1912_v12  ;;  %v1952_v61 = vsel %vm1951_vm15, %v6300_v15, %v1948_v4  ;;  %v6355_v15 = vld [vmem:[#allocation9 + $0x178] sm:$0xff]  ;;  %v6359_v38 = vld [vmem:[#allocation9 + $0x8] sm:$0xff] }
 0x51a   :  { %v1969_v40 = vmul.f32 %v4232_v43, %v1967_v51  ;;  %v1962_v54 = vmul.f32 %v1960_v50, %v1917_v63  ;;  %v1955_v51 = vand.u32 2147483648, %v6258_v6  ;;  %2778 = vmatpush.msrb.mxu0 %v6346_v42  ;;  %vm1954_vm0 = vcmp.eq.f32.partialorder %v1953_v13, 8.507059e+37  ;;  %v6350_v6 = vld [vmem:[#allocation9 + $0x20] sm:$0xff] }
 0x51b   :  { %v6391_v13 = vld [vmem:[#allocation9 + $0x100] sm:$0xff] }
 0x51c   :  { %v6333_v60 = vadd.f32 %v1971_v48, %v1969_v40  ;;  %v1964_v28 = vadd.f32 %v1962_v54, %v370_v30  ;;  %v1956_v43 = vor.u32 1.1754944e-38, %v1955_v51  ;;  %2779 = vmatpush.msrb.mxu0 %v6350_v6  ;;  %v6362_v48 = vld [vmem:[#allocation9 + $0x160] sm:$0xff]  ;;  %v6377_v54 = vld [vmem:[#allocation9 + $0x130] sm:$0xff]  ;;  %v6387_v51 = vld [vmem:[#allocation9 + $0x118] sm:$0xff] }
 0x51e   :  { %2047 = vmatmul.f32.vlgmr.msrb.gmra.mxu1 %v6333_v60  ;;  %2070 = vmatmul.f32.vlgmr.msrb.gmra.mxu2 %v6333_v60  ;;  %4233 = vtanh.f32 %v1964_v28  ;;  %v1957_v50 = vsel %vm1954_vm0, %v1956_v43, %v1952_v61  ;;  %v6397_v28 = vld [vmem:[#allocation9 + $0xe8] sm:$0xff]  ;;  %v6407_v61 = vld [vmem:[#allocation9 + $0xd0] sm:$0xff]  ;;  %v7490_v43 = vmov 0.0  }
 0x51f   :  { %2093 = vmatmul.f32.vlgmr.msra.gmra.mxu3 %v6333_v60  ;;  %2322 = vmatmul.f32.gmra.mxu0 %v6333_v60  ;;  %v1968_v40 = vsub.f32 1.0, %v1957_v50  ;;  %v1972_v4 = vmul.f32 %v1957_v50, %v6159_v8  ;;  %v6412_v50 = vld [vmem:[#allocation9 + $0xb8] sm:$0xff] }
 0x520   :  { %2591 = vmatpush.msra.mxu3 %v6237_v57  ;;  %2913 = vmatpush.msrb.mxu2 %v6176_v20 }
 0x521   :  { %2788 = vmatpush.msrb.mxu1 %v6355_v15  ;;  %2780 = vmatpush.msrb.mxu0 %v6359_v38 }
 0x522   :  { %2592 = vmatpush.msra.mxu3 %v6246_v56  ;;  %2914 = vmatpush.msrb.mxu2 %v6179_v14 }
 0x523   :  { %2789 = vmatpush.msrb.mxu1 %v6362_v48  ;;  %2959 = vmatpush.msra.mxu0 %v6355_v15 }
 0x524   :  { %2593 = vmatpush.msra.mxu3 %v6250_v10  ;;  %2915 = vmatpush.msrb.mxu2 %v6182_v9  ;;  %v4234_v12 = vpop.eup %4233 }
 0x525   :  { %v1970_v63 = vmul.f32 %v4234_v12, %v1968_v40  ;;  %2790 = vmatpush.msrb.mxu1 %v6369_v17  ;;  %2960 = vmatpush.msra.mxu0 %v6362_v48  ;;  %v6418_v40 = vld [vmem:[#allocation9 + $0xa0] sm:$0xff]  ;;  %v6431_v12 = vld [vmem:[#allocation9 + $0x70] sm:$0xff] }
 0x526   :  { %2594 = vmatpush.msra.mxu3 %v6260_v0  ;;  %2916 = vmatpush.msrb.mxu2 %v6185_v18 }
 0x527   :  { %v6375_v30 = vadd.f32 %v1972_v4, %v1970_v63  ;;  %2791 = vmatpush.msrb.mxu1 %v6377_v54  ;;  %2961 = vmatpush.msra.mxu0 %v6369_v17  ;;  %v6436_v63 = vld [vmem:[#allocation9 + $0x58] sm:$0xff]  ;;  %v6442_v4 = vld [vmem:[#allocation9 + $0x40] sm:$0xff] }
 0x528   :  { %2595 = vmatpush.msra.mxu3 %v6270_v3  ;;  %2917 = vmatpush.msrb.mxu2 %v6188_v7 }
 0x529   :  { %2050 = vmatmul.f32.gmra.mxu1 %v6375_v30  ;;  %2073 = vmatmul.f32.gmra.mxu2 %v6375_v30 }
 0x52a   :  { %2596 = vmatpush.msra.mxu3 %v6283_v5  ;;  %2325 = vmatmul.f32.gmra.mxu0 %v6375_v30 }
 0x52b   :  { %2096 = vmatmul.f32.gmra.mxu3 %v6375_v30  ;;  %2792 = vmatpush.msrb.mxu1 %v6387_v51 }
 0x52c   :  { %2597 = vmatpush.msra.mxu3 %v6291_v25  ;;  %2918 = vmatpush.msrb.mxu2 %v6195_v23 }
 0x52d   :  { %2793 = vmatpush.msrb.mxu1 %v6391_v13  ;;  %2962 = vmatpush.msra.mxu0 %v6377_v54 }
 0x52e   :  { %2598 = vmatpush.msra.mxu3 %v6306_v52  ;;  %2919 = vmatpush.msrb.mxu2 %v6198_v34 }
 0x52f   :  { %2794 = vmatpush.msrb.mxu1 %v6397_v28  ;;  %2963 = vmatpush.msra.mxu0 %v6387_v51 }
 0x530   :  { %2599 = vmatpush.msra.mxu3 %v6311_v59  ;;  %2920 = vmatpush.msrb.mxu2 %v6201_v2 }
 0x531   :  { %2351 = vmatmul.f32.vlgmr.msra.gmra.mxu1 %v7478_v32  ;;  %2416 = vmatmul.f32.vlgmr.msra.gmra.mxu2 %v7478_v32  ;;  %v6424_v32 = vld [vmem:[#allocation9 + $0x88] sm:$0xff] }
 0x532   :  { %2795 = vmatpush.msrb.mxu1 %v6407_v61  ;;  %2600 = vmatpush.msra.mxu3 %v6316_v47 }
 0x533   :  { %2584 = vmatmul.f32.vlgmr.msrb.gmra.mxu3 %v7490_v43  ;;  %2921 = vmatpush.msrb.mxu2 %v6204_v22 }
 0x534   :  { %2796 = vmatpush.msrb.mxu1 %v6412_v50  ;;  %2964 = vmatpush.msra.mxu0 %v6391_v13 }
 0x535   :  { %2601 = vmatpush.msra.mxu3 %v6321_v53  ;;  %2922 = vmatpush.msrb.mxu2 %v6207_v49 }
 0x536   :  { %2797 = vmatpush.msrb.mxu1 %v6418_v40  ;;  %2965 = vmatpush.msra.mxu0 %v6397_v28 }
 0x537   :  { %2602 = vmatpush.msra.mxu3 %v6326_v39  ;;  %2923 = vmatpush.msrb.mxu2 %v6210_v36 }
 0x538   :  { %2798 = vmatpush.msrb.mxu1 %v6424_v32  ;;  %2966 = vmatpush.msra.mxu0 %v6407_v61 }
 0x539   :  { %2354 = vmatmul.f32.gmra.mxu1 %v7479_v19  ;;  %2419 = vmatmul.f32.gmra.mxu2 %v7479_v19  ;;  %v6448_v19 = vld [vmem:[#allocation9 + $0x28] sm:$0xff] }
 0x53a   :  { %2799 = vmatpush.msrb.mxu1 %v6431_v12  ;;  %2603 = vmatpush.msra.mxu3 %v6336_v62 }
 0x53b   :  { %2587 = vmatmul.f32.gmra.mxu3 %v7490_v43  ;;  %2924 = vmatpush.msrb.mxu2 %v6217_v27 }
 0x53c   :  { %2800 = vmatpush.msrb.mxu1 %v6436_v63  ;;  %2967 = vmatpush.msra.mxu0 %v6412_v50 }
 0x53d   :  { %2604 = vmatpush.msra.mxu3 %v6346_v42  ;;  %2925 = vmatpush.msrb.mxu2 %v6224_v16 }
 0x53e   :  { %2801 = vmatpush.msrb.mxu1 %v6442_v4  ;;  %2968 = vmatpush.msra.mxu0 %v6418_v40 }
 0x53f   :  { %2605 = vmatpush.msra.mxu3 %v6350_v6  ;;  %2926 = vmatpush.msrb.mxu2 %v6229_v58 }
 0x540   :  { %2802 = vmatpush.msrb.mxu1 %v6448_v19  ;;  %2969 = vmatpush.msra.mxu0 %v6424_v32 }
 0x541   :  { %2606 = vmatpush.msra.mxu3 %v6359_v38  ;;  %2357 = vmatmul.f32.gmra.mxu1 %v5437_v45 }
 0x542   :  { %2422 = vmatmul.f32.gmra.mxu2 %v5437_v45  ;;  %2803 = vmatpush.msrb.mxu1 %v6457_v24  ;;  %v7491_v45 = vld [vmem:[#allocation33_spill] sm:$0xff] }
 0x543   :  { %2614 = vmatpush.msrb.mxu3 %v6355_v15  ;;  %2927 = vmatpush.msrb.mxu2 %v6232_v44 }
 0x544   :  { %2607 = vmatmul.f32.vlgmr.msra.gmra.mxu3 %v7490_v43  ;;  %2970 = vmatpush.msra.mxu0 %v6431_v12 }
 0x545   :  { %2615 = vmatpush.msrb.mxu3 %v6362_v48  ;;  %3084 = vmatpush.msra.mxu1 %v6176_v20 }
 0x546   :  { %2928 = vmatpush.msrb.mxu2 %v6235_v29  ;;  %2971 = vmatpush.msra.mxu0 %v6436_v63 }
 0x547   :  { %2616 = vmatpush.msrb.mxu3 %v6369_v17  ;;  %3085 = vmatpush.msra.mxu1 %v6179_v14 }
 0x548   :  { %3107 = vmatpush.msra.mxu2 %v6237_v57  ;;  %2972 = vmatpush.msra.mxu0 %v6442_v4 }
 0x549   :  { %2617 = vmatpush.msrb.mxu3 %v6377_v54  ;;  %2360 = vmatmul.f32.gmra.mxu1 %v5444_v35 }
 0x54a   :  { %2425 = vmatmul.f32.gmra.mxu2 %v5444_v35  ;;  %2973 = vmatpush.msra.mxu0 %v6448_v19  ;;  %v243_v35 = vadd.f32 %v7491_v45, %v7456_v37 }
 0x54b   :  { %2618 = vmatpush.msrb.mxu3 %v6387_v51  ;;  %3108 = vmatpush.msra.mxu2 %v6246_v56 }
 0x54c   :  { %2610 = vmatmul.f32.gmra.mxu3 %v7490_v43  ;;  %2974 = vmatpush.msra.mxu0 %v6457_v24 }
 0x54d   :  { %2619 = vmatpush.msrb.mxu3 %v6391_v13  ;;  %3086 = vmatpush.msra.mxu1 %v6182_v9 }
 0x54e   :  { %3109 = vmatpush.msra.mxu2 %v6250_v10 }
 0x54f   :  { %2620 = vmatpush.msrb.mxu3 %v6397_v28  ;;  %3087 = vmatpush.msra.mxu1 %v6185_v18 }
 0x550   :  { %3110 = vmatpush.msra.mxu2 %v6260_v0 }
 0x551   :  { %2621 = vmatpush.msrb.mxu3 %v6407_v61  ;;  %2363 = vmatmul.f32.gmra.mxu1 %v5719_v26 }
 0x552   :  { %2428 = vmatmul.f32.gmra.mxu2 %v5719_v26  ;;  %3088 = vmatpush.msra.mxu1 %v6188_v7 }
 0x553   :  { %2622 = vmatpush.msrb.mxu3 %v6412_v50  ;;  %3111 = vmatpush.msra.mxu2 %v6270_v3 }
 0x554   :  { %3089 = vmatpush.msra.mxu1 %v6195_v23 }
 0x555   :  { %2623 = vmatpush.msrb.mxu3 %v6418_v40  ;;  %3112 = vmatpush.msra.mxu2 %v6283_v5 }
 0x556   :  { %3090 = vmatpush.msra.mxu1 %v6198_v34 }
 0x557   :  { %2624 = vmatpush.msrb.mxu3 %v6424_v32  ;;  %3113 = vmatpush.msra.mxu2 %v6291_v25 }
 0x558   :  { %3091 = vmatpush.msra.mxu1 %v6201_v2 }
 0x559   :  { %2625 = vmatpush.msrb.mxu3 %v6431_v12  ;;  %2366 = vmatmul.f32.gmra.mxu1 %v5729_v31 }
 0x55a   :  { %3114 = vmatpush.msra.mxu2 %v6306_v52  ;;  %3092 = vmatpush.msra.mxu1 %v6204_v22 }
 0x55b   :  { %2626 = vmatpush.msrb.mxu3 %v6436_v63  ;;  %2431 = vmatmul.f32.gmra.mxu2 %v5729_v31 }
 0x55c   :  { %3115 = vmatpush.msra.mxu2 %v6311_v59  ;;  %3093 = vmatpush.msra.mxu1 %v6207_v49 }
 0x55d   :  { %2627 = vmatpush.msrb.mxu3 %v6442_v4 }
 0x55e   :  { %3116 = vmatpush.msra.mxu2 %v6316_v47  ;;  %3094 = vmatpush.msra.mxu1 %v6210_v36 }
 0x55f   :  { %2628 = vmatpush.msrb.mxu3 %v6448_v19 }
 0x560   :  { %3117 = vmatpush.msra.mxu2 %v6321_v53  ;;  %3095 = vmatpush.msra.mxu1 %v6217_v27 }
 0x561   :  { %2629 = vmatpush.msrb.mxu3 %v6457_v24  ;;  %2369 = vmatmul.f32.gmra.mxu1 %v5772_v33 }
 0x562   :  { %2630 = vmatmul.f32.vlgmr.msrb.gmra.mxu3 %v7490_v43  ;;  %3118 = vmatpush.msra.mxu2 %v6326_v39 }
 0x563   :  { %2434 = vmatmul.f32.gmra.mxu2 %v5772_v33  ;;  %2742 = vmatpush.msra.mxu3 %v6176_v20 }
 0x564   :  { %3119 = vmatpush.msra.mxu2 %v6336_v62  ;;  %3096 = vmatpush.msra.mxu1 %v6224_v16 }
 0x565   :  { %2743 = vmatpush.msra.mxu3 %v6179_v14 }
 0x566   :  { %3120 = vmatpush.msra.mxu2 %v6346_v42  ;;  %3097 = vmatpush.msra.mxu1 %v6229_v58 }
 0x567   :  { %2744 = vmatpush.msra.mxu3 %v6182_v9 }
 0x568   :  { %3121 = vmatpush.msra.mxu2 %v6350_v6  ;;  %3098 = vmatpush.msra.mxu1 %v6232_v44 }
 0x569   :  { %2745 = vmatpush.msra.mxu3 %v6185_v18  ;;  %2372 = vmatmul.f32.gmra.mxu1 %v5778_v46  ;;  %v7493_v18 = vld [vmem:[#allocation35_spill] sm:$0xff] }
 0x56a   :  { %2633 = vmatmul.f32.gmra.mxu3 %v7490_v43  ;;  %3122 = vmatpush.msra.mxu2 %v6359_v38 }
 0x56b   :  { %2437 = vmatmul.f32.gmra.mxu2 %v5778_v46  ;;  %2746 = vmatpush.msra.mxu3 %v6188_v7  ;;  %v7492_v46 = vld [vmem:[#allocation37_spill] sm:$0xff]  ;;  %v246_v7 = vadd.f32 %v7493_v18, %v7456_v37 }
 0x56c   :  { %3099 = vmatpush.msra.mxu1 %v6235_v29 }
 0x56d   :  { %2747 = vmatpush.msra.mxu3 %v6195_v23 }
 0x56f   :  { %2748 = vmatpush.msra.mxu3 %v6198_v34 }
 0x571   :  { %2749 = vmatpush.msra.mxu3 %v6201_v2  ;;  %2375 = vmatmul.f32.gmra.mxu1 %v5987_v21 }
 0x573   :  { %2440 = vmatmul.f32.gmra.mxu2 %v5987_v21  ;;  %2750 = vmatpush.msra.mxu3 %v6204_v22  ;;  %v308_v21 = vadd.f32 %v7492_v46, %v7458_v41 }
 0x575   :  { %2751 = vmatpush.msra.mxu3 %v6207_v49  ;;  %v7494_v49 = vld [vmem:[#allocation38_spill] sm:$0xff] }
 0x577   :  { %2752 = vmatpush.msra.mxu3 %v6210_v36  ;;  %v311_v36 = vadd.f32 %v7494_v49, %v7458_v41 }
 0x579   :  { %2753 = vmatpush.msra.mxu3 %v6217_v27  ;;  %2378 = vmatmul.f32.gmra.mxu1 %v5996_v11 }
 0x57b   :  { %2443 = vmatmul.f32.gmra.mxu2 %v5996_v11  ;;  %2754 = vmatpush.msra.mxu3 %v6224_v16 }
 0x57d   :  { %2755 = vmatpush.msra.mxu3 %v6229_v58 }
 0x57f   :  { %2756 = vmatpush.msra.mxu3 %v6232_v44  ;;  %v6583_v44 = vld [vmem:[%s7363_s7] sm:$0x7] }
 0x581   :  { %2757 = vmatpush.msra.mxu3 %v6235_v29  ;;  %2381 = vmatmul.f32.gmra.mxu1 %v6149_v1 }
 0x583   :  { %2936 = vmatpush.msrb.mxu3 %v6237_v57  ;;  %2446 = vmatmul.f32.gmra.mxu2 %v6149_v1  ;;  %v2287_v57 = vpop.f32.mrf.mxu0 }
 0x585   :  { %2937 = vmatpush.msrb.mxu3 %v6246_v56 }
 0x587   :  { %2938 = vmatpush.msrb.mxu3 %v6250_v10 }
 0x589   :  { %2939 = vmatpush.msrb.mxu3 %v6260_v0  ;;  %2384 = vmatmul.f32.gmra.mxu1 %v6159_v8  ;;  %v6588_v0 = vperm.slane %v6583_v44, 0 }
 0x58b   :  { %2940 = vmatpush.msrb.mxu3 %v6270_v3  ;;  %2449 = vmatmul.f32.gmra.mxu2 %v6159_v8  ;;  %7495 = vst [vmem:[#allocation14_spill] sm:$0xff] %v6588_v0 }
 0x58d   :  { %2941 = vmatpush.msrb.mxu3 %v6283_v5 }
 0x58f   :  { %2942 = vmatpush.msrb.mxu3 %v6291_v25 }
 0x591   :  { %2943 = vmatpush.msrb.mxu3 %v6306_v52  ;;  %2387 = vmatmul.f32.gmra.mxu1 %v6333_v60 }
 0x593   :  { %2944 = vmatpush.msrb.mxu3 %v6311_v59  ;;  %2452 = vmatmul.f32.gmra.mxu2 %v6333_v60 }
 0x595   :  { %2945 = vmatpush.msrb.mxu3 %v6316_v47 }
 0x597   :  { %2946 = vmatpush.msrb.mxu3 %v6321_v53  ;;  %v2288_v53 = vadd.f32 %v2287_v57, %v6588_v0  ;;  %v6604_v57 = vperm.slane %v6583_v44, 1 }
 0x599   :  { %2947 = vmatpush.msrb.mxu3 %v6326_v39  ;;  %2390 = vmatmul.f32.gmra.mxu1 %v6375_v30  ;;  %7498 = vst [vmem:[#allocation19_spill] sm:$0xff] %v6604_v57 }
 0x59b   :  { %v2048_v26 = vpop.f32.mrf.mxu1  ;;  %2948 = vmatpush.msrb.mxu3 %v6336_v62  ;;  %2455 = vmatmul.f32.gmra.mxu2 %v6375_v30 }
 0x59c   :  { %v2100_v31 = vadd.f32 %v2048_v26, %v243_v35 }
 0x59d   :  { %2949 = vmatpush.msrb.mxu3 %v6346_v42 }
 0x59e   :  { %v4049_v33 = vmul.f32 -1.442695, %v2100_v31  ;;  %v7496_v31 = vld [vmem:[#allocation16_spill] sm:$0xff] }
 0x59f   :  { %2950 = vmatpush.msrb.mxu3 %v6350_v6 }
 0x5a0   :  { %4235 = vpow2.f32 %v4049_v33  ;;  %v7497_v33 = vld [vmem:[#allocation47_spill] sm:$0xff] }
 0x5a1   :  { %v2071_v11 = vpop.f32.mrf.mxu2  ;;  %2951 = vmatpush.msrb.mxu3 %v6359_v38  ;;  %v373_v46 = vadd.f32 %v7497_v33, %v7496_v31 }
 0x5a2   :  { %v2140_v1 = vadd.f32 %v2071_v11, %v308_v21  ;;  %v2094_v20 = vpop.f32.mrf.mxu3 }
 0x5a3   :  { %v2180_v6 = vadd.f32 %v6275_v55, %v2094_v20 }
 0x5a4   :  { %v4051_v8 = vmul.f32 -1.442695, %v2140_v1  ;;  %v2290_v1 = vpop.f32.mrf.mxu0 }
 0x5a6   :  { %v4236_v14 = vpop.eup %4235  ;;  %4237 = vpow2.f32 %v4051_v8  ;;  %v2051_v23 = vpop.f32.mrf.mxu1 }
 0x5a7   :  { %v2108_v9 = vadd.f32 1.0, %v4236_v14  ;;  %v2101_v34 = vadd.f32 %v2051_v23, %v246_v7 }
 0x5a9   :  { %4239 = vrcp.f32 %v2108_v9  ;;  %v4050_v22 = vmul.f32 -1.442695, %v2101_v34  ;;  %v2121_v3 = vand.u32 2147483648, %v2108_v9  ;;  %v2119_v52 = vand.u32 2147483647, %v2108_v9 }
 0x5aa   :  { %vm2115_vm2 = vweird.f32 %v2108_v9 }
 0x5ab   :  { %4241 = vpow2.f32 %v4050_v22  ;;  %v2122_v42 = vor.u32 1.1754944e-38, %v2121_v3  ;;  %vm2120_vm4 = vcmp.eq.f32.partialorder %v2119_v52, 8.507059e+37  ;;  %v2291_v22 = vadd.f32 %v2290_v1, %v6588_v0 }
 0x5ac   :  { %v4238_v2 = vpop.eup %4237  ;;  %v2074_v16 = vpop.f32.mrf.mxu2 }
 0x5ad   :  { %v2148_v27 = vadd.f32 1.0, %v4238_v2  ;;  %v2141_v29 = vadd.f32 %v2074_v16, %v311_v36 }
 0x5ae   :  { %v6585_v37 = vpop.f32.mrf.mxu3  ;;  %v2352_v23 = vpop.f32.mrf.mxu1 }
 0x5af   :  { %v4240_v58 = vpop.eup %4239  ;;  %4243 = vrcp.f32 %v2148_v27  ;;  %v4052_v10 = vmul.f32 -1.442695, %v2141_v29  ;;  %v2161_v11 = vand.u32 2147483648, %v2148_v27  ;;  %v2159_v18 = vand.u32 2147483647, %v2148_v27 }
 0x5b0   :  { %v2111_v56 = vmul.f32 %v4240_v58, %v2108_v9  ;;  %vm2116_vm1 = vweird.f32 %v4240_v58  ;;  %vm2155_vm6 = vweird.f32 %v2148_v27 }
 0x5b1   :  { %4245 = vpow2.f32 %v4052_v10  ;;  %v4242_v5 = vpop.eup %4241  ;;  %vm2117_vm3 = vmor %vm2115_vm2, %vm2116_vm1  ;;  %v2162_v16 = vor.u32 1.1754944e-38, %v2161_v11  ;;  %vm2160_vm8 = vcmp.eq.f32.partialorder %v2159_v18, 8.507059e+37 }
 0x5b2   :  { %v2112_v41 = vsub.f32 1.0, %v2111_v56  ;;  %v6590_v47 = vadd.f32 1.0, %v4242_v5 }
 0x5b4   :  { %v2113_v25 = vmul.f32 %v4240_v58, %v2112_v41  ;;  %4247 = vrcp.f32 %v6590_v47  ;;  %v2134_v5 = vand.u32 2147483647, %v6590_v47  ;;  %vm2130_vm10 = vweird.f32 %v6590_v47 }
 0x5b5   :  { %v4244_v59 = vpop.eup %4243 }
 0x5b6   :  { %v2151_v39 = vmul.f32 %v4244_v59, %v2148_v27  ;;  %v2114_v62 = vadd.f32 %v4240_v58, %v2113_v25  ;;  %v2585_v38 = vpop.f32.mrf.mxu3  ;;  %vm2156_vm5 = vweird.f32 %v4244_v59  ;;  %v2136_v27 = vand.u32 2147483648, %v6590_v47 }
 0x5b7   :  { %v2637_v35 = vadd.f32 %v2585_v38, %v2288_v53  ;;  %v4246_v26 = vpop.eup %4245  ;;  %vm2157_vm7 = vmor %vm2155_vm6, %vm2156_vm5  ;;  %v2353_v38 = vadd.f32 %v2352_v23, %v6604_v57  ;;  %vm2135_vm12 = vcmp.eq.f32.partialorder %v2134_v5, 8.507059e+37 }
 0x5b8   :  { %v2152_v43 = vsub.f32 1.0, %v2151_v39  ;;  %v2118_v45 = vsel %vm2117_vm3, %v4240_v58, %v2114_v62  ;;  %v6597_v14 = vadd.f32 1.0, %v4246_v26 }
 0x5b9   :  { %v2123_v21 = vsel %vm2120_vm4, %v2122_v42, %v2118_v45  ;;  %v4053_v9 = vmul.f32 -1.442695, %v2637_v35  ;;  %v2137_v45 = vor.u32 1.1754944e-38, %v2136_v27 }
 0x5ba   :  { %v2182_v8 = vmul.f32 %v2180_v6, %v2123_v21  ;;  %v2153_v20 = vmul.f32 %v4244_v59, %v2152_v43  ;;  %4249 = vrcp.f32 %v6597_v14  ;;  %v4248_v2 = vpop.eup %4247  ;;  %v2181_v6 = vadd.f32 %v6275_v55, %v6585_v37  ;;  %v2355_v21 = vpop.f32.mrf.mxu1  ;;  %v7499_v55 = vld [vmem:[#allocation48_spill] sm:$0xff] }
 0x5bb   :  { %4251 = vpow2.f32 %v4053_v9  ;;  %v2126_v49 = vmul.f32 %v4248_v2, %v6590_v47  ;;  %vm2131_vm9 = vweird.f32 %v4248_v2  ;;  %v376_v37 = vadd.f32 %v7499_v55, %v7496_v31 }
 0x5bc   :  { %v2184_v7 = vadd.f32 %v2182_v8, %v373_v46  ;;  %v2154_v34 = vadd.f32 %v4244_v59, %v2153_v20  ;;  %vm2132_vm11 = vmor %vm2130_vm10, %vm2131_vm9  ;;  %v2176_v20 = vand.u32 2147483648, %v6597_v14  ;;  %vm2170_vm14 = vweird.f32 %v6597_v14 }
 0x5bd   :  { %v2127_v29 = vsub.f32 1.0, %v2126_v49 }
 0x5be   :  { %4253 = vtanh.f32 %v2184_v7  ;;  %v2158_v36 = vsel %vm2157_vm7, %v4244_v59, %v2154_v34  ;;  %v2588_v58 = vpop.f32.mrf.mxu3  ;;  %v6609_v59 = vpop.f32.mrf.mxu2  ;;  %v2174_v7 = vand.u32 2147483647, %v6597_v14 }
 0x5bf   :  { %v2638_v56 = vadd.f32 %v2588_v58, %v2291_v22  ;;  %v2163_v10 = vsel %vm2160_vm8, %v2162_v16, %v2158_v36  ;;  %v2128_v3 = vmul.f32 %v4248_v2, %v2127_v29  ;;  %v2356_v16 = vadd.f32 %v2355_v21, %v6604_v57 }
 0x5c0   :  { %v4250_v41 = vpop.eup %4249  ;;  %v2188_v39 = vsub.f32 1.0, %v2163_v10  ;;  %v2192_v26 = vmul.f32 %v2163_v10, %v6333_v60  ;;  %vm2175_vm0 = vcmp.eq.f32.partialorder %v2174_v7, 8.507059e+37 }
 0x5c1   :  { %v4252_v25 = vpop.eup %4251  ;;  %v2166_v52 = vmul.f32 %v4250_v41, %v6597_v14  ;;  %v4054_v53 = vmul.f32 -1.442695, %v2638_v56  ;;  %v2129_v42 = vadd.f32 %v4248_v2, %v2128_v3  ;;  %vm2171_vm13 = vweird.f32 %v4250_v41 }
 0x5c2   :  { %v6616_v46 = vadd.f32 1.0, %v4252_v25  ;;  %vm2172_vm15 = vmor %vm2170_vm14, %vm2171_vm13  ;;  %v6630_v14 = vpop.f32.mrf.mxu1 }
 0x5c3   :  { %v2167_v43 = vsub.f32 1.0, %v2166_v52  ;;  %v2133_v33 = vsel %vm2132_vm11, %v4248_v2, %v2129_v42  ;;  %4255 = vpow2.f32 %v4054_v53  ;;  %v2177_v2 = vor.u32 1.1754944e-38, %v2176_v20 }
 0x5c4   :  { %v4254_v62 = vpop.eup %4253  ;;  %v2138_v11 = vsel %vm2135_vm12, %v2137_v45, %v2133_v33  ;;  %4257 = vrcp.f32 %v6616_v46  ;;  %v6658_v20 = vperm.slane %v6583_v44, 2  ;;  %vm2652_vm2 = vweird.f32 %v6616_v46 }
 0x5c5   :  { %v2190_v35 = vmul.f32 %v4254_v62, %v2188_v39  ;;  %v2168_v1 = vmul.f32 %v4250_v41, %v2167_v43  ;;  %v2183_v8 = vmul.f32 %v2181_v6, %v2138_v11 }
 0x5c6   :  { %v6625_v49 = vpop.f32.mrf.mxu2 }
 0x5c7   :  { %v2194_v47 = vadd.f32 %v2192_v26, %v2190_v35  ;;  %v2608_v9 = vpop.f32.mrf.mxu3  ;;  %v2169_v60 = vadd.f32 %v4250_v41, %v2168_v1  ;;  %v2185_v23 = vadd.f32 %v2183_v8, %v376_v37 }
 0x5c8   :  { %v2677_v18 = vadd.f32 %v2608_v9, %v2353_v38  ;;  %v2658_v9 = vand.u32 2147483648, %v6616_v46 }
 0x5c9   :  { %2328 = vmatmul.f32.gmra.mxu0 %v2194_v47  ;;  %2393 = vmatmul.f32.gmra.mxu1 %v2194_v47  ;;  %v2173_v31 = vsel %vm2172_vm15, %v4250_v41, %v2169_v60  ;;  %4259 = vtanh.f32 %v2185_v23  ;;  %v4256_v22 = vpop.eup %4255  ;;  %v6632_v41 = vpop.f32.mrf.mxu0  ;;  %v6665_v60 = vld [vmem:[%s7364_s8] ss:$0 sm:$0xff] }
 0x5ca   :  { %2458 = vmatmul.f32.gmra.mxu2 %v2194_v47  ;;  %v4055_v34 = vmul.f32 -1.442695, %v2677_v18  ;;  %v2178_v36 = vsel %vm2175_vm0, %v2177_v2, %v2173_v31  ;;  %v6628_v58 = vadd.f32 1.0, %v4256_v22  ;;  %v4258_v56 = vpop.eup %4257  ;;  %v2656_v18 = vand.u32 2147483647, %v6616_v46 }
 0x5cb   :  { %v2189_v27 = vsub.f32 1.0, %v2178_v36  ;;  %v2193_v52 = vmul.f32 %v2178_v36, %v6375_v30  ;;  %v2648_v42 = vmul.f32 %v4258_v56, %v6616_v46  ;;  %v6644_v30 = vpop.f32.mrf.mxu1  ;;  %vm2653_vm1 = vweird.f32 %v4258_v56 }
 0x5cc   :  { %4261 = vpow2.f32 %v4055_v34  ;;  %vm2654_vm3 = vmor %vm2652_vm2, %vm2653_vm1  ;;  %v2659_v36 = vor.u32 1.1754944e-38, %v2658_v9  ;;  %vm2657_vm4 = vcmp.eq.f32.partialorder %v2656_v18, 8.507059e+37  ;;  %vm2667_vm9 = vweird.f32 %v6628_v58 }
 0x5cd   :  { %4263 = vrcp.f32 %v6628_v58  ;;  %v2649_v38 = vsub.f32 1.0, %v2648_v42 }
 0x5ce   :  { %v6639_v6 = vpop.f32.mrf.mxu2 }
 0x5cf   :  { %v2611_v29 = vpop.f32.mrf.mxu3  ;;  %v4260_v3 = vpop.eup %4259  ;;  %v2650_v21 = vmul.f32 %v4258_v56, %v2649_v38  ;;  %v2671_v38 = vand.u32 2147483647, %v6628_v58 }
 0x5d0   :  { %v2678_v10 = vadd.f32 %v2611_v29, %v2356_v16  ;;  %v2191_v25 = vmul.f32 %v4260_v3, %v2189_v27  ;;  %v2418_v16 = vadd.f32 %v6609_v59, %v6658_v20  ;;  %v2673_v59 = vand.u32 2147483648, %v6628_v58 }
 0x5d1   :  { %v6646_v35 = vpop.f32.mrf.mxu0  ;;  %v2651_v37 = vadd.f32 %v4258_v56, %v2650_v21  ;;  %vm2672_vm12 = vcmp.eq.f32.partialorder %v2671_v38, 8.507059e+37  ;;  %v6729_v38 = vld [vmem:[#allocation9 + $0x150] sm:$0xff] }
 0x5d2   :  { %v4056_v5 = vmul.f32 -1.442695, %v2678_v10  ;;  %v4262_v53 = vpop.eup %4261  ;;  %v2195_v62 = vadd.f32 %v2193_v52, %v2191_v25 }
 0x5d3   :  { %v6636_v39 = vadd.f32 1.0, %v4262_v53  ;;  %v6642_v43 = vpop.eup %4263  ;;  %v6669_v34 = vpop.f32.mrf.mxu1  ;;  %v2655_v44 = vsel %vm2654_vm3, %v4258_v56, %v2651_v37  ;;  %v2674_v37 = vor.u32 1.1754944e-38, %v2673_v59 }
 0x5d4   :  { %4265 = vpow2.f32 %v4056_v5  ;;  %2331 = vmatmul.f32.gmra.mxu0 %v2195_v62  ;;  %2396 = vmatmul.f32.gmra.mxu1 %v2195_v62  ;;  %v2663_v11 = vmul.f32 %v6642_v43, %v6628_v58  ;;  %7500 = vst [vmem:[#allocation15_spill] sm:$0xff] %v6669_v34  ;;  %v2660_v3 = vsel %vm2657_vm4, %v2659_v36, %v2655_v44  ;;  %vm2668_vm6 = vweird.f32 %v6642_v43 }
 0x5d5   :  { %4267 = vrcp.f32 %v6636_v39  ;;  %2461 = vmatmul.f32.gmra.mxu2 %v2195_v62  ;;  %v2698_v5 = vand.u32 2147483648, %v6636_v39  ;;  %vm2692_vm7 = vweird.f32 %v6636_v39  ;;  %v2696_v52 = vand.u32 2147483647, %v6636_v39  ;;  %vm2669_vm10 = vmor %vm2667_vm9, %vm2668_vm6 }
 0x5d6   :  { %v6654_v55 = vpop.f32.mrf.mxu2  ;;  %v2664_v8 = vsub.f32 1.0, %v2663_v11 }
 0x5d7   :  { %vm2697_vm11 = vcmp.eq.f32.partialorder %v2696_v52, 8.507059e+37  ;;  %v6725_v52 = vld [vmem:[#allocation9 + $0x170] sm:$0xff] }
 0x5d8   :  { %v2665_v2 = vmul.f32 %v6642_v43, %v2664_v8 }
 0x5d9   :  { %v6674_v22 = vpop.f32.mrf.mxu0 }
 0x5da   :  { %v4266_v45 = vpop.eup %4265  ;;  %7501 = vst [vmem:[#allocation22_spill] sm:$0xff] %v6674_v22  ;;  %v2666_v56 = vadd.f32 %v6642_v43, %v2665_v2 }
 0x5db   :  { %v6648_v26 = vadd.f32 1.0, %v4266_v45  ;;  %v4268_v33 = vpop.eup %4267 }
 0x5dc   :  { %v2688_v47 = vmul.f32 %v4268_v33, %v6636_v39  ;;  %vm2693_vm5 = vweird.f32 %v4268_v33  ;;  %v2699_v39 = vor.u32 1.1754944e-38, %v2698_v5  ;;  %v2670_v11 = vsel %vm2669_vm10, %v6642_v43, %v2666_v56  ;;  %v6722_v56 = vld [vmem:[#allocation9 + $0x168] sm:$0xff] }
 0x5dd   :  { %4269 = vrcp.f32 %v6648_v26  ;;  %vm6685_vm8 = vmor %vm2692_vm7, %vm2693_vm5  ;;  %v2713_v43 = vand.u32 2147483648, %v6648_v26  ;;  %vm2707_vm14 = vweird.f32 %v6648_v26  ;;  %v2711_v44 = vand.u32 2147483647, %v6648_v26 }
 0x5de   :  { %v2689_v1 = vsub.f32 1.0, %v2688_v47  ;;  %v6689_v62 = vpop.f32.mrf.mxu2  ;;  %v6697_v47 = vpop.f32.mrf.mxu1 }
 0x5df   :  { %7504 = vst [vmem:[#allocation20_spill] sm:$0xff] %v6689_v62  ;;  %vm2712_vm0 = vcmp.eq.f32.partialorder %v2711_v44, 8.507059e+37  ;;  %v6803_v44 = vld [vmem:[#allocation9 + $0x90] sm:$0xff] }
 0x5e0   :  { %v2690_v23 = vmul.f32 %v4268_v33, %v2689_v1  ;;  %7505 = vst [vmem:[#allocation24_spill] sm:$0xff] %v6697_v47 }
 0x5e1   :  { %v6700_v58 = vpop.f32.mrf.mxu0 }
 0x5e2   :  { %v2691_v10 = vadd.f32 %v4268_v33, %v2690_v23  ;;  %7506 = vst [vmem:[#allocation39_spill] sm:$0xff] %v6700_v58  ;;  %v2421_v23 = vadd.f32 %v6625_v49, %v6658_v20 }
 0x5e3   :  { %v6667_v7 = vpop.eup %4269 }
 0x5e4   :  { %v2703_v31 = vmul.f32 %v6667_v7, %v6648_v26  ;;  %v2695_v21 = vsel %vm6685_vm8, %v4268_v33, %v2691_v10  ;;  %vm2708_vm13 = vweird.f32 %v6667_v7  ;;  %v2675_v33 = vsel %vm2672_vm12, %v2674_v37, %v2670_v11  ;;  %v6753_v11 = vld [vmem:[#allocation9 + $0x120] sm:$0xff]  ;;  %v6762_v37 = vld [vmem:[#allocation9 + $0x108] sm:$0xff] }
 0x5e5   :  { %v2631_v46 = vpop.f32.mrf.mxu3  ;;  %v2700_v8 = vsel %vm2697_vm11, %v2699_v39, %v2695_v21  ;;  %vm2709_vm15 = vmor %vm2707_vm14, %vm2708_vm13  ;;  %v6738_v21 = vld [vmem:[#allocation9 + $0x138] sm:$0xff]  ;;  %v6741_v39 = vld [vmem:[#allocation9 + $0x140] sm:$0xff] }
 0x5e6   :  { %v2720_v29 = vadd.f32 %v6665_v60, %v2631_v46  ;;  %v2704_v27 = vsub.f32 1.0, %v2703_v31  ;;  %v2728_v2 = vsub.f32 1.0, %v2700_v8  ;;  %v2732_v10 = vmul.f32 0.0, %v2700_v8  ;;  %v6765_v8 = vld [vmem:[#allocation9 + $0x110] sm:$0xff] }
 0x5e8   :  { %v2722_v25 = vmul.f32 %v2720_v29, %v2660_v3  ;;  %v2705_v45 = vmul.f32 %v6667_v7, %v2704_v27  ;;  %v2714_v27 = vor.u32 1.1754944e-38, %v2713_v43  ;;  %v6710_v3 = vpop.f32.mrf.mxu2  ;;  %v6794_v43 = vld [vmem:[#allocation9 + $0xa8] sm:$0xff] }
 0x5e9   :  { %7507 = vst [vmem:[#allocation40_spill] sm:$0xff] %v6710_v3  ;;  %v6720_v26 = vpop.f32.mrf.mxu0 }
 0x5ea   :  { %v2724_v42 = vadd.f32 %v2722_v25, %v2418_v16  ;;  %v2706_v18 = vadd.f32 %v6667_v7, %v2705_v45  ;;  %v6714_v25 = vpop.f32.mrf.mxu1  ;;  %7509 = vst [vmem:[#allocation26_spill] sm:$0xff] %v6720_v26 }
 0x5eb   :  { %7508 = vst [vmem:[#allocation21_spill] sm:$0xff] %v6714_v25 }
 0x5ec   :  { %4271 = vtanh.f32 %v2724_v42  ;;  %v2710_v29 = vsel %vm2709_vm15, %v6667_v7, %v2706_v18  ;;  %v6779_v18 = vld [vmem:[#allocation9 + $0xe0] sm:$0xff] }
 0x5ed   :  { %v2634_v1 = vpop.f32.mrf.mxu3  ;;  %v2715_v5 = vsel %vm2712_vm0, %v2714_v27, %v2710_v29  ;;  %v6829_v29 = vld [vmem:[#allocation9 + $0x50] sm:$0xff]  ;;  %v6838_v27 = vld [vmem:[#allocation9 + $0x38] sm:$0xff] }
 0x5ee   :  { %v2721_v9 = vadd.f32 %v6665_v60, %v2634_v1  ;;  %v2729_v7 = vsub.f32 1.0, %v2715_v5  ;;  %v2733_v42 = vmul.f32 0.0, %v2715_v5  ;;  %v6756_v1 = vld [vmem:[#allocation9 + $0x128] sm:$0xff]  ;;  %7522 = vst [vmem:[#allocation29_spill] sm:$0xff] %v6829_v29  ;;  %v6844_v5 = vld [vmem:[#allocation9 + $0x18] sm:$0xff] }
 0x5ef   :  { %7525 = vst [vmem:[#allocation36_spill] sm:$0xff] %v6838_v27 }
 0x5f0   :  { %v2723_v31 = vmul.f32 %v2721_v9, %v2675_v33  ;;  %v6772_v9 = vld [vmem:[#allocation9 + $0xf8] sm:$0xff]  ;;  %7527 = vst [vmem:[#allocation46_spill] sm:$0xff] %v6844_v5 }
 0x5f2   :  { %v4272_v46 = vpop.eup %4271  ;;  %v2725_v36 = vadd.f32 %v2723_v31, %v2421_v23  ;;  %v6788_v23 = vld [vmem:[#allocation9 + $0xc8] sm:$0xff]  ;;  %v6797_v31 = vld [vmem:[#allocation9 + $0xb0] sm:$0xff] }
 0x5f3   :  { %v2730_v16 = vmul.f32 %v4272_v46, %v2728_v2  ;;  %v6806_v2 = vld [vmem:[#allocation9 + $0x98] sm:$0xff]  ;;  %v6813_v46 = vld [vmem:[#allocation9 + $0x80] sm:$0xff] }
 0x5f4   :  { %4273 = vtanh.f32 %v2725_v36  ;;  %7517 = vst [vmem:[#allocation27_spill] sm:$0xff] %v6813_v46  ;;  %v6820_v36 = vld [vmem:[#allocation9 + $0x68] sm:$0xff] }
 0x5f5   :  { %v6712_v49 = vadd.f32 %v2732_v10, %v2730_v16  ;;  %7519 = vst [vmem:[#allocation44_spill] sm:$0xff] %v6820_v36  ;;  %v6835_v10 = vld [vmem:[#allocation9 + $0x30] sm:$0xff] }
 0x5f6   :  { %7524 = vst [vmem:[#allocation31_spill] sm:$0xff] %v6835_v10 }
 0x5f7   :  { %2758 = vmatmul.f32.vlgmr.msra.gmra.mxu3 %v6712_v49  ;;  %2781 = vmatmul.f32.vlgmr.msrb.gmra.mxu0 %v6712_v49 }
 0x5f8   :  { %2804 = vmatmul.f32.vlgmr.msrb.gmra.mxu1 %v6712_v49  ;;  %3130 = vmatpush.msra.mxu3 %v6355_v15  ;;  %v6732_v15 = vld [vmem:[#allocation9 + $0x158] sm:$0xff] }
 0x5f9   :  { %3255 = vmatpush.msrb.mxu0 %v6722_v56  ;;  %3278 = vmatpush.msrb.mxu1 %v6725_v52 }
 0x5fa   :  { %v4274_v59 = vpop.eup %4273  ;;  %3131 = vmatpush.msra.mxu3 %v6362_v48  ;;  %v6744_v48 = vpop.f32.mrf.mxu2 }
 0x5fb   :  { %v2731_v53 = vmul.f32 %v4274_v59, %v2729_v7  ;;  %3256 = vmatpush.msrb.mxu0 %v6729_v38  ;;  %3279 = vmatpush.msrb.mxu1 %v6732_v15  ;;  %7511 = vst [vmem:[#allocation28_spill] sm:$0xff] %v6744_v48  ;;  %v6847_v7 = vld [vmem:[#allocation9 + $0x20] sm:$0xff]  ;;  %v6853_v59 = vld [vmem:[#allocation9 + $0x8] sm:$0xff] }
 0x5fc   :  { %3132 = vmatpush.msra.mxu3 %v6369_v17  ;;  %v6751_v17 = vpop.f32.mrf.mxu1  ;;  %7528 = vst [vmem:[#allocation33_spill] sm:$0xff] %v6847_v7 }
 0x5fd   :  { %v6736_v45 = vadd.f32 %v2733_v42, %v2731_v53  ;;  %3257 = vmatpush.msrb.mxu0 %v6738_v21  ;;  %3280 = vmatpush.msrb.mxu1 %v6741_v39  ;;  %7512 = vst [vmem:[#allocation41_spill] sm:$0xff] %v6751_v17 }
 0x5fe   :  { %3133 = vmatpush.msra.mxu3 %v6377_v54  ;;  %v6760_v54 = vpop.f32.mrf.mxu0  ;;  %7530 = vst [vmem:[#allocation35_spill] sm:$0xff] %v6853_v59 }
 0x5ff   :  { %7510 = vst [vmem:[#allocation23_spill] sm:$0xff] %v6736_v45  ;;  %2761 = vmatmul.f32.gmra.mxu3 %v6736_v45  ;;  %2784 = vmatmul.f32.gmra.mxu0 %v6736_v45 }
 0x600   :  { %2807 = vmatmul.f32.gmra.mxu1 %v6736_v45  ;;  %3134 = vmatpush.msra.mxu3 %v6387_v51  ;;  %7513 = vst [vmem:[#allocation42_spill] sm:$0xff] %v6760_v54  ;;  %v6769_v51 = vld [vmem:[#allocation9 + $0xf0] sm:$0xff] }
 0x601   :  { %3258 = vmatpush.msrb.mxu0 %v6753_v11  ;;  %3281 = vmatpush.msrb.mxu1 %v6756_v1 }
 0x602   :  { %3135 = vmatpush.msra.mxu3 %v6391_v13  ;;  %v6776_v13 = vld [vmem:[#allocation9 + $0xd8] sm:$0xff]  ;;  %v6782_v33 = vpop.f32.mrf.mxu2 }
 0x603   :  { %3259 = vmatpush.msrb.mxu0 %v6762_v37  ;;  %3282 = vmatpush.msrb.mxu1 %v6765_v8  ;;  %7514 = vst [vmem:[#allocation30_spill] sm:$0xff] %v6782_v33 }
 0x604   :  { %3136 = vmatpush.msra.mxu3 %v6397_v28  ;;  %v6785_v28 = vld [vmem:[#allocation9 + $0xc0] sm:$0xff] }
 0x605   :  { %3260 = vmatpush.msrb.mxu0 %v6769_v51  ;;  %3283 = vmatpush.msrb.mxu1 %v6772_v9 }
 0x606   :  { %3137 = vmatpush.msra.mxu3 %v6407_v61  ;;  %v6792_v61 = vpop.f32.mrf.mxu1 }
 0x607   :  { %3261 = vmatpush.msrb.mxu0 %v6776_v13  ;;  %3284 = vmatpush.msrb.mxu1 %v6779_v18  ;;  %7515 = vst [vmem:[#allocation25_spill] sm:$0xff] %v6792_v61 }
 0x608   :  { %3138 = vmatpush.msra.mxu3 %v6412_v50  ;;  %v6801_v50 = vpop.f32.mrf.mxu0 }
 0x609   :  { %3262 = vmatpush.msrb.mxu0 %v6785_v28  ;;  %3285 = vmatpush.msrb.mxu1 %v6788_v23  ;;  %7516 = vst [vmem:[#allocation32_spill] sm:$0xff] %v6801_v50 }
 0x60a   :  { %3139 = vmatpush.msra.mxu3 %v6418_v40  ;;  %v6810_v40 = vld [vmem:[#allocation9 + $0x78] sm:$0xff]  ;;  %v6823_v16 = vpop.f32.mrf.mxu2 }
 0x60b   :  { %3263 = vmatpush.msrb.mxu0 %v6794_v43  ;;  %3286 = vmatpush.msrb.mxu1 %v6797_v31  ;;  %7520 = vst [vmem:[#allocation17_spill] sm:$0xff] %v6823_v16 }
 0x60c   :  { %3140 = vmatpush.msra.mxu3 %v6424_v32  ;;  %v6817_v32 = vld [vmem:[#allocation9 + $0x60] sm:$0xff] }
 0x60d   :  { %3264 = vmatpush.msrb.mxu0 %v6803_v44  ;;  %3287 = vmatpush.msrb.mxu1 %v6806_v2  ;;  %7518 = vst [vmem:[#allocation43_spill] sm:$0xff] %v6817_v32 }
 0x60e   :  { %3141 = vmatpush.msra.mxu3 %v6431_v12  ;;  %v6826_v12 = vld [vmem:[#allocation9 + $0x48] sm:$0xff] }
 0x60f   :  { %3265 = vmatpush.msrb.mxu0 %v6810_v40  ;;  %3288 = vmatpush.msrb.mxu1 %v6813_v46  ;;  %7521 = vst [vmem:[#allocation18_spill] sm:$0xff] %v6826_v12 }
 0x610   :  { %3142 = vmatpush.msra.mxu3 %v6436_v63  ;;  %v6833_v63 = vpop.f32.mrf.mxu1 }
 0x611   :  { %3266 = vmatpush.msrb.mxu0 %v6817_v32  ;;  %3289 = vmatpush.msrb.mxu1 %v6820_v36  ;;  %7523 = vst [vmem:[#allocation34_spill] sm:$0xff] %v6833_v63 }
 0x612   :  { %3143 = vmatpush.msra.mxu3 %v6442_v4  ;;  %v6842_v4 = vpop.f32.mrf.mxu0  ;;  %v6856_v53 = vpop.f32.mrf.mxu2 }
 0x613   :  { %3267 = vmatpush.msrb.mxu0 %v6826_v12  ;;  %3290 = vmatpush.msrb.mxu1 %v6829_v29  ;;  %7526 = vst [vmem:[#allocation45_spill] sm:$0xff] %v6842_v4 }
 0x614   :  { %3144 = vmatpush.msra.mxu3 %v6448_v19  ;;  %v6850_v19 = vld [vmem:[#allocation9] sm:$0xff]  ;;  %7531 = vst [vmem:[#allocation38_spill] sm:$0xff] %v6856_v53 }
 0x615   :  { %3268 = vmatpush.msrb.mxu0 %v6835_v10  ;;  %3291 = vmatpush.msrb.mxu1 %v6838_v27  ;;  %7529 = vst [vmem:[#allocation37_spill] sm:$0xff] %v6850_v19 }
 0x616   :  { %3145 = vmatpush.msra.mxu3 %v6457_v24 }
 0x617   :  { %3269 = vmatpush.msrb.mxu0 %v6844_v5  ;;  %3292 = vmatpush.msrb.mxu1 %v6847_v7 }
 0x618   :  { %v6858_v24 = vpop.f32.mrf.mxu1 }
 0x619   :  { %3270 = vmatpush.msrb.mxu0 %v6850_v19  ;;  %3293 = vmatpush.msrb.mxu1 %v6853_v59  ;;  %7532 = vst [vmem:[#allocation16_spill] sm:$0xff] %v6858_v24 }
 0x61a   :  { %v6860_v42 = vpop.f32.mrf.mxu0  ;;  %v6862_v16 = vpop.f32.mrf.mxu2 }
 0x61b   :  { %7533 = vst [vmem:[#allocation47_spill] sm:$0xff] %v6860_v42 }
 0x61c   :  { %7534 = vst [vmem:[#allocation48_spill] sm:$0xff] %v6862_v16 }
 0x620   :  { %v6864_v63 = vpop.f32.mrf.mxu1 }
 0x621   :  { %7535 = vst [vmem:[#allocation49_spill] sm:$0xff] %v6864_v63 }
 0x622   :  { %v6866_v4 = vpop.f32.mrf.mxu0  ;;  %v6868_v61 = vpop.f32.mrf.mxu2 }
 0x623   :  { %7536 = vst [vmem:[#allocation50_spill] sm:$0xff] %v6866_v4 }
 0x624   :  { %7537 = vst [vmem:[#allocation51_spill] sm:$0xff] %v6868_v61  ;;  %v2359_v61 = vadd.f32 %v6630_v14, %v6604_v57  ;;  %v2297_v14 = vadd.f32 %v6646_v35, %v6588_v0 }
 0x628   :  { %v6872_v33 = vpop.f32.mrf.mxu1 }
 0x629   :  { %7539 = vst [vmem:[#allocation53_spill] sm:$0xff] %v6872_v33 }
 0x62a   :  { %v6870_v50 = vpop.f32.mrf.mxu0  ;;  %v6874_v48 = vpop.f32.mrf.mxu2 }
 0x62b   :  { %7538 = vst [vmem:[#allocation52_spill] sm:$0xff] %v6870_v50 }
 0x62c   :  { %7540 = vst [vmem:[#allocation54_spill] sm:$0xff] %v6874_v48  ;;  %v2294_v48 = vadd.f32 %v6632_v41, %v6588_v0 }
 0x630   :  { %v6878_v53 = vpop.f32.mrf.mxu1 }
 0x631   :  { %7542 = vst [vmem:[#allocation56_spill] sm:$0xff] %v6878_v53  ;;  %v2362_v53 = vadd.f32 %v6644_v30, %v6604_v57 }
 0x632   :  { %v6876_v17 = vpop.f32.mrf.mxu0  ;;  %v6880_v24 = vpop.f32.mrf.mxu2 }
 0x633   :  { %7541 = vst [vmem:[#allocation55_spill] sm:$0xff] %v6876_v17 }
 0x634   :  { %7543 = vst [vmem:[#allocation57_spill] sm:$0xff] %v6880_v24 }
 0x646   :  { %v2329_v42 = vpop.f32.mrf.mxu0  ;;  %v2394_v16 = vpop.f32.mrf.mxu1 }
 0x64d   :  { %v2459_v54 = vpop.f32.mrf.mxu2 }
 0x651   :  { %v6882_v63 = vpop.f32.mrf.mxu0 }
 0x652   :  { %7544 = vst [vmem:[#allocation58_spill] sm:$0xff] %v6882_v63 }
 0x674   :  { %v2782_v4 = vpop.f32.mrf.mxu0 }
 0x675   :  { %v2851_v50 = vadd.f32 %v2782_v4, %v2359_v61 }
 0x677   :  { %v4059_v25 = vmul.f32 -1.442695, %v2851_v50 }
 0x679   :  { %4275 = vpow2.f32 %v4059_v25 }
 0x67a   :  { %v2759_v17 = vpop.f32.mrf.mxu3 }
 0x67b   :  { %v2811_v24 = vadd.f32 %v2759_v17, %v2294_v48 }
 0x67c   :  { %v2785_v42 = vpop.f32.mrf.mxu0 }
 0x67d   :  { %v4057_v16 = vmul.f32 -1.442695, %v2811_v24  ;;  %v2852_v54 = vadd.f32 %v2785_v42, %v2362_v53  ;;  %v6897_v53 = vpop.f32.mrf.mxu1 }
 0x67e   :  { %7545 = vst [vmem:[#allocation59_spill] sm:$0xff] %v6897_v53 }
 0x67f   :  { %v4276_v33 = vpop.eup %4275  ;;  %4277 = vpow2.f32 %v4057_v16  ;;  %v4060_v63 = vmul.f32 -1.442695, %v2852_v54 }
 0x680   :  { %v6890_v26 = vadd.f32 1.0, %v4276_v33 }
 0x681   :  { %4279 = vpow2.f32 %v4060_v63 }
 0x682   :  { %v2762_v61 = vpop.f32.mrf.mxu3  ;;  %4281 = vrcp.f32 %v6890_v26  ;;  %v2872_v57 = vand.u32 2147483648, %v6890_v26  ;;  %vm2866_vm6 = vweird.f32 %v6890_v26 }
 0x683   :  { %v2812_v41 = vadd.f32 %v2762_v61, %v2297_v14 }
 0x685   :  { %v4278_v25 = vpop.eup %4277  ;;  %v4058_v50 = vmul.f32 -1.442695, %v2812_v41  ;;  %v2805_v61 = vpop.f32.mrf.mxu1 }
 0x686   :  { %v2819_v30 = vadd.f32 1.0, %v4278_v25 }
 0x687   :  { %v4280_v48 = vpop.eup %4279  ;;  %4283 = vpow2.f32 %v4058_v50 }
 0x688   :  { %4285 = vrcp.f32 %v2819_v30  ;;  %v4282_v17 = vpop.eup %4281  ;;  %v6895_v4 = vadd.f32 1.0, %v4280_v48  ;;  %v2832_v41 = vand.u32 2147483648, %v2819_v30  ;;  %v2830_v50 = vand.u32 2147483647, %v2819_v30 }
 0x689   :  { %v2862_v35 = vmul.f32 %v4282_v17, %v6890_v26  ;;  %vm2826_vm2 = vweird.f32 %v2819_v30  ;;  %vm2867_vm5 = vweird.f32 %v4282_v17 }
 0x68a   :  { %4287 = vrcp.f32 %v6895_v4  ;;  %vm2831_vm4 = vcmp.eq.f32.partialorder %v2830_v50, 8.507059e+37  ;;  %vm6911_vm7 = vmor %vm2866_vm6, %vm2867_vm5  ;;  %vm2881_vm14 = vweird.f32 %v6895_v4 }
 0x68b   :  { %v2863_v16 = vsub.f32 1.0, %v2862_v35  ;;  %v2891_v35 = vadd.f32 %v6665_v60, %v2805_v61 }
 0x68d   :  { %v4284_v33 = vpop.eup %4283  ;;  %v2864_v48 = vmul.f32 %v4282_v17, %v2863_v16  ;;  %v2424_v16 = vadd.f32 %v6639_v6, %v6658_v20  ;;  %v2808_v6 = vpop.f32.mrf.mxu1 }
 0x68e   :  { %v4286_v63 = vpop.eup %4285  ;;  %v2820_v24 = vadd.f32 1.0, %v4284_v33  ;;  %v2833_v33 = vor.u32 1.1754944e-38, %v2832_v41 }
 0x68f   :  { %v2822_v42 = vmul.f32 %v4286_v63, %v2819_v30  ;;  %vm2827_vm1 = vweird.f32 %v4286_v63  ;;  %v2870_v30 = vand.u32 2147483647, %v6890_v26 }
 0x690   :  { %4289 = vrcp.f32 %v2820_v24  ;;  %v6901_v54 = vpop.eup %4287  ;;  %vm2828_vm3 = vmor %vm2826_vm2, %vm2827_vm1  ;;  %v2847_v41 = vand.u32 2147483648, %v2820_v24  ;;  %vm2841_vm9 = vweird.f32 %v2820_v24 }
 0x691   :  { %v2823_v14 = vsub.f32 1.0, %v2822_v42  ;;  %v2877_v53 = vmul.f32 %v6901_v54, %v6895_v4  ;;  %v2865_v42 = vadd.f32 %v4282_v17, %v2864_v48  ;;  %vm2871_vm10 = vcmp.eq.f32.partialorder %v2870_v30, 8.507059e+37 }
 0x692   :  { %v2848_v26 = vor.u32 1.1754944e-38, %v2847_v41  ;;  %v2892_v48 = vadd.f32 %v6665_v60, %v2808_v6  ;;  %vm2882_vm13 = vweird.f32 %v6901_v54 }
 0x693   :  { %v2824_v25 = vmul.f32 %v4286_v63, %v2823_v14  ;;  %v2878_v14 = vsub.f32 1.0, %v2877_v53  ;;  %vm2883_vm15 = vmor %vm2881_vm14, %vm2882_vm13 }
 0x695   :  { %v2825_v3 = vadd.f32 %v4286_v63, %v2824_v25  ;;  %v2879_v61 = vmul.f32 %v6901_v54, %v2878_v14 }
 0x696   :  { %v4290_v62 = vpop.eup %4289 }
 0x697   :  { %v2829_v47 = vsel %vm2828_vm3, %v4286_v63, %v2825_v3  ;;  %v2837_v58 = vmul.f32 %v4290_v62, %v2820_v24  ;;  %vm2842_vm8 = vweird.f32 %v4290_v62 }
 0x698   :  { %v2834_v34 = vsel %vm2831_vm4, %v2833_v33, %v2829_v47  ;;  %v2845_v47 = vand.u32 2147483647, %v2820_v24  ;;  %vm2843_vm11 = vmor %vm2841_vm9, %vm2842_vm8 }
 0x699   :  { %v2893_v22 = vmul.f32 %v2891_v35, %v2834_v34  ;;  %v2838_v25 = vsub.f32 1.0, %v2837_v58  ;;  %v2869_v34 = vsel %vm6911_vm7, %v4282_v17, %v2865_v42  ;;  %v2873_v58 = vor.u32 1.1754944e-38, %v2872_v57 }
 0x69a   :  { %vm2846_vm12 = vcmp.eq.f32.partialorder %v2845_v47, 8.507059e+37  ;;  %v2427_v17 = vadd.f32 %v6654_v55, %v6658_v20  ;;  %v2887_v57 = vand.u32 2147483648, %v6895_v4  ;;  %v2885_v42 = vand.u32 2147483647, %v6895_v4  ;;  %v6933_v4 = vld [vmem:[#allocation9 + $0x178] sm:$0xff] }
 0x69b   :  { %v2839_v63 = vmul.f32 %v4290_v62, %v2838_v25  ;;  %v2895_v53 = vadd.f32 %v2893_v22, %v2424_v16  ;;  %v2874_v35 = vsel %vm2871_vm10, %v2873_v58, %v2869_v34  ;;  %v2880_v22 = vadd.f32 %v6901_v54, %v2879_v61  ;;  %v6944_v34 = vld [vmem:[#allocation9 + $0x148] sm:$0xff] }
 0x69c   :  { %v2899_v16 = vsub.f32 1.0, %v2874_v35  ;;  %v2903_v41 = vmul.f32 %v2874_v35, %v6712_v49  ;;  %vm2886_vm0 = vcmp.eq.f32.partialorder %v2885_v42, 8.507059e+37  ;;  %v6972_v35 = vld [vmem:[#allocation9 + $0xd0] sm:$0xff]  ;;  %v7002_v42 = vld [vmem:[#allocation9 + $0x40] sm:$0xff] }
 0x69d   :  { %v2840_v50 = vadd.f32 %v4290_v62, %v2839_v63  ;;  %4291 = vtanh.f32 %v2895_v53  ;;  %v2884_v3 = vsel %vm2883_vm15, %v6901_v54, %v2880_v22  ;;  %v2888_v63 = vor.u32 1.1754944e-38, %v2887_v57  ;;  %v6938_v54 = vld [vmem:[#allocation9 + $0x160] sm:$0xff]  ;;  %v6977_v22 = vld [vmem:[#allocation9 + $0xb8] sm:$0xff]  ;;  %v6992_v57 = vld [vmem:[#allocation9 + $0x70] sm:$0xff]  ;;  %7549 = vst [vmem:[#allocation61_spill] sm:$0xff] %v7002_v42 }
 0x69f   :  { %v2844_v33 = vsel %vm2843_vm11, %v4290_v62, %v2840_v50  ;;  %v2889_v47 = vsel %vm2886_vm0, %v2888_v63, %v2884_v3  ;;  %v6951_v50 = vld [vmem:[#allocation9 + $0x130] sm:$0xff] }
 0x6a0   :  { %v2849_v14 = vsel %vm2846_vm12, %v2848_v26, %v2844_v33  ;;  %v2900_v53 = vsub.f32 1.0, %v2889_v47  ;;  %v2904_v6 = vmul.f32 %v2889_v47, %v6736_v45  ;;  %v6957_v26 = vld [vmem:[#allocation9 + $0x118] sm:$0xff]  ;;  %v6967_v33 = vld [vmem:[#allocation9 + $0xe8] sm:$0xff]  ;;  %v7554_v3 = vld [vmem:[#allocation19_spill] sm:$0xff] }
 0x6a1   :  { %v2894_v24 = vmul.f32 %v2892_v48, %v2849_v14  ;;  %v6962_v48 = vld [vmem:[#allocation9 + $0x100] sm:$0xff]  ;;  %v7555_v63 = vld [vmem:[#allocation15_spill] sm:$0xff] }
 0x6a2   :  { %v6982_v14 = vld [vmem:[#allocation9 + $0xa0] sm:$0xff]  ;;  %v2365_v47 = vadd.f32 %v7555_v63, %v7554_v3 }
 0x6a3   :  { %v4292_v25 = vpop.eup %4291  ;;  %v2896_v62 = vadd.f32 %v2894_v24, %v2427_v17  ;;  %v6987_v17 = vld [vmem:[#allocation9 + $0x88] sm:$0xff]  ;;  %v6997_v24 = vld [vmem:[#allocation9 + $0x58] sm:$0xff] }
 0x6a4   :  { %v2901_v30 = vmul.f32 %v4292_v25, %v2899_v16  ;;  %7548 = vst [vmem:[#allocation60_spill] sm:$0xff] %v6997_v24  ;;  %v7007_v16 = vld [vmem:[#allocation9 + $0x28] sm:$0xff]  ;;  %v7012_v25 = vld [vmem:[#allocation9 + $0x10] sm:$0xff] }
 0x6a5   :  { %4293 = vtanh.f32 %v2896_v62  ;;  %7550 = vst [vmem:[#allocation62_spill] sm:$0xff] %v7007_v16  ;;  %v7019_v62 = vpop.f32.mrf.mxu2 }
 0x6a6   :  { %v6928_v55 = vadd.f32 %v2903_v41, %v2901_v30  ;;  %7551 = vst [vmem:[#allocation63_spill] sm:$0xff] %v7012_v25  ;;  %v7553_v30 = vld [vmem:[#allocation22_spill] sm:$0xff] }
 0x6a7   :  { %7552 = vst [vmem:[#allocation64_spill] sm:$0xff] %v7019_v62  ;;  %v2300_v41 = vadd.f32 %v7553_v30, %v6588_v0 }
 0x6a8   :  { %2929 = vmatmul.f32.vlgmr.msrb.gmra.mxu2 %v6928_v55  ;;  %2952 = vmatmul.f32.vlgmr.msrb.gmra.mxu3 %v6928_v55 }
 0x6a9   :  { %2975 = vmatmul.f32.vlgmr.msra.gmra.mxu0 %v6928_v55  ;;  %3301 = vmatpush.msrb.mxu2 %v6933_v4 }
 0x6aa   :  { %3426 = vmatpush.msrb.mxu3 %v6722_v56  ;;  %3449 = vmatpush.msra.mxu0 %v6725_v52 }
 0x6ab   :  { %v4294_v49 = vpop.eup %4293  ;;  %3302 = vmatpush.msrb.mxu2 %v6938_v54 }
 0x6ac   :  { %v2902_v61 = vmul.f32 %v4294_v49, %v2900_v53  ;;  %3427 = vmatpush.msrb.mxu3 %v6729_v38  ;;  %3450 = vmatpush.msra.mxu0 %v6732_v15 }
 0x6ad   :  { %3303 = vmatpush.msrb.mxu2 %v6944_v34 }
 0x6ae   :  { %v6947_v58 = vadd.f32 %v2904_v6, %v2902_v61  ;;  %3428 = vmatpush.msrb.mxu3 %v6738_v21  ;;  %3451 = vmatpush.msra.mxu0 %v6741_v39 }
 0x6af   :  { %3304 = vmatpush.msrb.mxu2 %v6951_v50 }
 0x6b0   :  { %2932 = vmatmul.f32.gmra.mxu2 %v6947_v58  ;;  %2955 = vmatmul.f32.gmra.mxu3 %v6947_v58 }
 0x6b1   :  { %2978 = vmatmul.f32.gmra.mxu0 %v6947_v58  ;;  %3305 = vmatpush.msrb.mxu2 %v6957_v26 }
 0x6b2   :  { %3429 = vmatpush.msrb.mxu3 %v6753_v11  ;;  %3452 = vmatpush.msra.mxu0 %v6756_v1 }
 0x6b3   :  { %3306 = vmatpush.msrb.mxu2 %v6962_v48 }
 0x6b4   :  { %3430 = vmatpush.msrb.mxu3 %v6762_v37  ;;  %3453 = vmatpush.msra.mxu0 %v6765_v8 }
 0x6b5   :  { %3307 = vmatpush.msrb.mxu2 %v6967_v33 }
 0x6b6   :  { %3431 = vmatpush.msrb.mxu3 %v6769_v51  ;;  %3454 = vmatpush.msra.mxu0 %v6772_v9 }
 0x6b7   :  { %3308 = vmatpush.msrb.mxu2 %v6972_v35 }
 0x6b8   :  { %3432 = vmatpush.msrb.mxu3 %v6776_v13  ;;  %3455 = vmatpush.msra.mxu0 %v6779_v18 }
 0x6b9   :  { %3309 = vmatpush.msrb.mxu2 %v6977_v22 }
 0x6ba   :  { %3433 = vmatpush.msrb.mxu3 %v6785_v28  ;;  %3456 = vmatpush.msra.mxu0 %v6788_v23 }
 0x6bb   :  { %3310 = vmatpush.msrb.mxu2 %v6982_v14 }
 0x6bc   :  { %3434 = vmatpush.msrb.mxu3 %v6794_v43  ;;  %3457 = vmatpush.msra.mxu0 %v6797_v31 }
 0x6bd   :  { %3311 = vmatpush.msrb.mxu2 %v6987_v17 }
 0x6be   :  { %3435 = vmatpush.msrb.mxu3 %v6803_v44  ;;  %3458 = vmatpush.msra.mxu0 %v6806_v2 }
 0x6bf   :  { %3312 = vmatpush.msrb.mxu2 %v6992_v57 }
 0x6c0   :  { %3436 = vmatpush.msrb.mxu3 %v6810_v40  ;;  %3459 = vmatpush.msra.mxu0 %v6813_v46 }
 0x6c1   :  { %3313 = vmatpush.msrb.mxu2 %v6997_v24 }
 0x6c2   :  { %3437 = vmatpush.msrb.mxu3 %v6817_v32  ;;  %3460 = vmatpush.msra.mxu0 %v6820_v36 }
 0x6c3   :  { %3314 = vmatpush.msrb.mxu2 %v7002_v42 }
 0x6c4   :  { %3438 = vmatpush.msrb.mxu3 %v6826_v12  ;;  %3461 = vmatpush.msra.mxu0 %v6829_v29 }
 0x6c5   :  { %3315 = vmatpush.msrb.mxu2 %v7007_v16 }
 0x6c6   :  { %3439 = vmatpush.msrb.mxu3 %v6835_v10  ;;  %3462 = vmatpush.msra.mxu0 %v6838_v27 }
 0x6c7   :  { %3316 = vmatpush.msrb.mxu2 %v7012_v25 }
 0x6c8   :  { %3440 = vmatpush.msrb.mxu3 %v6844_v5  ;;  %3463 = vmatpush.msra.mxu0 %v6847_v7 }
 0x6ca   :  { %3441 = vmatpush.msrb.mxu3 %v6850_v19  ;;  %3464 = vmatpush.msra.mxu0 %v6853_v59  ;;  %v7556_v19 = vld [vmem:[#allocation39_spill] sm:$0xff]  ;;  %v7557_v59 = vld [vmem:[#allocation24_spill] sm:$0xff] }
 0x6cb   :  { %v2303_v7 = vadd.f32 %v7556_v19, %v6588_v0  ;;  %v2368_v62 = vadd.f32 %v7557_v59, %v7554_v3 }
 0x72b   :  { %v2930_v53 = vpop.f32.mrf.mxu2  ;;  %v2953_v49 = vpop.f32.mrf.mxu3 }
 0x72c   :  { %v2982_v61 = vadd.f32 %v2930_v53, %v2300_v41  ;;  %v3022_v6 = vadd.f32 %v2953_v49, %v2365_v47 }
 0x72e   :  { %v4061_v45 = vmul.f32 -1.442695, %v2982_v61  ;;  %v4063_v5 = vmul.f32 -1.442695, %v3022_v6 }
 0x730   :  { %4295 = vpow2.f32 %v4061_v45 }
 0x731   :  { %4297 = vpow2.f32 %v4063_v5 }
 0x733   :  { %v2933_v25 = vpop.f32.mrf.mxu2  ;;  %v2956_v27 = vpop.f32.mrf.mxu3 }
 0x734   :  { %v2983_v30 = vadd.f32 %v2933_v25, %v2303_v7  ;;  %v3023_v10 = vadd.f32 %v2956_v27, %v2368_v62  ;;  %v2976_v25 = vpop.f32.mrf.mxu0 }
 0x736   :  { %v4296_v16 = vpop.eup %4295  ;;  %v4062_v63 = vmul.f32 -1.442695, %v2983_v30  ;;  %v4064_v41 = vmul.f32 -1.442695, %v3023_v10 }
 0x737   :  { %v4298_v29 = vpop.eup %4297  ;;  %v2990_v12 = vadd.f32 1.0, %v4296_v16 }
 0x738   :  { %v3030_v47 = vadd.f32 1.0, %v4298_v29  ;;  %4299 = vpow2.f32 %v4062_v63 }
 0x739   :  { %4301 = vrcp.f32 %v2990_v12  ;;  %v3003_v62 = vand.u32 2147483648, %v2990_v12  ;;  %v3001_v29 = vand.u32 2147483647, %v2990_v12  ;;  %vm2997_vm2 = vweird.f32 %v2990_v12 }
 0x73a   :  { %4303 = vrcp.f32 %v3030_v47  ;;  %v3043_v32 = vand.u32 2147483648, %v3030_v47  ;;  %vm3037_vm6 = vweird.f32 %v3030_v47 }
 0x73b   :  { %4305 = vpow2.f32 %v4064_v41  ;;  %v3004_v41 = vor.u32 1.1754944e-38, %v3003_v62  ;;  %vm3002_vm4 = vcmp.eq.f32.partialorder %v3001_v29, 8.507059e+37 }
 0x73e   :  { %v4300_v45 = vpop.eup %4299 }
 0x73f   :  { %v4302_v5 = vpop.eup %4301  ;;  %v2991_v19 = vadd.f32 1.0, %v4300_v45  ;;  %v3062_v45 = vadd.f32 %v6665_v60, %v2976_v25 }
 0x740   :  { %v4304_v53 = vpop.eup %4303  ;;  %v2993_v49 = vmul.f32 %v4302_v5, %v2990_v12  ;;  %vm2998_vm1 = vweird.f32 %v4302_v5  ;;  %v3041_v12 = vand.u32 2147483647, %v3030_v47 }
 0x741   :  { %v4306_v59 = vpop.eup %4305  ;;  %v3033_v61 = vmul.f32 %v4304_v53, %v3030_v47  ;;  %4307 = vrcp.f32 %v2991_v19  ;;  %vm2999_vm3 = vmor %vm2997_vm2, %vm2998_vm1  ;;  %vm3038_vm5 = vweird.f32 %v4304_v53  ;;  %vm3012_vm9 = vweird.f32 %v2991_v19 }
 0x742   :  { %v2994_v7 = vsub.f32 1.0, %v2993_v49  ;;  %v7029_v27 = vadd.f32 1.0, %v4306_v59  ;;  %vm7036_vm7 = vmor %vm3037_vm6, %vm3038_vm5  ;;  %vm3042_vm10 = vcmp.eq.f32.partialorder %v3041_v12, 8.507059e+37 }
 0x743   :  { %v3034_v16 = vsub.f32 1.0, %v3033_v61 }
 0x744   :  { %v2995_v10 = vmul.f32 %v4302_v5, %v2994_v7  ;;  %4309 = vrcp.f32 %v7029_v27  ;;  %v7558_v7 = vld [vmem:[#allocation20_spill] sm:$0xff]  ;;  %vm3052_vm14 = vweird.f32 %v7029_v27 }
 0x745   :  { %v3035_v6 = vmul.f32 %v4304_v53, %v3034_v16  ;;  %v2430_v42 = vadd.f32 %v7558_v7, %v6658_v20 }
 0x746   :  { %v2996_v30 = vadd.f32 %v4302_v5, %v2995_v10  ;;  %v3018_v10 = vand.u32 2147483648, %v2991_v19 }
 0x747   :  { %v4308_v63 = vpop.eup %4307  ;;  %v3036_v0 = vadd.f32 %v4304_v53, %v3035_v6  ;;  %v2979_v6 = vpop.f32.mrf.mxu0 }
 0x748   :  { %v3000_v3 = vsel %vm2999_vm3, %v4302_v5, %v2996_v30  ;;  %v3008_v49 = vmul.f32 %v4308_v63, %v2991_v19  ;;  %vm3013_vm8 = vweird.f32 %v4308_v63  ;;  %v3019_v47 = vor.u32 1.1754944e-38, %v3018_v10 }
 0x749   :  { %v3005_v59 = vsel %vm3002_vm4, %v3004_v41, %v3000_v3  ;;  %v3016_v3 = vand.u32 2147483647, %v2991_v19  ;;  %v3040_v41 = vsel %vm7036_vm7, %v4304_v53, %v3036_v0  ;;  %vm3014_vm11 = vmor %vm3012_vm9, %vm3013_vm8  ;;  %v3063_v7 = vadd.f32 %v6665_v60, %v2979_v6  ;;  %v7579_v6 = vld [vmem:[#allocation19_spill] sm:$0xff] }
 0x74a   :  { %v4310_v61 = vpop.eup %4309  ;;  %v3064_v36 = vmul.f32 %v3062_v45, %v3005_v59  ;;  %v3009_v16 = vsub.f32 1.0, %v3008_v49  ;;  %v3044_v45 = vor.u32 1.1754944e-38, %v3043_v32  ;;  %v3058_v32 = vand.u32 2147483648, %v7029_v27 }
 0x74b   :  { %v3048_v62 = vmul.f32 %v4310_v61, %v7029_v27  ;;  %vm3017_vm12 = vcmp.eq.f32.partialorder %v3016_v3, 8.507059e+37  ;;  %vm3053_vm13 = vweird.f32 %v4310_v61  ;;  %v3056_v19 = vand.u32 2147483647, %v7029_v27 }
 0x74c   :  { %v3010_v5 = vmul.f32 %v4308_v63, %v3009_v16  ;;  %v3066_v29 = vadd.f32 %v3064_v36, %v2430_v42  ;;  %v3045_v16 = vsel %vm3042_vm10, %v3044_v45, %v3040_v41  ;;  %v7561_v42 = vld [vmem:[#allocation40_spill] sm:$0xff]  ;;  %vm3054_vm15 = vmor %vm3052_vm14, %vm3053_vm13  ;;  %v3059_v25 = vor.u32 1.1754944e-38, %v3058_v32  ;;  %v7582_v32 = vld [vmem:[#allocation41_spill] sm:$0xff] }
 0x74d   :  { %v3049_v30 = vsub.f32 1.0, %v3048_v62  ;;  %v2433_v62 = vadd.f32 %v7561_v42, %v6658_v20  ;;  %v3070_v53 = vsub.f32 1.0, %v3045_v16  ;;  %v3074_v10 = vmul.f32 %v3045_v16, %v6928_v55 }
 0x74e   :  { %v3011_v49 = vadd.f32 %v4308_v63, %v3010_v5  ;;  %4311 = vtanh.f32 %v3066_v29  ;;  %vm3057_vm0 = vcmp.eq.f32.partialorder %v3056_v19, 8.507059e+37  ;;  %v2374_v19 = vadd.f32 %v7582_v32, %v7579_v6 }
 0x74f   :  { %v3050_v59 = vmul.f32 %v4310_v61, %v3049_v30  ;;  %v7580_v30 = vld [vmem:[#allocation21_spill] sm:$0xff] }
 0x750   :  { %v3015_v24 = vsel %vm3014_vm11, %v4308_v63, %v3011_v49  ;;  %v2371_v41 = vadd.f32 %v7580_v30, %v7579_v6  ;;  %v7581_v49 = vld [vmem:[#allocation42_spill] sm:$0xff] }
 0x751   :  { %v3020_v46 = vsel %vm3017_vm12, %v3019_v47, %v3015_v24  ;;  %v3051_v36 = vadd.f32 %v4310_v61, %v3050_v59 }
 0x752   :  { %v3065_v0 = vmul.f32 %v3063_v7, %v3020_v46 }
 0x753   :  { %v3055_v24 = vsel %vm3054_vm15, %v4310_v61, %v3051_v36 }
 0x754   :  { %v4312_v12 = vpop.eup %4311  ;;  %v3067_v60 = vadd.f32 %v3065_v0, %v2433_v62  ;;  %v3060_v46 = vsel %vm3057_vm0, %v3059_v25, %v3055_v24 }
 0x755   :  { %v3072_v63 = vmul.f32 %v4312_v12, %v3070_v53  ;;  %v3071_v27 = vsub.f32 1.0, %v3060_v46  ;;  %v3075_v3 = vmul.f32 %v3060_v46, %v6947_v58 }
 0x756   :  { %4313 = vtanh.f32 %v3067_v60 }
 0x757   :  { %v7049_v5 = vadd.f32 %v3074_v10, %v3072_v63 }
 0x759   :  { %3100 = vmatmul.f32.vlgmr.msra.gmra.mxu1 %v7049_v5  ;;  %3123 = vmatmul.f32.vlgmr.msra.gmra.mxu2 %v7049_v5 }
 0x75a   :  { %3146 = vmatmul.f32.vlgmr.msra.gmra.mxu3 %v7049_v5  ;;  %3472 = vmatpush.msra.mxu1 %v6933_v4 }
 0x75b   :  { %3597 = vmatpush.msra.mxu2 %v6722_v56  ;;  %3620 = vmatpush.msra.mxu3 %v6725_v52  ;;  %v7562_v56 = vld [vmem:[#allocation27_spill] sm:$0xff]  ;;  %v7563_v52 = vld [vmem:[#allocation60_spill] sm:$0xff] }
 0x75c   :  { %v4314_v55 = vpop.eup %4313  ;;  %3473 = vmatpush.msra.mxu1 %v6938_v54 }
 0x75d   :  { %v3073_v61 = vmul.f32 %v4314_v55, %v3071_v27  ;;  %3598 = vmatpush.msra.mxu2 %v6729_v38  ;;  %3621 = vmatpush.msra.mxu3 %v6732_v15  ;;  %v7564_v38 = vld [vmem:[#allocation43_spill] sm:$0xff]  ;;  %v7565_v15 = vld [vmem:[#allocation44_spill] sm:$0xff] }
 0x75e   :  { %3474 = vmatpush.msra.mxu1 %v6944_v34 }
 0x75f   :  { %v7062_v29 = vadd.f32 %v3075_v3, %v3073_v61  ;;  %3599 = vmatpush.msra.mxu2 %v6738_v21  ;;  %3622 = vmatpush.msra.mxu3 %v6741_v39  ;;  %v7566_v21 = vld [vmem:[#allocation61_spill] sm:$0xff]  ;;  %v7567_v39 = vld [vmem:[#allocation18_spill] sm:$0xff] }
 0x760   :  { %3475 = vmatpush.msra.mxu1 %v6951_v50 }
 0x761   :  { %3103 = vmatmul.f32.gmra.mxu1 %v7062_v29  ;;  %3126 = vmatmul.f32.gmra.mxu2 %v7062_v29 }
 0x762   :  { %3149 = vmatmul.f32.gmra.mxu3 %v7062_v29  ;;  %3476 = vmatpush.msra.mxu1 %v6957_v26 }
 0x763   :  { %3600 = vmatpush.msra.mxu2 %v6753_v11  ;;  %3623 = vmatpush.msra.mxu3 %v6756_v1  ;;  %v7568_v11 = vld [vmem:[#allocation29_spill] sm:$0xff]  ;;  %v7569_v1 = vld [vmem:[#allocation62_spill] sm:$0xff] }
 0x764   :  { %3477 = vmatpush.msra.mxu1 %v6962_v48 }
 0x765   :  { %3601 = vmatpush.msra.mxu2 %v6762_v37  ;;  %3624 = vmatpush.msra.mxu3 %v6765_v8  ;;  %v7570_v37 = vld [vmem:[#allocation31_spill] sm:$0xff]  ;;  %v7571_v8 = vld [vmem:[#allocation36_spill] sm:$0xff] }
 0x766   :  { %3478 = vmatpush.msra.mxu1 %v6967_v33 }
 0x767   :  { %3602 = vmatpush.msra.mxu2 %v6769_v51  ;;  %3625 = vmatpush.msra.mxu3 %v6772_v9  ;;  %v7572_v51 = vld [vmem:[#allocation63_spill] sm:$0xff]  ;;  %v7573_v9 = vld [vmem:[#allocation46_spill] sm:$0xff] }
 0x768   :  { %3479 = vmatpush.msra.mxu1 %v6972_v35 }
 0x769   :  { %3603 = vmatpush.msra.mxu2 %v6776_v13  ;;  %3626 = vmatpush.msra.mxu3 %v6779_v18  ;;  %v7574_v13 = vld [vmem:[#allocation33_spill] sm:$0xff] }
 0x76a   :  { %3480 = vmatpush.msra.mxu1 %v6977_v22  ;;  %v7575_v18 = vld [vmem:[#allocation37_spill] sm:$0xff] }
 0x76b   :  { %3604 = vmatpush.msra.mxu2 %v6785_v28  ;;  %3627 = vmatpush.msra.mxu3 %v6788_v23  ;;  %v7576_v28 = vld [vmem:[#allocation35_spill] sm:$0xff]  ;;  %v7577_v23 = vld [vmem:[#allocation14_spill] sm:$0xff] }
 0x76c   :  { %3481 = vmatpush.msra.mxu1 %v6982_v14  ;;  %v2309_v47 = vadd.f32 %v7581_v49, %v7577_v23  ;;  %v7583_v49 = vld [vmem:[#allocation28_spill] sm:$0xff] }
 0x76d   :  { %3605 = vmatpush.msra.mxu2 %v6794_v43  ;;  %3628 = vmatpush.msra.mxu3 %v6797_v31  ;;  %v7578_v43 = vld [vmem:[#allocation26_spill] sm:$0xff] }
 0x76e   :  { %3482 = vmatpush.msra.mxu1 %v6987_v17  ;;  %v2306_v31 = vadd.f32 %v7578_v43, %v7577_v23 }
 0x76f   :  { %3606 = vmatpush.msra.mxu2 %v6803_v44  ;;  %3629 = vmatpush.msra.mxu3 %v6806_v2 }
 0x770   :  { %3483 = vmatpush.msra.mxu1 %v6992_v57 }
 0x771   :  { %3607 = vmatpush.msra.mxu2 %v6810_v40  ;;  %3630 = vmatpush.msra.mxu3 %v7562_v56 }
 0x772   :  { %3484 = vmatpush.msra.mxu1 %v7563_v52 }
 0x773   :  { %3608 = vmatpush.msra.mxu2 %v7564_v38  ;;  %3631 = vmatpush.msra.mxu3 %v7565_v15 }
 0x774   :  { %3485 = vmatpush.msra.mxu1 %v7566_v21 }
 0x775   :  { %3609 = vmatpush.msra.mxu2 %v7567_v39  ;;  %3632 = vmatpush.msra.mxu3 %v7568_v11 }
 0x776   :  { %3486 = vmatpush.msra.mxu1 %v7569_v1 }
 0x777   :  { %3610 = vmatpush.msra.mxu2 %v7570_v37  ;;  %3633 = vmatpush.msra.mxu3 %v7571_v8 }
 0x778   :  { %3487 = vmatpush.msra.mxu1 %v7572_v51 }
 0x779   :  { %3611 = vmatpush.msra.mxu2 %v7573_v9  ;;  %3634 = vmatpush.msra.mxu3 %v7574_v13 }
 0x77b   :  { %3612 = vmatpush.msra.mxu2 %v7575_v18  ;;  %3635 = vmatpush.msra.mxu3 %v7576_v28 }
 0x7d6   :  { %v3101_v44 = vpop.f32.mrf.mxu1 }
 0x7d7   :  { %v3153_v2 = vadd.f32 %v3101_v44, %v2306_v31 }
 0x7d9   :  { %v4065_v40 = vmul.f32 -1.442695, %v3153_v2 }
 0x7db   :  { %4315 = vpow2.f32 %v4065_v40 }
 0x7dc   :  { %v3124_v45 = vpop.f32.mrf.mxu2 }
 0x7dd   :  { %v3193_v59 = vadd.f32 %v3124_v45, %v2371_v41  ;;  %v3147_v56 = vpop.f32.mrf.mxu3  ;;  %v7122_v41 = vld [vmem:[%s7364_s8] ss:$0 sm:$0xff] }
 0x7de   :  { %v3104_v7 = vpop.f32.mrf.mxu1  ;;  %v3233_v45 = vadd.f32 %v7122_v41, %v3147_v56 }
 0x7df   :  { %v4067_v16 = vmul.f32 -1.442695, %v3193_v59  ;;  %v3154_v36 = vadd.f32 %v3104_v7, %v2309_v47  ;;  %v2436_v47 = vadd.f32 %v7583_v49, %v6658_v20 }
 0x7e1   :  { %v4316_v42 = vpop.eup %4315  ;;  %4317 = vpow2.f32 %v4067_v16  ;;  %v4066_v62 = vmul.f32 -1.442695, %v3154_v36 }
 0x7e2   :  { %v3161_v0 = vadd.f32 1.0, %v4316_v42 }
 0x7e3   :  { %4319 = vpow2.f32 %v4066_v62 }
 0x7e4   :  { %4321 = vrcp.f32 %v3161_v0  ;;  %v3127_v53 = vpop.f32.mrf.mxu2  ;;  %v3174_v61 = vand.u32 2147483648, %v3161_v0  ;;  %v3172_v15 = vand.u32 2147483647, %v3161_v0  ;;  %vm3168_vm2 = vweird.f32 %v3161_v0 }
 0x7e5   :  { %v3194_v12 = vadd.f32 %v3127_v53, %v2374_v19 }
 0x7e6   :  { %v3175_v44 = vor.u32 1.1754944e-38, %v3174_v61  ;;  %vm3173_vm4 = vcmp.eq.f32.partialorder %v3172_v15, 8.507059e+37 }
 0x7e7   :  { %v4318_v60 = vpop.eup %4317  ;;  %v4068_v63 = vmul.f32 -1.442695, %v3194_v12 }
 0x7e8   :  { %v3201_v10 = vadd.f32 1.0, %v4318_v60 }
 0x7e9   :  { %v4320_v24 = vpop.eup %4319  ;;  %4323 = vpow2.f32 %v4068_v63 }
 0x7ea   :  { %v4322_v25 = vpop.eup %4321  ;;  %4325 = vrcp.f32 %v3201_v10  ;;  %v3162_v27 = vadd.f32 1.0, %v4320_v24  ;;  %v3214_v36 = vand.u32 2147483648, %v3201_v10  ;;  %v3212_v62 = vand.u32 2147483647, %v3201_v10 }
 0x7eb   :  { %v3164_v46 = vmul.f32 %v4322_v25, %v3161_v0  ;;  %vm3169_vm1 = vweird.f32 %v4322_v25  ;;  %vm3208_vm6 = vweird.f32 %v3201_v10 }
 0x7ec   :  { %4327 = vrcp.f32 %v3162_v27  ;;  %vm3170_vm3 = vmor %vm3168_vm2, %vm3169_vm1  ;;  %v3189_v53 = vand.u32 2147483648, %v3162_v27  ;;  %v3187_v63 = vand.u32 2147483647, %v3162_v27  ;;  %v3215_v24 = vor.u32 1.1754944e-38, %v3214_v36 }
 0x7ed   :  { %v3165_v55 = vsub.f32 1.0, %v3164_v46  ;;  %vm3213_vm9 = vcmp.eq.f32.partialorder %v3212_v62, 8.507059e+37  ;;  %vm3183_vm10 = vweird.f32 %v3162_v27 }
 0x7ee   :  { %vm3188_vm12 = vcmp.eq.f32.partialorder %v3187_v63, 8.507059e+37  ;;  %v4460_v63 = vld [vmem:[#allocation9 + $0x138] sm:$0xff] }
 0x7ef   :  { %v4324_v3 = vpop.eup %4323  ;;  %v3166_v38 = vmul.f32 %v4322_v25, %v3165_v55  ;;  %v3150_v55 = vpop.f32.mrf.mxu3 }
 0x7f0   :  { %v4326_v39 = vpop.eup %4325  ;;  %v7116_v11 = vadd.f32 1.0, %v4324_v3  ;;  %v3234_v15 = vadd.f32 %v7122_v41, %v3150_v55  ;;  %v4463_v55 = vld [vmem:[#allocation9 + $0x128] sm:$0xff] }
 0x7f1   :  { %v3204_v43 = vmul.f32 %v4326_v39, %v3201_v10  ;;  %v3167_v31 = vadd.f32 %v4322_v25, %v3166_v38  ;;  %vm3209_vm5 = vweird.f32 %v4326_v39  ;;  %v3190_v10 = vor.u32 1.1754944e-38, %v3189_v53  ;;  %v4459_v53 = vld [vmem:[#allocation9 + $0x158] sm:$0xff] }
 0x7f2   :  { %4329 = vrcp.f32 %v7116_v11  ;;  %v4328_v2 = vpop.eup %4327  ;;  %vm3210_vm7 = vmor %vm3208_vm6, %vm3209_vm5  ;;  %vm3223_vm14 = vweird.f32 %v7116_v11 }
 0x7f3   :  { %v3205_v40 = vsub.f32 1.0, %v3204_v43  ;;  %v3171_v30 = vsel %vm3170_vm3, %v4322_v25, %v3167_v31  ;;  %v3179_v7 = vmul.f32 %v4328_v2, %v3162_v27  ;;  %vm3184_vm8 = vweird.f32 %v4328_v2 }
 0x7f4   :  { %v3176_v59 = vsel %vm3173_vm4, %v3175_v44, %v3171_v30  ;;  %vm3185_vm11 = vmor %vm3183_vm10, %vm3184_vm8  ;;  %v3229_v30 = vand.u32 2147483648, %v7116_v11 }
 0x7f5   :  { %v3206_v16 = vmul.f32 %v4326_v39, %v3205_v40  ;;  %v3235_v42 = vmul.f32 %v3233_v45, %v3176_v59  ;;  %v3180_v0 = vsub.f32 1.0, %v3179_v7 }
 0x7f6   :  { %v3230_v36 = vor.u32 1.1754944e-38, %v3229_v30  ;;  %v4475_v30 = vld [vmem:[#allocation9 + $0x98] sm:$0xff] }
 0x7f7   :  { %v3207_v32 = vadd.f32 %v4326_v39, %v3206_v16  ;;  %v3237_v19 = vadd.f32 %v3235_v42, %v2436_v47  ;;  %v3181_v60 = vmul.f32 %v4328_v2, %v3180_v0  ;;  %v3227_v47 = vand.u32 2147483647, %v7116_v11  ;;  %v4457_v0 = vld [vmem:[#allocation9 + $0x170] sm:$0xff] }
 0x7f8   :  { %v4330_v12 = vpop.eup %4329 }
 0x7f9   :  { %v3211_v25 = vsel %vm3210_vm7, %v4326_v39, %v3207_v32  ;;  %4331 = vtanh.f32 %v3237_v19  ;;  %v3219_v46 = vmul.f32 %v4330_v12, %v7116_v11  ;;  %v3182_v61 = vadd.f32 %v4328_v2, %v3181_v60  ;;  %v7584_v39 = vld [vmem:[#allocation30_spill] sm:$0xff]  ;;  %v4458_v19 = vld [vmem:[#allocation9 + $0x150] sm:$0xff] }
 0x7fa   :  { %v3216_v3 = vsel %vm3213_vm9, %v3215_v24, %v3211_v25  ;;  %vm3224_vm13 = vweird.f32 %v4330_v12  ;;  %v2439_v44 = vadd.f32 %v7584_v39, %v6658_v20  ;;  %vm3228_vm0 = vcmp.eq.f32.partialorder %v3227_v47, 8.507059e+37  ;;  %v4456_v11 = vld [vmem:[#allocation9 + $0x168] sm:$0xff]  ;;  %v4461_v24 = vld [vmem:[#allocation9 + $0x140] sm:$0xff] }
 0x7fb   :  { %v3220_v56 = vsub.f32 1.0, %v3219_v46  ;;  %v3186_v38 = vsel %vm3185_vm11, %v4328_v2, %v3182_v61  ;;  %v3241_v40 = vsub.f32 1.0, %v3216_v3  ;;  %vm3225_vm15 = vmor %vm3223_vm14, %vm3224_vm13  ;;  %v3245_v7 = vmul.f32 %v3216_v3, %v7049_v5  ;;  %v4462_v46 = vld [vmem:[#allocation9 + $0x120] sm:$0xff]  ;;  %v4464_v61 = vld [vmem:[#allocation9 + $0x108] sm:$0xff] }
 0x7fc   :  { %v3191_v31 = vsel %vm3188_vm12, %v3190_v10, %v3186_v38  ;;  %v4465_v3 = vld [vmem:[#allocation9 + $0x110] sm:$0xff]  ;;  %v4467_v10 = vld [vmem:[#allocation9 + $0xf8] sm:$0xff]  ;;  %v4472_v39 = vld [vmem:[#allocation9 + $0xa8] sm:$0xff] }
 0x7fd   :  { %v3221_v43 = vmul.f32 %v4330_v12, %v3220_v56  ;;  %v3236_v45 = vmul.f32 %v3234_v15, %v3191_v31  ;;  %v4466_v56 = vld [vmem:[#allocation9 + $0xf0] sm:$0xff]  ;;  %v4468_v38 = vld [vmem:[#allocation9 + $0xd8] sm:$0xff]  ;;  %v4469_v15 = vld [vmem:[#allocation9 + $0xe0] sm:$0xff] }
 0x7fe   :  { %v4471_v31 = vld [vmem:[#allocation9 + $0xc8] sm:$0xff] }
 0x7ff   :  { %v4332_v49 = vpop.eup %4331  ;;  %v3222_v27 = vadd.f32 %v4330_v12, %v3221_v43  ;;  %v3238_v59 = vadd.f32 %v3236_v45, %v2439_v44  ;;  %v4470_v43 = vld [vmem:[#allocation9 + $0xc0] sm:$0xff]  ;;  %v4473_v44 = vld [vmem:[#allocation9 + $0xb0] sm:$0xff]  ;;  %v4476_v45 = vld [vmem:[#allocation9 + $0x78] sm:$0xff] }
 0x800   :  { %v3243_v2 = vmul.f32 %v4332_v49, %v3241_v40  ;;  %v4474_v40 = vld [vmem:[#allocation9 + $0x90] sm:$0xff]  ;;  %v4477_v49 = vld [vmem:[#allocation9 + $0x80] sm:$0xff]  ;;  %v4479_v47 = vld [vmem:[#allocation9 + $0x68] sm:$0xff] }
 0x801   :  { %v3226_v16 = vsel %vm3225_vm15, %v4330_v12, %v3222_v27  ;;  %4333 = vtanh.f32 %v3238_v59  ;;  %v4478_v27 = vld [vmem:[#allocation9 + $0x60] sm:$0xff]  ;;  %v4481_v59 = vld [vmem:[#allocation9 + $0x50] sm:$0xff] }
 0x802   :  { %v7135_v42 = vadd.f32 %v3245_v7, %v3243_v2  ;;  %v3231_v62 = vsel %vm3228_vm0, %v3230_v36, %v3226_v16  ;;  %v4480_v2 = vld [vmem:[#allocation9 + $0x48] sm:$0xff]  ;;  %v7585_v7 = vld [vmem:[#allocation32_spill] sm:$0xff]  ;;  %v7586_v36 = vld [vmem:[#allocation25_spill] sm:$0xff] }
 0x803   :  { %v3242_v5 = vsub.f32 1.0, %v3231_v62  ;;  %v3246_v60 = vmul.f32 %v3231_v62, %v7062_v29  ;;  %v2312_v16 = vadd.f32 %v7585_v7, %v7577_v23 }
 0x804   :  { %3271 = vmatmul.f32.vlgmr.msrb.gmra.mxu0 %v7135_v42  ;;  %3294 = vmatmul.f32.vlgmr.msrb.gmra.mxu1 %v7135_v42 }
 0x805   :  { %3317 = vmatmul.f32.vlgmr.msrb.gmra.mxu2 %v7135_v42  ;;  %3643 = vmatpush.msrb.mxu0 %v6933_v4 }
 0x806   :  { %3765 = vmatpush.msrb.mxu1 %v4456_v11  ;;  %3787 = vmatpush.msrb.mxu2 %v4457_v0 }
 0x807   :  { %3644 = vmatpush.msrb.mxu0 %v6938_v54  ;;  %v4334_v32 = vpop.eup %4333 }
 0x808   :  { %3766 = vmatpush.msrb.mxu1 %v4458_v19  ;;  %3788 = vmatpush.msrb.mxu2 %v4459_v53  ;;  %v3244_v12 = vmul.f32 %v4334_v32, %v3242_v5 }
 0x809   :  { %3645 = vmatpush.msrb.mxu0 %v6944_v34 }
 0x80a   :  { %3767 = vmatpush.msrb.mxu1 %v4460_v63  ;;  %3789 = vmatpush.msrb.mxu2 %v4461_v24  ;;  %v7144_v25 = vadd.f32 %v3246_v60, %v3244_v12 }
 0x80b   :  { %3646 = vmatpush.msrb.mxu0 %v6951_v50 }
 0x80c   :  { %3768 = vmatpush.msrb.mxu1 %v4462_v46  ;;  %3790 = vmatpush.msrb.mxu2 %v4463_v55 }
 0x80d   :  { %3274 = vmatmul.f32.gmra.mxu0 %v7144_v25  ;;  %3297 = vmatmul.f32.gmra.mxu1 %v7144_v25 }
 0x80e   :  { %3320 = vmatmul.f32.gmra.mxu2 %v7144_v25  ;;  %3647 = vmatpush.msrb.mxu0 %v6957_v26 }
 0x80f   :  { %3769 = vmatpush.msrb.mxu1 %v4464_v61  ;;  %3791 = vmatpush.msrb.mxu2 %v4465_v3 }
 0x810   :  { %3648 = vmatpush.msrb.mxu0 %v6962_v48 }
 0x811   :  { %3770 = vmatpush.msrb.mxu1 %v4466_v56  ;;  %3792 = vmatpush.msrb.mxu2 %v4467_v10 }
 0x812   :  { %3649 = vmatpush.msrb.mxu0 %v6967_v33 }
 0x813   :  { %3771 = vmatpush.msrb.mxu1 %v4468_v38  ;;  %3793 = vmatpush.msrb.mxu2 %v4469_v15 }
 0x814   :  { %3650 = vmatpush.msrb.mxu0 %v6972_v35 }
 0x815   :  { %3772 = vmatpush.msrb.mxu1 %v4470_v43  ;;  %3794 = vmatpush.msrb.mxu2 %v4471_v31 }
 0x816   :  { %3651 = vmatpush.msrb.mxu0 %v6977_v22 }
 0x817   :  { %3773 = vmatpush.msrb.mxu1 %v4472_v39  ;;  %3795 = vmatpush.msrb.mxu2 %v4473_v44 }
 0x818   :  { %3652 = vmatpush.msrb.mxu0 %v6982_v14 }
 0x819   :  { %3774 = vmatpush.msrb.mxu1 %v4474_v40  ;;  %3796 = vmatpush.msrb.mxu2 %v4475_v30 }
 0x81a   :  { %3653 = vmatpush.msrb.mxu0 %v6987_v17 }
 0x81b   :  { %3775 = vmatpush.msrb.mxu1 %v4476_v45  ;;  %3797 = vmatpush.msrb.mxu2 %v4477_v49 }
 0x81c   :  { %3654 = vmatpush.msrb.mxu0 %v6992_v57 }
 0x81d   :  { %3776 = vmatpush.msrb.mxu1 %v4478_v27  ;;  %3798 = vmatpush.msrb.mxu2 %v4479_v47 }
 0x81e   :  { %3655 = vmatpush.msrb.mxu0 %v7563_v52 }
 0x81f   :  { %3777 = vmatpush.msrb.mxu1 %v4480_v2  ;;  %3799 = vmatpush.msrb.mxu2 %v4481_v59 }
 0x820   :  { %3656 = vmatpush.msrb.mxu0 %v7566_v21 }
 0x821   :  { %3778 = vmatpush.msrb.mxu1 %v7570_v37  ;;  %3800 = vmatpush.msrb.mxu2 %v7571_v8  ;;  %v2377_v37 = vadd.f32 %v7586_v36, %v7579_v6 }
 0x822   :  { %3657 = vmatpush.msrb.mxu0 %v7569_v1 }
 0x823   :  { %3779 = vmatpush.msrb.mxu1 %v7573_v9  ;;  %3801 = vmatpush.msrb.mxu2 %v7574_v13  ;;  %v7587_v13 = vld [vmem:[#allocation45_spill] sm:$0xff] }
 0x824   :  { %3658 = vmatpush.msrb.mxu0 %v7572_v51  ;;  %v2315_v32 = vadd.f32 %v7587_v13, %v7577_v23 }
 0x825   :  { %3780 = vmatpush.msrb.mxu1 %v7575_v18  ;;  %3802 = vmatpush.msrb.mxu2 %v7576_v28  ;;  %v7588_v18 = vld [vmem:[#allocation34_spill] sm:$0xff] }
 0x826   :  { %v2380_v28 = vadd.f32 %v7588_v18, %v7579_v6 }
 0x881   :  { %v3272_v62 = vpop.f32.mrf.mxu0  ;;  %v3295_v8 = vpop.f32.mrf.mxu1 }
 0x882   :  { %v3324_v11 = vadd.f32 %v3272_v62, %v2312_v16  ;;  %v3364_v0 = vadd.f32 %v3295_v8, %v2377_v37 }
 0x884   :  { %v4069_v5 = vmul.f32 -1.442695, %v3324_v11  ;;  %v4071_v9 = vmul.f32 -1.442695, %v3364_v0  ;;  %v7589_v11 = vld [vmem:[#allocation17_spill] sm:$0xff] }
 0x885   :  { %v2442_v0 = vadd.f32 %v7589_v11, %v6658_v20 }
 0x886   :  { %4335 = vpow2.f32 %v4069_v5 }
 0x887   :  { %4337 = vpow2.f32 %v4071_v9 }
 0x888   :  { %v3318_v2 = vpop.f32.mrf.mxu2 }
 0x889   :  { %v3404_v36 = vadd.f32 %v7122_v41, %v3318_v2 }
 0x88a   :  { %v3275_v19 = vpop.f32.mrf.mxu0  ;;  %v3298_v53 = vpop.f32.mrf.mxu1 }
 0x88b   :  { %v3325_v12 = vadd.f32 %v3275_v19, %v2315_v32  ;;  %v3365_v60 = vadd.f32 %v3298_v53, %v2380_v28 }
 0x88c   :  { %v4336_v63 = vpop.eup %4335 }
 0x88d   :  { %v4338_v24 = vpop.eup %4337  ;;  %v3332_v46 = vadd.f32 1.0, %v4336_v63  ;;  %v4070_v55 = vmul.f32 -1.442695, %v3325_v12  ;;  %v4072_v3 = vmul.f32 -1.442695, %v3365_v60 }
 0x88e   :  { %v3372_v61 = vadd.f32 1.0, %v4338_v24 }
 0x88f   :  { %4339 = vrcp.f32 %v3332_v46  ;;  %v3345_v30 = vand.u32 2147483648, %v3332_v46  ;;  %v3343_v27 = vand.u32 2147483647, %v3332_v46  ;;  %vm3339_vm2 = vweird.f32 %v3332_v46 }
 0x890   :  { %4341 = vrcp.f32 %v3372_v61  ;;  %v3385_v5 = vand.u32 2147483648, %v3372_v61  ;;  %vm3379_vm6 = vweird.f32 %v3372_v61  ;;  %v3383_v32 = vand.u32 2147483647, %v3372_v61 }
 0x891   :  { %4343 = vpow2.f32 %v4070_v55  ;;  %v3346_v7 = vor.u32 1.1754944e-38, %v3345_v30  ;;  %vm3344_vm4 = vcmp.eq.f32.partialorder %v3343_v27, 8.507059e+37 }
 0x892   :  { %4345 = vpow2.f32 %v4072_v3  ;;  %v3386_v60 = vor.u32 1.1754944e-38, %v3385_v5  ;;  %vm3384_vm8 = vcmp.eq.f32.partialorder %v3383_v32, 8.507059e+37 }
 0x895   :  { %v4340_v56 = vpop.eup %4339 }
 0x896   :  { %v4342_v10 = vpop.eup %4341  ;;  %v3335_v38 = vmul.f32 %v4340_v56, %v3332_v46  ;;  %vm3340_vm1 = vweird.f32 %v4340_v56 }
 0x897   :  { %v4344_v15 = vpop.eup %4343  ;;  %v3375_v43 = vmul.f32 %v4342_v10, %v3372_v61  ;;  %vm3341_vm3 = vmor %vm3339_vm2, %vm3340_vm1  ;;  %vm3380_vm5 = vweird.f32 %v4342_v10 }
 0x898   :  { %v4346_v31 = vpop.eup %4345  ;;  %v3336_v39 = vsub.f32 1.0, %v3335_v38  ;;  %v3333_v44 = vadd.f32 1.0, %v4344_v15  ;;  %vm3381_vm7 = vmor %vm3379_vm6, %vm3380_vm5  ;;  %v3321_v38 = vpop.f32.mrf.mxu2 }
 0x899   :  { %v3376_v40 = vsub.f32 1.0, %v3375_v43  ;;  %v7176_v45 = vadd.f32 1.0, %v4346_v31 }
 0x89a   :  { %v3337_v49 = vmul.f32 %v4340_v56, %v3336_v39  ;;  %4347 = vrcp.f32 %v3333_v44  ;;  %v3360_v24 = vand.u32 2147483648, %v3333_v44  ;;  %v3358_v55 = vand.u32 2147483647, %v3333_v44 }
 0x89b   :  { %v3377_v47 = vmul.f32 %v4342_v10, %v3376_v40  ;;  %4349 = vrcp.f32 %v7176_v45  ;;  %vm3354_vm10 = vweird.f32 %v3333_v44  ;;  %v7590_v40 = vld [vmem:[#allocation38_spill] sm:$0xff]  ;;  %v3400_v2 = vand.u32 2147483648, %v7176_v45 }
 0x89c   :  { %v3338_v59 = vadd.f32 %v4340_v56, %v3337_v49  ;;  %v3361_v61 = vor.u32 1.1754944e-38, %v3360_v24  ;;  %vm3359_vm12 = vcmp.eq.f32.partialorder %v3358_v55, 8.507059e+37  ;;  %v2445_v30 = vadd.f32 %v7590_v40, %v6658_v20 }
 0x89d   :  { %v3378_v37 = vadd.f32 %v4342_v10, %v3377_v47  ;;  %vm3394_vm14 = vweird.f32 %v7176_v45 }
 0x89e   :  { %v3342_v16 = vsel %vm3341_vm3, %v4340_v56, %v3338_v59 }
 0x89f   :  { %v3347_v62 = vsel %vm3344_vm4, %v3346_v7, %v3342_v16  ;;  %v3382_v53 = vsel %vm3381_vm7, %v4342_v10, %v3378_v37  ;;  %v3405_v10 = vadd.f32 %v7122_v41, %v3321_v38  ;;  %v3398_v7 = vand.u32 2147483647, %v7176_v45 }
 0x8a0   :  { %v4348_v8 = vpop.eup %4347  ;;  %v3406_v9 = vmul.f32 %v3404_v36, %v3347_v62  ;;  %v3387_v3 = vsel %vm3384_vm8, %v3386_v60, %v3382_v53  ;;  %v3401_v62 = vor.u32 1.1754944e-38, %v3400_v2 }
 0x8a1   :  { %v4350_v13 = vpop.eup %4349  ;;  %v3350_v18 = vmul.f32 %v4348_v8, %v3333_v44  ;;  %vm3355_vm9 = vweird.f32 %v4348_v8  ;;  %v3412_v43 = vsub.f32 1.0, %v3387_v3  ;;  %v3416_v44 = vmul.f32 %v3387_v3, %v7135_v42 }
 0x8a2   :  { %v3408_v28 = vadd.f32 %v3406_v9, %v2442_v0  ;;  %v3390_v19 = vmul.f32 %v4350_v13, %v7176_v45  ;;  %vm3356_vm11 = vmor %vm3354_vm10, %vm3355_vm9  ;;  %vm3395_vm13 = vweird.f32 %v4350_v13  ;;  %vm3399_vm0 = vcmp.eq.f32.partialorder %v3398_v7, 8.507059e+37 }
 0x8a3   :  { %v3351_v12 = vsub.f32 1.0, %v3350_v18  ;;  %vm3396_vm15 = vmor %vm3394_vm14, %vm3395_vm13 }
 0x8a4   :  { %4351 = vtanh.f32 %v3408_v28  ;;  %v3391_v63 = vsub.f32 1.0, %v3390_v19 }
 0x8a5   :  { %v3352_v46 = vmul.f32 %v4348_v8, %v3351_v12 }
 0x8a6   :  { %v3392_v56 = vmul.f32 %v4350_v13, %v3391_v63 }
 0x8a7   :  { %v3353_v15 = vadd.f32 %v4348_v8, %v3352_v46 }
 0x8a8   :  { %v3393_v49 = vadd.f32 %v4350_v13, %v3392_v56 }
 0x8a9   :  { %v3357_v31 = vsel %vm3356_vm11, %v4348_v8, %v3353_v15 }
 0x8aa   :  { %v4352_v39 = vpop.eup %4351  ;;  %v3362_v27 = vsel %vm3359_vm12, %v3361_v61, %v3357_v31  ;;  %v3397_v37 = vsel %vm3396_vm15, %v4350_v13, %v3393_v49  ;;  %v7594_v13 = vld [vmem:[#allocation50_spill] sm:$0xff] }
 0x8ab   :  { %v3414_v47 = vmul.f32 %v4352_v39, %v3412_v43  ;;  %v3407_v59 = vmul.f32 %v3405_v10, %v3362_v27  ;;  %v3402_v42 = vsel %vm3399_vm0, %v3401_v62, %v3397_v37  ;;  %v2321_v32 = vadd.f32 %v7594_v13, %v7577_v23 }
 0x8ac   :  { %v3413_v45 = vsub.f32 1.0, %v3402_v42  ;;  %v3417_v0 = vmul.f32 %v3402_v42, %v7144_v25 }
 0x8ad   :  { %v3409_v16 = vadd.f32 %v3407_v59, %v2445_v30  ;;  %v7190_v36 = vadd.f32 %v3416_v44, %v3414_v47 }
 0x8af   :  { %4353 = vtanh.f32 %v3409_v16  ;;  %3442 = vmatmul.f32.vlgmr.msrb.gmra.mxu3 %v7190_v36  ;;  %3465 = vmatmul.f32.vlgmr.msra.gmra.mxu0 %v7190_v36  ;;  %v7595_v16 = vld [vmem:[#allocation48_spill] sm:$0xff] }
 0x8b0   :  { %3488 = vmatmul.f32.vlgmr.msra.gmra.mxu1 %v7190_v36  ;;  %3809 = vmatpush.msrb.mxu3 %v6933_v4  ;;  %v7591_v4 = vld [vmem:[#allocation16_spill] sm:$0xff]  ;;  %v2448_v37 = vadd.f32 %v7595_v16, %v6658_v20 }
 0x8b1   :  { %v7600_v16 = vld [vmem:[#allocation56_spill] sm:$0xff] }
 0x8b2   :  { %3810 = vmatpush.msrb.mxu3 %v6938_v54  ;;  %v2383_v54 = vadd.f32 %v7591_v4, %v7579_v6 }
 0x8b4   :  { %3811 = vmatpush.msrb.mxu3 %v6944_v34 }
 0x8b5   :  { %v4354_v8 = vpop.eup %4353 }
 0x8b6   :  { %v3415_v11 = vmul.f32 %v4354_v8, %v3413_v45  ;;  %3812 = vmatpush.msrb.mxu3 %v6951_v50 }
 0x8b8   :  { %v7200_v5 = vadd.f32 %v3417_v0, %v3415_v11  ;;  %3813 = vmatpush.msrb.mxu3 %v6957_v26 }
 0x8ba   :  { %3445 = vmatmul.f32.gmra.mxu3 %v7200_v5  ;;  %3468 = vmatmul.f32.gmra.mxu0 %v7200_v5 }
 0x8bb   :  { %3491 = vmatmul.f32.gmra.mxu1 %v7200_v5  ;;  %3814 = vmatpush.msrb.mxu3 %v6962_v48  ;;  %v7592_v48 = vld [vmem:[#allocation47_spill] sm:$0xff] }
 0x8bd   :  { %3815 = vmatpush.msrb.mxu3 %v6967_v33  ;;  %v2318_v33 = vadd.f32 %v7592_v48, %v7577_v23 }
 0x8bf   :  { %3816 = vmatpush.msrb.mxu3 %v6972_v35 }
 0x8c1   :  { %3817 = vmatpush.msrb.mxu3 %v6977_v22 }
 0x8c3   :  { %3818 = vmatpush.msrb.mxu3 %v6982_v14 }
 0x8c5   :  { %3819 = vmatpush.msrb.mxu3 %v6987_v17  ;;  %v7593_v17 = vld [vmem:[#allocation49_spill] sm:$0xff] }
 0x8c7   :  { %3820 = vmatpush.msrb.mxu3 %v6992_v57  ;;  %v2386_v57 = vadd.f32 %v7593_v17, %v7579_v6 }
 0x8c9   :  { %3821 = vmatpush.msrb.mxu3 %v7563_v52 }
 0x8cb   :  { %3822 = vmatpush.msrb.mxu3 %v7566_v21 }
 0x8cd   :  { %3823 = vmatpush.msrb.mxu3 %v7569_v1 }
 0x8cf   :  { %3824 = vmatpush.msrb.mxu3 %v7572_v51 }
 0x92c   :  { %v3466_v34 = vpop.f32.mrf.mxu0 }
 0x92d   :  { %v3535_v50 = vadd.f32 %v3466_v34, %v2383_v54  ;;  %v3489_v40 = vpop.f32.mrf.mxu1 }
 0x92e   :  { %v3575_v47 = vadd.f32 %v7122_v41, %v3489_v40 }
 0x92f   :  { %v4075_v26 = vmul.f32 -1.442695, %v3535_v50 }
 0x931   :  { %4355 = vpow2.f32 %v4075_v26 }
 0x932   :  { %v3443_v35 = vpop.f32.mrf.mxu3 }
 0x933   :  { %v3495_v22 = vadd.f32 %v3443_v35, %v2318_v33 }
 0x935   :  { %v4073_v14 = vmul.f32 -1.442695, %v3495_v22 }
 0x937   :  { %v4356_v52 = vpop.eup %4355  ;;  %4357 = vpow2.f32 %v4073_v14  ;;  %v3469_v21 = vpop.f32.mrf.mxu0 }
 0x938   :  { %v3543_v1 = vadd.f32 1.0, %v4356_v52  ;;  %v3536_v51 = vadd.f32 %v3469_v21, %v2386_v57  ;;  %v3492_v14 = vpop.f32.mrf.mxu1 }
 0x93a   :  { %4359 = vrcp.f32 %v3543_v1  ;;  %v4076_v9 = vmul.f32 -1.442695, %v3536_v51  ;;  %v3556_v62 = vand.u32 2147483648, %v3543_v1  ;;  %vm3550_vm6 = vweird.f32 %v3543_v1 }
 0x93b   :  { %v3554_v8 = vand.u32 2147483647, %v3543_v1 }
 0x93c   :  { %4361 = vpow2.f32 %v4076_v9  ;;  %v3557_v34 = vor.u32 1.1754944e-38, %v3556_v62 }
 0x93d   :  { %v4358_v18 = vpop.eup %4357  ;;  %v3446_v28 = vpop.f32.mrf.mxu3  ;;  %vm3555_vm8 = vcmp.eq.f32.partialorder %v3554_v8, 8.507059e+37 }
 0x93e   :  { %v3503_v19 = vadd.f32 1.0, %v4358_v18  ;;  %v3496_v53 = vadd.f32 %v3446_v28, %v2321_v32  ;;  %v7596_v28 = vld [vmem:[#allocation51_spill] sm:$0xff] }
 0x940   :  { %4363 = vrcp.f32 %v3503_v19  ;;  %v4360_v12 = vpop.eup %4359  ;;  %v4074_v60 = vmul.f32 -1.442695, %v3496_v53  ;;  %v3516_v61 = vand.u32 2147483648, %v3503_v19  ;;  %v3514_v10 = vand.u32 2147483647, %v3503_v19 }
 0x941   :  { %v3546_v24 = vmul.f32 %v4360_v12, %v3543_v1  ;;  %vm3510_vm2 = vweird.f32 %v3503_v19  ;;  %vm3551_vm5 = vweird.f32 %v4360_v12  ;;  %v3576_v1 = vadd.f32 %v7122_v41, %v3492_v14 }
 0x942   :  { %v4362_v63 = vpop.eup %4361  ;;  %4365 = vpow2.f32 %v4074_v60  ;;  %v3517_v27 = vor.u32 1.1754944e-38, %v3516_v61  ;;  %vm3515_vm4 = vcmp.eq.f32.partialorder %v3514_v10, 8.507059e+37  ;;  %vm3552_vm7 = vmor %vm3550_vm6, %vm3551_vm5  ;;  %v7598_v10 = vld [vmem:[#allocation53_spill] sm:$0xff] }
 0x943   :  { %v7225_v46 = vadd.f32 1.0, %v4362_v63  ;;  %v3547_v56 = vsub.f32 1.0, %v3546_v24 }
 0x945   :  { %4367 = vrcp.f32 %v7225_v46  ;;  %v3548_v39 = vmul.f32 %v4360_v12, %v3547_v56  ;;  %v3571_v53 = vand.u32 2147483648, %v7225_v46  ;;  %vm3565_vm14 = vweird.f32 %v7225_v46 }
 0x946   :  { %v4364_v55 = vpop.eup %4363  ;;  %v3569_v60 = vand.u32 2147483647, %v7225_v46 }
 0x947   :  { %v3506_v3 = vmul.f32 %v4364_v55, %v3503_v19  ;;  %vm3511_vm1 = vweird.f32 %v4364_v55  ;;  %v3549_v59 = vadd.f32 %v4360_v12, %v3548_v39  ;;  %v2451_v19 = vadd.f32 %v7596_v28, %v6658_v20 }
 0x948   :  { %v4366_v38 = vpop.eup %4365  ;;  %vm3512_vm3 = vmor %vm3510_vm2, %vm3511_vm1  ;;  %vm3570_vm0 = vcmp.eq.f32.partialorder %v3569_v60, 8.507059e+37  ;;  %v2389_v39 = vadd.f32 %v7598_v10, %v7579_v6  ;;  %v7601_v60 = vld [vmem:[#allocation54_spill] sm:$0xff] }
 0x949   :  { %v3507_v15 = vsub.f32 1.0, %v3506_v3  ;;  %v3504_v43 = vadd.f32 1.0, %v4366_v38  ;;  %v3553_v54 = vsel %vm3552_vm7, %v4360_v12, %v3549_v59 }
 0x94a   :  { %v3558_v35 = vsel %vm3555_vm8, %v3557_v34, %v3553_v54 }
 0x94b   :  { %v3508_v31 = vmul.f32 %v4364_v55, %v3507_v15  ;;  %4369 = vrcp.f32 %v3504_v43  ;;  %v7228_v30 = vpop.eup %4367  ;;  %v3531_v26 = vand.u32 2147483648, %v3504_v43  ;;  %v3529_v33 = vand.u32 2147483647, %v3504_v43 }
 0x94c   :  { %v3561_v7 = vmul.f32 %v7228_v30, %v7225_v46  ;;  %vm3525_vm10 = vweird.f32 %v3504_v43  ;;  %v3583_v52 = vsub.f32 1.0, %v3558_v35  ;;  %v3587_v9 = vmul.f32 %v3558_v35, %v7190_v36 }
 0x94d   :  { %v3509_v49 = vadd.f32 %v4364_v55, %v3508_v31  ;;  %v3532_v57 = vor.u32 1.1754944e-38, %v3531_v26  ;;  %vm3530_vm12 = vcmp.eq.f32.partialorder %v3529_v33, 8.507059e+37  ;;  %vm3566_vm13 = vweird.f32 %v7228_v30 }
 0x94e   :  { %v3562_v4 = vsub.f32 1.0, %v3561_v7  ;;  %vm3567_vm15 = vmor %vm3565_vm14, %vm3566_vm13 }
 0x94f   :  { %v3513_v2 = vsel %vm3512_vm3, %v4364_v55, %v3509_v49  ;;  %v3572_v55 = vor.u32 1.1754944e-38, %v3571_v53 }
 0x950   :  { %v3518_v44 = vsel %vm3515_vm4, %v3517_v27, %v3513_v2  ;;  %v3563_v22 = vmul.f32 %v7228_v30, %v3562_v4 }
 0x951   :  { %v3577_v42 = vmul.f32 %v3575_v47, %v3518_v44  ;;  %v4370_v45 = vpop.eup %4369  ;;  %v7599_v44 = vld [vmem:[#allocation55_spill] sm:$0xff] }
 0x952   :  { %v3521_v11 = vmul.f32 %v4370_v45, %v3504_v43  ;;  %vm3526_vm9 = vweird.f32 %v4370_v45  ;;  %v3564_v13 = vadd.f32 %v7228_v30, %v3563_v22  ;;  %v7597_v43 = vld [vmem:[#allocation52_spill] sm:$0xff]  ;;  %v2327_v7 = vadd.f32 %v7599_v44, %v7577_v23 }
 0x953   :  { %v3579_v0 = vadd.f32 %v3577_v42, %v2448_v37  ;;  %vm3527_vm11 = vmor %vm3525_vm10, %vm3526_vm9  ;;  %v2324_v31 = vadd.f32 %v7597_v43, %v7577_v23  ;;  %v2392_v37 = vadd.f32 %v7600_v16, %v7579_v6 }
 0x954   :  { %v3522_v50 = vsub.f32 1.0, %v3521_v11  ;;  %v3568_v24 = vsel %vm3567_vm15, %v7228_v30, %v3564_v13 }
 0x955   :  { %4371 = vtanh.f32 %v3579_v0  ;;  %v3573_v3 = vsel %vm3570_vm0, %v3572_v55, %v3568_v24 }
 0x956   :  { %v3523_v48 = vmul.f32 %v4370_v45, %v3522_v50  ;;  %v3584_v56 = vsub.f32 1.0, %v3573_v3  ;;  %v3588_v46 = vmul.f32 %v3573_v3, %v7200_v5 }
 0x958   :  { %v3524_v17 = vadd.f32 %v4370_v45, %v3523_v48 }
 0x95a   :  { %v3528_v51 = vsel %vm3527_vm11, %v4370_v45, %v3524_v17 }
 0x95b   :  { %v4372_v21 = vpop.eup %4371  ;;  %v3533_v32 = vsel %vm3530_vm12, %v3532_v57, %v3528_v51 }
 0x95c   :  { %v3585_v18 = vmul.f32 %v4372_v21, %v3583_v52  ;;  %v3578_v12 = vmul.f32 %v3576_v1, %v3533_v32 }
 0x95e   :  { %v7245_v63 = vadd.f32 %v3587_v9, %v3585_v18  ;;  %v3580_v36 = vadd.f32 %v3578_v12, %v2451_v19 }
 0x960   :  { %3613 = vmatmul.f32.vlgmr.msra.gmra.mxu2 %v7245_v63  ;;  %3636 = vmatmul.f32.vlgmr.msra.gmra.mxu3 %v7245_v63  ;;  %4373 = vtanh.f32 %v3580_v36  ;;  %v2454_v36 = vadd.f32 %v7601_v60, %v6658_v20 }
 0x961   :  { %3659 = vmatmul.f32.vlgmr.msrb.gmra.mxu0 %v7245_v63 }
 0x966   :  { %v4374_v38 = vpop.eup %4373 }
 0x967   :  { %v3586_v15 = vmul.f32 %v4374_v38, %v3584_v56 }
 0x969   :  { %v7252_v61 = vadd.f32 %v3588_v46, %v3586_v15 }
 0x96b   :  { %3616 = vmatmul.f32.gmra.mxu2 %v7252_v61  ;;  %3639 = vmatmul.f32.gmra.mxu3 %v7252_v61 }
 0x96c   :  { %3662 = vmatmul.f32.gmra.mxu0 %v7252_v61 }
 0x9de   :  { %v3660_v51 = vpop.f32.mrf.mxu0 }
 0x9df   :  { %v3746_v28 = vadd.f32 %v7122_v41, %v3660_v51  ;;  %v3928_v51 = vld [vmem:[%s7365_s9 + $0x70] sm:$0xff] }
 0x9e3   :  { %v3614_v40 = vpop.f32.mrf.mxu2  ;;  %v3637_v30 = vpop.f32.mrf.mxu3 }
 0x9e4   :  { %v3666_v49 = vadd.f32 %v3614_v40, %v2324_v31  ;;  %v3706_v27 = vadd.f32 %v3637_v30, %v2389_v39 }
 0x9e6   :  { %v4077_v47 = vmul.f32 -1.442695, %v3666_v49  ;;  %v4079_v2 = vmul.f32 -1.442695, %v3706_v27 }
 0x9e8   :  { %4375 = vpow2.f32 %v4077_v47 }
 0x9e9   :  { %4377 = vpow2.f32 %v4079_v2  ;;  %v3663_v27 = vpop.f32.mrf.mxu0 }
 0x9ee   :  { %v4376_v59 = vpop.eup %4375  ;;  %v3617_v45 = vpop.f32.mrf.mxu2 }
 0x9ef   :  { %v4378_v62 = vpop.eup %4377  ;;  %v3674_v42 = vadd.f32 1.0, %v4376_v59  ;;  %v3640_v8 = vpop.f32.mrf.mxu3  ;;  %v3667_v0 = vadd.f32 %v3617_v45, %v2327_v7 }
 0x9f0   :  { %v3714_v11 = vadd.f32 1.0, %v4378_v62  ;;  %v3707_v4 = vadd.f32 %v3640_v8, %v2392_v37  ;;  %v3747_v37 = vadd.f32 %v7122_v41, %v3663_v27 }
 0x9f1   :  { %4379 = vrcp.f32 %v3674_v42  ;;  %v4078_v54 = vmul.f32 -1.442695, %v3667_v0  ;;  %v3687_v14 = vand.u32 2147483648, %v3674_v42  ;;  %v3685_v21 = vand.u32 2147483647, %v3674_v42 }
 0x9f2   :  { %4381 = vrcp.f32 %v3714_v11  ;;  %v4080_v34 = vmul.f32 -1.442695, %v3707_v4  ;;  %vm3681_vm2 = vweird.f32 %v3674_v42  ;;  %v3727_v55 = vand.u32 2147483648, %v3714_v11  ;;  %v7602_v4 = vld [vmem:[#allocation57_spill] sm:$0xff] }
 0x9f3   :  { %4383 = vpow2.f32 %v4078_v54  ;;  %v3688_v18 = vor.u32 1.1754944e-38, %v3687_v14  ;;  %vm3686_vm4 = vcmp.eq.f32.partialorder %v3685_v21, 8.507059e+37  ;;  %vm3721_vm6 = vweird.f32 %v3714_v11  ;;  %v3929_v21 = vld [vmem:[%s7365_s9 + $0x78] sm:$0xff] }
 0x9f4   :  { %4385 = vpow2.f32 %v4080_v34  ;;  %v3725_v3 = vand.u32 2147483647, %v3714_v11  ;;  %v3728_v31 = vor.u32 1.1754944e-38, %v3727_v55  ;;  %v2457_v54 = vadd.f32 %v7602_v4, %v6658_v20  ;;  %3934 = vmatpush.msra.mxu0 %v3929_v21 }
 0x9f6   :  { %vm3726_vm8 = vcmp.eq.f32.partialorder %v3725_v3, 8.507059e+37  ;;  %3935 = vmatpush.msra.mxu0 %v3928_v51  ;;  %v3921_v3 = vld [vmem:[%s7365_s9 + $0x38] sm:$0xff]  ;;  %v3883_v51 = vrot.slane %v6947_v58, 6 }
 0x9f7   :  { %v4380_v50 = vpop.eup %4379 }
 0x9f8   :  { %v4382_v26 = vpop.eup %4381  ;;  %v3677_v48 = vmul.f32 %v4380_v50, %v3674_v42  ;;  %vm3682_vm1 = vweird.f32 %v4380_v50 }
 0x9f9   :  { %v3717_v33 = vmul.f32 %v4382_v26, %v3714_v11  ;;  %v4384_v22 = vpop.eup %4383  ;;  %vm3683_vm3 = vmor %vm3681_vm2, %vm3682_vm1  ;;  %vm3722_vm5 = vweird.f32 %v4382_v26 }
 0x9fa   :  { %v3678_v35 = vsub.f32 1.0, %v3677_v48  ;;  %v4386_v57 = vpop.eup %4385  ;;  %v3675_v1 = vadd.f32 1.0, %v4384_v22  ;;  %vm3723_vm7 = vmor %vm3721_vm6, %vm3722_vm5 }
 0x9fb   :  { %v3718_v17 = vsub.f32 1.0, %v3717_v33  ;;  %v7265_v13 = vadd.f32 1.0, %v4386_v57 }
 0x9fc   :  { %v3679_v52 = vmul.f32 %v4380_v50, %v3678_v35  ;;  %4387 = vrcp.f32 %v3675_v1  ;;  %v3702_v40 = vand.u32 2147483648, %v3675_v1  ;;  %v3700_v2 = vand.u32 2147483647, %v3675_v1 }
 0x9fd   :  { %v3719_v9 = vmul.f32 %v4382_v26, %v3718_v17  ;;  %4389 = vrcp.f32 %v7265_v13  ;;  %vm3696_vm10 = vweird.f32 %v3675_v1  ;;  %vm3736_vm14 = vweird.f32 %v7265_v13 }
 0x9fe   :  { %v3680_v32 = vadd.f32 %v4380_v50, %v3679_v52  ;;  %v3703_v62 = vor.u32 1.1754944e-38, %v3702_v40  ;;  %vm3701_vm12 = vcmp.eq.f32.partialorder %v3700_v2, 8.507059e+37  ;;  %v3740_v41 = vand.u32 2147483647, %v7265_v13  ;;  %v3917_v40 = vld [vmem:[%s7365_s9 + $0x18] sm:$0xff] }
 0x9ff   :  { %v3720_v12 = vadd.f32 %v4382_v26, %v3719_v9  ;;  %v3927_v9 = vld [vmem:[%s7365_s9 + $0x68] sm:$0xff] }
 0xa00   :  { %v3684_v19 = vsel %vm3683_vm3, %v4380_v50, %v3680_v32  ;;  %v3742_v50 = vand.u32 2147483648, %v7265_v13  ;;  %vm3741_vm0 = vcmp.eq.f32.partialorder %v3740_v41, 8.507059e+37  ;;  %3936 = vmatpush.msra.mxu0 %v3927_v9  ;;  %v7605_v41 = vld [vmem:[#allocation64_spill] sm:$0xff] }
 0xa01   :  { %v3689_v53 = vsel %vm3686_vm4, %v3688_v18, %v3684_v19  ;;  %v3724_v43 = vsel %vm3723_vm7, %v4382_v26, %v3720_v12  ;;  %v3925_v18 = vld [vmem:[%s7365_s9 + $0x58] sm:$0xff]  ;;  %v3924_v19 = vld [vmem:[%s7365_s9 + $0x50] sm:$0xff]  ;;  %v7603_v12 = vld [vmem:[#allocation58_spill] sm:$0xff] }
 0xa02   :  { %v3748_v24 = vmul.f32 %v3746_v28, %v3689_v53  ;;  %v4388_v56 = vpop.eup %4387  ;;  %v3729_v49 = vsel %vm3726_vm8, %v3728_v31, %v3724_v43  ;;  %v3743_v33 = vor.u32 1.1754944e-38, %v3742_v50  ;;  %v3923_v53 = vld [vmem:[%s7365_s9 + $0x48] sm:$0xff]  ;;  %v2333_v60 = vadd.f32 %v7603_v12, %v7577_v23  ;;  %v7604_v23 = vld [vmem:[#allocation59_spill] sm:$0xff]  ;;  %v4482_v50 = vld [vmem:[%s7364_s8] ss:$0 sm:$0xff] }
 0xa03   :  { %v4390_v15 = vpop.eup %4389  ;;  %v3692_v46 = vmul.f32 %v4388_v56, %v3675_v1  ;;  %vm3697_vm9 = vweird.f32 %v4388_v56  ;;  %v3754_v7 = vsub.f32 1.0, %v3729_v49  ;;  %v3758_v8 = vmul.f32 %v3729_v49, %v7245_v63  ;;  %v3915_v49 = vld [vmem:[%s7365_s9 + $0x8] sm:$0xff] }
 0xa04   :  { %v3750_v38 = vadd.f32 %v3748_v24, %v2454_v36  ;;  %v3732_v10 = vmul.f32 %v4390_v15, %v7265_v13  ;;  %vm3698_vm11 = vmor %vm3696_vm10, %vm3697_vm9  ;;  %vm3737_vm13 = vweird.f32 %v4390_v15  ;;  %v3926_v13 = vld [vmem:[%s7365_s9 + $0x60] sm:$0xff]  ;;  %vm3900_vm9 = vcmask 1040384  }
 0xa05   :  { %v3693_v39 = vsub.f32 1.0, %v3692_v46  ;;  %vm3738_vm15 = vmor %vm3736_vm14, %vm3737_vm13  ;;  %3937 = vmatpush.msra.mxu0 %v3926_v13  ;;  %v3922_v36 = vld [vmem:[%s7365_s9 + $0x40] sm:$0xff]  ;;  %v3919_v46 = vld [vmem:[%s7365_s9 + $0x28] sm:$0xff]  ;;  %v3886_v13 = vrot.slane %v7062_v29, 5  ;;  %vm3902_vm10 = vcmask 1041408   ;;  %vm3908_vm13 = vcmask 1044480  }
 0xa06   :  { %4391 = vtanh.f32 %v3750_v38  ;;  %v3733_v30 = vsub.f32 1.0, %v3732_v10  ;;  %v3920_v38 = vld [vmem:[%s7365_s9 + $0x30] sm:$0xff]  ;;  %v3918_v10 = vld [vmem:[%s7365_s9 + $0x20] sm:$0xff]  ;;  %vm3910_vm14 = vcmask 1045504  }
 0xa07   :  { %v3694_v47 = vmul.f32 %v4388_v56, %v3693_v39  ;;  %3938 = vmatpush.msra.mxu0 %v3925_v18  ;;  %v3889_v18 = vrot.slane %v7144_v25, 4 }
 0xa08   :  { %v3734_v59 = vmul.f32 %v4390_v15, %v3733_v30 }
 0xa09   :  { %v3695_v44 = vadd.f32 %v4388_v56, %v3694_v47  ;;  %3939 = vmatpush.msra.mxu0 %v3924_v19  ;;  %v3914_v47 = vld [vmem:[%s7365_s9] sm:$0xff] }
 0xa0a   :  { %v3735_v0 = vadd.f32 %v4390_v15, %v3734_v59 }
 0xa0b   :  { %v3699_v42 = vsel %vm3698_vm11, %v4388_v56, %v3695_v44  ;;  %3940 = vmatpush.msra.mxu0 %v3923_v53  ;;  %vm3904_vm11 = vcmask 1042432   ;;  %v3895_v53 = vrot.slane %v7252_v61, 2 }
 0xa0c   :  { %v4392_v16 = vpop.eup %4391  ;;  %v3704_v11 = vsel %vm3701_vm12, %v3703_v62, %v3699_v42  ;;  %v3739_v63 = vsel %vm3738_vm15, %v4390_v15, %v3735_v0  ;;  %v2398_v15 = vadd.f32 %v7604_v23, %v7579_v6  ;;  %v3916_v6 = vld [vmem:[%s7365_s9 + $0x10] sm:$0xff]  ;;  %vm3906_vm12 = vcmask 1043456  }
 0xa0d   :  { %v3756_v45 = vmul.f32 %v4392_v16, %v3754_v7  ;;  %v3749_v34 = vmul.f32 %v3747_v37, %v3704_v11  ;;  %v3744_v35 = vsel %vm3741_vm0, %v3743_v33, %v3739_v63  ;;  %3941 = vmatpush.msra.mxu0 %v3922_v36  ;;  %vm3912_vm15 = vcmask 1046528  }
 0xa0e   :  { %v3755_v22 = vsub.f32 1.0, %v3744_v35  ;;  %v3759_v57 = vmul.f32 %v3744_v35, %v7252_v61  ;;  %v4094_v61 = vld [vmem:[%s7366_s10] ss:$0 sm:$0xff] }
 0xa0f   :  { %v3760_v26 = vadd.f32 %v3758_v8, %v3756_v45  ;;  %v3751_v48 = vadd.f32 %v3749_v34, %v2457_v54  ;;  %3942 = vmatpush.msra.mxu0 %v3921_v3 }
 0xa11   :  { %3781 = vmatmul.f32.vlgmr.msrb.gmra.mxu1 %v3760_v26  ;;  %3803 = vmatmul.f32.vlgmr.msrb.gmra.mxu2 %v3760_v26  ;;  %4393 = vtanh.f32 %v3751_v48  ;;  %v2463_v48 = vadd.f32 %v7605_v41, %v6658_v20  ;;  %v7606_v20 = vld [vmem:[#allocation23_spill] sm:$0xff] }
 0xa12   :  { %3825 = vmatmul.f32.vlgmr.msrb.gmra.mxu3 %v3760_v26  ;;  %3943 = vmatpush.msra.mxu0 %v3920_v38 }
 0xa14   :  { %3944 = vmatpush.msra.mxu0 %v3919_v46 }
 0xa16   :  { %3945 = vmatpush.msra.mxu0 %v3918_v10 }
 0xa17   :  { %v4394_v14 = vpop.eup %4393 }
 0xa18   :  { %v3757_v17 = vmul.f32 %v4394_v14, %v3755_v22  ;;  %3946 = vmatpush.msra.mxu0 %v3917_v40 }
 0xa1a   :  { %v7280_v52 = vadd.f32 %v3759_v57, %v3757_v17  ;;  %3947 = vmatpush.msra.mxu0 %v3916_v6 }
 0xa1c   :  { %3783 = vmatmul.f32.gmra.mxu1 %v7280_v52  ;;  %3805 = vmatmul.f32.gmra.mxu2 %v7280_v52  ;;  %v3898_v58 = vrot.slane %v7280_v52, 1 }
 0xa1d   :  { %3827 = vmatmul.f32.gmra.mxu3 %v7280_v52  ;;  %3948 = vmatpush.msra.mxu0 %v3915_v49 }
 0xa1f   :  { %3949 = vmatpush.msra.mxu0 %v3914_v47 }
 0xa8e   :  { %v3782_v1 = vpop.f32.mrf.mxu1 }
 0xa94   :  { %v3804_v32 = vpop.f32.mrf.mxu2 }
 0xa95   :  { %v3826_v28 = vpop.f32.mrf.mxu3  ;;  %v3880_v32 = vrot.slane %v7606_v20, 7 }
 0xa96   :  { %v3892_v28 = vrot.slane %v7200_v5, 3 }
 0xa97   :  { %v3901_v12 = vsel %vm3900_vm9, %v3880_v32, %v3883_v51 }
 0xa98   :  { %v3903_v36 = vsel %vm3902_vm10, %v3901_v12, %v3886_v13 }
 0xa99   :  { %v3784_v24 = vpop.f32.mrf.mxu1 }
 0xa9a   :  { %v3831_v55 = vadd.f32 %v3784_v24, %v2333_v60 }
 0xa9c   :  { %v4081_v56 = vmul.f32 -1.442695, %v3831_v55  ;;  %v3905_v55 = vsel %vm3904_vm11, %v3903_v36, %v3889_v18 }
 0xa9d   :  { %v3907_v25 = vsel %vm3906_vm12, %v3905_v55, %v3892_v28 }
 0xa9e   :  { %4395 = vpow2.f32 %v4081_v56  ;;  %v3909_v5 = vsel %vm3908_vm13, %v3907_v25, %v3895_v53 }
 0xa9f   :  { %v3806_v43 = vpop.f32.mrf.mxu2  ;;  %v3911_v56 = vsel %vm3910_vm14, %v3909_v5, %v3898_v58 }
 0xaa0   :  { %v3851_v31 = vadd.f32 %v3806_v43, %v2398_v15  ;;  %v3828_v8 = vpop.f32.mrf.mxu3 }
 0xaa1   :  { %v3871_v26 = vadd.f32 %v4482_v50, %v3828_v8 }
 0xaa2   :  { %v4082_v39 = vmul.f32 -1.442695, %v3851_v31 }
 0xaa4   :  { %v4396_v30 = vpop.eup %4395  ;;  %4397 = vpow2.f32 %v4082_v39 }
 0xaa5   :  { %v3835_v27 = vadd.f32 1.0, %v4396_v30 }
 0xaa7   :  { %4399 = vrcp.f32 %v3835_v27  ;;  %v3847_v37 = vand.u32 2147483648, %v3835_v27  ;;  %v3845_v42 = vand.u32 2147483647, %v3835_v27  ;;  %vm3841_vm2 = vweird.f32 %v3835_v27 }
 0xaa9   :  { %v3848_v4 = vor.u32 1.1754944e-38, %v3847_v37  ;;  %vm3846_vm4 = vcmp.eq.f32.partialorder %v3845_v42, 8.507059e+37 }
 0xaaa   :  { %v4398_v2 = vpop.eup %4397 }
 0xaab   :  { %v3855_v59 = vadd.f32 1.0, %v4398_v2 }
 0xaad   :  { %v4400_v44 = vpop.eup %4399  ;;  %4401 = vrcp.f32 %v3855_v59  ;;  %v3867_v35 = vand.u32 2147483648, %v3855_v59  ;;  %v3865_v14 = vand.u32 2147483647, %v3855_v59  ;;  %vm3861_vm6 = vweird.f32 %v3855_v59 }
 0xaae   :  { %v3837_v7 = vmul.f32 %v4400_v44, %v3835_v27  ;;  %vm3842_vm1 = vweird.f32 %v4400_v44 }
 0xaaf   :  { %vm3843_vm3 = vmor %vm3841_vm2, %vm3842_vm1  ;;  %v3868_v21 = vor.u32 1.1754944e-38, %v3867_v35  ;;  %vm3866_vm8 = vcmp.eq.f32.partialorder %v3865_v14, 8.507059e+37 }
 0xab0   :  { %v3838_v16 = vsub.f32 1.0, %v3837_v7 }
 0xab2   :  { %v3839_v62 = vmul.f32 %v4400_v44, %v3838_v16 }
 0xab3   :  { %v4402_v45 = vpop.eup %4401 }
 0xab4   :  { %v3857_v11 = vmul.f32 %v4402_v45, %v3855_v59  ;;  %v3840_v0 = vadd.f32 %v4400_v44, %v3839_v62  ;;  %vm3862_vm5 = vweird.f32 %v4402_v45 }
 0xab5   :  { %vm3863_vm7 = vmor %vm3861_vm6, %vm3862_vm5 }
 0xab6   :  { %v3858_v54 = vsub.f32 1.0, %v3857_v11  ;;  %v3844_v34 = vsel %vm3843_vm3, %v4400_v44, %v3840_v0 }
 0xab7   :  { %v3849_v63 = vsel %vm3846_vm4, %v3848_v4, %v3844_v34 }
 0xab8   :  { %v3859_v33 = vmul.f32 %v4402_v45, %v3858_v54  ;;  %v3872_v22 = vmul.f32 %v3871_v26, %v3849_v63 }
 0xaba   :  { %v3860_v17 = vadd.f32 %v4402_v45, %v3859_v33  ;;  %v3873_v57 = vadd.f32 %v3872_v22, %v2463_v48 }
 0xabc   :  { %v3864_v1 = vsel %vm3863_vm7, %v4402_v45, %v3860_v17  ;;  %4403 = vtanh.f32 %v3873_v57 }
 0xabd   :  { %v3869_v9 = vsel %vm3866_vm8, %v3868_v21, %v3864_v1 }
 0xabe   :  { %v3875_v19 = vsub.f32 1.0, %v3869_v9  ;;  %v3877_v24 = vmul.f32 %v3869_v9, %v7280_v52 }
 0xac2   :  { %v4404_v60 = vpop.eup %4403 }
 0xac3   :  { %v3876_v29 = vmul.f32 %v4404_v60, %v3875_v19 }
 0xac5   :  { %v3878_v3 = vadd.f32 %v3877_v24, %v3876_v29 }
 0xac7   :  { %v3913_v38 = vsel %vm3912_vm15, %v3911_v56, %v3878_v3 }
 0xac8   :  { %3950 = vmatmul.f32.vlgmr.msra.gmra.mxu0 %v3913_v38 }
 0xb45   :  { %v3951_v52 = vpop.f32.mrf.mxu0 }
 0xb46   :  { %v3952_v23 = vadd.f32 %v4094_v61, %v3951_v52 }
 0xb48   :  { %3954 = vst [vmem:[#allocation10] sm:$0xff] %v3952_v23 }
 0xb49   :  { %3965 = dma.vmem_to_hbm [thread:$0]  %s3961_s21, 128, %s3963_s24, [#allocation6]  }
 0xb4a   :  { %4583 = dma.done.wait [#allocation6], 128  }
 0xb4b   :  { %4584 = vsyncadd [#allocation6], 4294967168 }
 0xb4c   :  { %3970 = vsyncpa [#allocation5], 1 }
 0xb4d   :  { %3971 = vsyncpa [#allocation8], 1 }
 0xb4e   :  { %3972 = vsyncpa [#allocation6], 1 }

</bundles_post_ra>
